<compile_context>
chip_gen: v7x
topology: tpu7x:2x2x1
jax: 0.10.0
libtpu: 0.0.40
codegen_flags: <defaults>
</compile_context>

<pallas_src>
import math

import jax
import jax.numpy as jnp
from jax.experimental import pallas as pl
from jax.experimental.pallas import tpu as pltpu

# ---- small synthetic model dims ----
PREFIX_LEN = 4          # self.prefix_length
PREFIX_SIZE = 64        # clip feature dim (prefix_size)
EMBED = 32              # model_embedding_size (wte hidden dim)
VOCAB = 128
N_LAYER = 2
N_HEAD = 4
HEAD_DIM = EMBED // N_HEAD
N_POS = 64
LN_EPS = 1e-5
CLIP_HIDDEN = EMBED * PREFIX_LEN // 2


def _gelu_new(x):
    # GPT-2 "gelu_new" (tanh approximation), kept in f32
    return 0.5 * x * (1.0 + jnp.tanh(
        math.sqrt(2.0 / math.pi) * (x + 0.044715 * x * x * x)))


# ---------------- fused Pallas kernel (factory closes over BB, t_text) -------

def _make_kernel(bb, t_text):
    t_total = PREFIX_LEN + t_text
    scale = 1.0 / math.sqrt(HEAD_DIM)
    f32 = jnp.float32
    bf16 = jnp.bfloat16

    def kernel(prefix_ref, emb_ref,
               cw1_ref, cb1_ref, cw2_ref, cb2_ref,
               ln1_g_ref, ln1_b_ref,
               qw_ref, qb_ref, kw_ref, kb_ref, vw_ref, vb_ref,
               pw_ref, pb_ref,
               ln2_g_ref, ln2_b_ref,
               fc_w_ref, fc_b_ref, mlp_w_ref, mlp_b_ref,
               lnf_g_ref, lnf_b_ref, lm_w_ref,
               o_ref, h_scr):

        def layernorm(x, g, b):
            mu = jnp.mean(x, axis=-1, keepdims=True)
            var = jnp.mean(jnp.square(x - mu), axis=-1, keepdims=True)
            return (x - mu) * jax.lax.rsqrt(var + LN_EPS) * g + b

        # ---- clip_project MLP: Linear -> Tanh -> Linear, all BB rows at once
        px = prefix_ref[...][:, 0, :].astype(bf16)                 # (BB, P)
        h1 = jnp.tanh(jnp.dot(px, cw1_ref[...],
                              preferred_element_type=f32) + cb1_ref[...])
        h1 = h1.astype(bf16)                                       # (BB, HIDDEN)

        # ---- build the (BB*T, E) activation slab in VMEM scratch ------------
        # prefix-projection rows (position emb already folded into cb2)
        for ll in range(PREFIX_LEN):
            rows = jnp.dot(h1, cw2_ref[ll],
                           preferred_element_type=f32) + cb2_ref[ll]   # (BB, E)
            for b in range(bb):
                h_scr[pl.ds(b * t_total + ll, 1), :] = rows[b:b + 1, :]
        # token embeddings (position emb pre-added in the wrapper)
        for b in range(bb):
            h_scr[pl.ds(b * t_total + PREFIX_LEN, t_text), :] = emb_ref[b]

        h = h_scr[...]                                             # (BB*T, E) f32

        # causal mask: built once, shared by all layers / heads / batch rows
        qi = jax.lax.broadcasted_iota(jnp.int32, (t_total, t_total), 0)
        kj = jax.lax.broadcasted_iota(jnp.int32, (t_total, t_total), 1)
        causal = kj <= qi

        # ---- transformer blocks (statically unrolled, stacked weights) ------
        for l in range(N_LAYER):
            # attention (pre-LN)
            xn = layernorm(h, ln1_g_ref[l], ln1_b_ref[l]).astype(bf16)
            a = jnp.zeros((bb * t_total, EMBED), f32)
            for hh in range(N_HEAD):
                lh = l * N_HEAD + hh
                q = (jnp.dot(xn, qw_ref[lh], preferred_element_type=f32)
                     + qb_ref[lh]).astype(bf16)                    # (BB*T, HD)
                k = (jnp.dot(xn, kw_ref[lh], preferred_element_type=f32)
                     + kb_ref[lh]).astype(bf16)
                v = (jnp.dot(xn, vw_ref[lh], preferred_element_type=f32)
                     + vb_ref[lh]).astype(bf16)
                parts = []
                for b in range(bb):
                    sl = slice(b * t_total, (b + 1) * t_total)     # aligned (T=16)
                    s = jax.lax.dot_general(q[sl], k[sl],
                                            (((1,), (1,)), ((), ())),
                                            preferred_element_type=f32) * scale
                    s = jnp.where(causal, s, -1e30)
                    s = s - jnp.max(s, axis=-1, keepdims=True)
                    p = jnp.exp(s)
                    p = p * pl.reciprocal(jnp.sum(p, axis=-1, keepdims=True),
                                          approx=True)
                    parts.append(jnp.dot(p.astype(bf16), v[sl],
                                         preferred_element_type=f32))
                ho = (parts[0] if bb == 1
                      else jnp.concatenate(parts, axis=0)).astype(bf16)
                # per-head output projection, accumulated (no lane concat)
                a = a + jnp.dot(ho, pw_ref[lh], preferred_element_type=f32)
            h = h + a + pb_ref[l]

            # GELU MLP (pre-LN)
            xn2 = layernorm(h, ln2_g_ref[l], ln2_b_ref[l]).astype(bf16)
            m = jnp.dot(xn2, fc_w_ref[l],
                        preferred_element_type=f32) + fc_b_ref[l]
            m = _gelu_new(m).astype(bf16)
            h = h + jnp.dot(m, mlp_w_ref[l],
                            preferred_element_type=f32) + mlp_b_ref[l]

        # ---- final LN + tied lm_head (lane-dense VOCAB=128 output) ----------
        hf = layernorm(h, lnf_g_ref[...], lnf_b_ref[...]).astype(bf16)
        logits = jnp.dot(hf, lm_w_ref[...], preferred_element_type=f32)
        for b in range(bb):
            o_ref[b] = logits[b * t_total:(b + 1) * t_total, :]

    return kernel


def _rep0(shape):
    n = len(shape)
    return pl.BlockSpec(shape, lambda i, _n=n: (0,) * _n)


def _batch_blocking(batch):
    """Rows-per-step (BB) and grid length.  Grid kept >= 2 (and even) whenever
    B >= 2 so both v7x TensorCores get work; rows are packed (<=8 per step) to
    amortize per-step overhead on all generations."""
    if batch <= 1:
        return 1, 1
    n_steps = max(2, pl.cdiv(batch, 8))
    if n_steps % 2:
        n_steps += 1
    bb = pl.cdiv(batch, n_steps)
    n_steps = pl.cdiv(batch, bb)
    return bb, n_steps


# ---------------- jitted wrapper ----------------

@jax.jit
def clip_caption_forward(tokens, prefix, attribute, params):
    # TODO(synk): attention_mask and labels (LM-loss) paths are not implemented;
    # this matches the logits-only call (mask=None, labels=None).
    B = tokens.shape[0]
    bf16 = jnp.bfloat16

    ids = jnp.concatenate([attribute, tokens], axis=1)             # (B, t_text)
    t_text = ids.shape[1]
    t_total = PREFIX_LEN + t_text
    # token embeddings with position embeddings pre-added (wrapper-side layout
    # plumbing; fuses with the wte gather)
    emb_text = jnp.take(params["wte"], ids, axis=0) \
        + params["wpe"][PREFIX_LEN:t_total][None]                  # (B, t_text, E)

    bb, n_steps = _batch_blocking(B)
    b_pad = bb * n_steps
    prefix3 = prefix[:, None, :]                                   # (B, 1, P_SIZE)
    if b_pad != B:
        prefix3 = jnp.pad(prefix3, [(0, b_pad - B), (0, 0), (0, 0)])
        emb_text = jnp.pad(emb_text, [(0, b_pad - B), (0, 0), (0, 0)])

    # ---- wrapper-side weight layout: per-head splits so the kernel never
    # ---- takes sub-128-lane slices ---------------------------------------
    attn_w, attn_b = params["attn_w"], params["attn_b"]

    def _split_heads_w(w):      # (L, E, E) -> (L*H, E, HD)
        return (w.reshape(N_LAYER, EMBED, N_HEAD, HEAD_DIM)
                 .transpose(0, 2, 1, 3)
                 .reshape(N_LAYER * N_HEAD, EMBED, HEAD_DIM))

    def _split_heads_b(b):      # (L, E) -> (L*H, 1, HD)
        return b.reshape(N_LAYER * N_HEAD, 1, HEAD_DIM)

    qw = _split_heads_w(attn_w[:, :, :EMBED]).astype(bf16)
    kw = _split_heads_w(attn_w[:, :, EMBED:2 * EMBED]).astype(bf16)
    vw = _split_heads_w(attn_w[:, :, 2 * EMBED:]).astype(bf16)
    qb = _split_heads_b(attn_b[:, :EMBED])
    kb = _split_heads_b(attn_b[:, EMBED:2 * EMBED])
    vb = _split_heads_b(attn_b[:, 2 * EMBED:])
    pw = params["proj_w"].reshape(N_LAYER * N_HEAD, HEAD_DIM, EMBED).astype(bf16)

    # clip_project second Linear split per prefix position; prefix position
    # embeddings folded into its bias
    cw2 = (params["cw2"].reshape(CLIP_HIDDEN, PREFIX_LEN, EMBED)
           .transpose(1, 0, 2)).astype(bf16)                       # (P, HIDDEN, E)
    cb2e = (params["cb2"].reshape(PREFIX_LEN, 1, EMBED)
            + params["wpe"][:PREFIX_LEN][:, None, :])              # (P, 1, E)

    operands = [
        prefix3,                                                   # (b_pad,1,P_SIZE)
        emb_text,                                                  # (b_pad,t_text,E)
        params["cw1"].astype(bf16),                                # (P_SIZE, HIDDEN)
        params["cb1"].reshape(1, -1),                              # (1, HIDDEN)
        cw2, cb2e,
        params["ln1_g"][:, None, :], params["ln1_b"][:, None, :],
        qw, qb, kw, kb, vw, vb,
        pw, params["proj_b"][:, None, :],
        params["ln2_g"][:, None, :], params["ln2_b"][:, None, :],
        params["fc_w"].astype(bf16), params["fc_b"][:, None, :],
        params["mlp_proj_w"].astype(bf16), params["mlp_proj_b"][:, None, :],
        params["lnf_g"].reshape(1, -1), params["lnf_b"].reshape(1, -1),
        params["wte"].T.astype(bf16),                              # tied lm_head (E,V)
    ]
    in_specs = [
        pl.BlockSpec((bb, 1, PREFIX_SIZE), lambda i: (i, 0, 0)),
        pl.BlockSpec((bb, t_text, EMBED), lambda i: (i, 0, 0)),
    ] + [_rep0(op.shape) for op in operands[2:]]

    # advisory cost estimate so XLA can schedule the gather/casts around the call
    flops = 2 * b_pad * (PREFIX_SIZE * CLIP_HIDDEN
                         + CLIP_HIDDEN * PREFIX_LEN * EMBED)
    flops += 2 * b_pad * t_total * (
        N_LAYER * (4 * EMBED * EMBED + 2 * t_total * EMBED + 8 * EMBED * EMBED)
        + EMBED * VOCAB)
    transcendentals = (b_pad * CLIP_HIDDEN
                       + b_pad * t_total * N_LAYER * (t_total + 4 * EMBED))
    bytes_accessed = int(sum(op.size * op.dtype.itemsize for op in operands)
                         + b_pad * t_total * VOCAB * 4)

    logits = pl.pallas_call(
        _make_kernel(bb, t_text),
        out_shape=jax.ShapeDtypeStruct((b_pad, t_total, VOCAB), jnp.float32),
        grid=(n_steps,),
        in_specs=in_specs,
        out_specs=pl.BlockSpec((bb, t_total, VOCAB), lambda i: (i, 0, 0)),
        scratch_shapes=[pltpu.VMEM((bb * t_total, EMBED), jnp.float32)],
        compiler_params=pltpu.CompilerParams(
            dimension_semantics=("parallel",)),
        cost_estimate=pl.CostEstimate(flops=flops,
                                      transcendentals=transcendentals,
                                      bytes_accessed=bytes_accessed),
    )(*operands)
    return logits[:B]


# ---------------- synthetic params ----------------

def init_params(key):
    std = 0.02
    ks = iter(jax.random.split(key, 32))

    def nrm(shape):
        return jax.random.normal(next(ks), shape, jnp.float32) * std

    return dict(
        wte=nrm((VOCAB, EMBED)),
        wpe=nrm((N_POS, EMBED)),
        cw1=nrm((PREFIX_SIZE, CLIP_HIDDEN)),
        cb1=jnp.zeros((CLIP_HIDDEN,), jnp.float32),
        cw2=nrm((CLIP_HIDDEN, EMBED * PREFIX_LEN)),
        cb2=jnp.zeros((EMBED * PREFIX_LEN,), jnp.float32),
        ln1_g=jnp.ones((N_LAYER, EMBED), jnp.float32),
        ln1_b=jnp.zeros((N_LAYER, EMBED), jnp.float32),
        attn_w=nrm((N_LAYER, EMBED, 3 * EMBED)),
        attn_b=jnp.zeros((N_LAYER, 3 * EMBED), jnp.float32),
        proj_w=nrm((N_LAYER, EMBED, EMBED)),
        proj_b=jnp.zeros((N_LAYER, EMBED), jnp.float32),
        ln2_g=jnp.ones((N_LAYER, EMBED), jnp.float32),
        ln2_b=jnp.zeros((N_LAYER, EMBED), jnp.float32),
        fc_w=nrm((N_LAYER, EMBED, 4 * EMBED)),
        fc_b=jnp.zeros((N_LAYER, 4 * EMBED), jnp.float32),
        mlp_proj_w=nrm((N_LAYER, 4 * EMBED, EMBED)),
        mlp_proj_b=jnp.zeros((N_LAYER, EMBED), jnp.float32),
        lnf_g=jnp.ones((EMBED,), jnp.float32),
        lnf_b=jnp.zeros((EMBED,), jnp.float32),
    )


if __name__ == "__main__":
    key = jax.random.PRNGKey(0)
    kp, kt, ka, kx = jax.random.split(key, 4)
    params = init_params(kp)

    B, T_TOK, T_ATTR = 4, 8, 4
    tokens = jax.random.randint(kt, (B, T_TOK), 0, VOCAB, dtype=jnp.int32)
    attribute = jax.random.randint(ka, (B, T_ATTR), 0, VOCAB, dtype=jnp.int32)
    prefix = jax.random.normal(kx, (B, PREFIX_SIZE), jnp.float32)

    logits = clip_caption_forward(tokens, prefix, attribute, params)
    jax.block_until_ready(logits)
    assert logits.shape == (B, PREFIX_LEN + T_ATTR + T_TOK, VOCAB)
    assert bool(jnp.isfinite(logits).all())
    print("KERNEL_OK")
</pallas_src>

<mosaic_0001>
module attributes {stable_mosaic.version = 11 : i64} {
  func.func @kernel(%arg0: i32, %arg1: memref<2x1x64xf32, #tpu.memory_space<vmem>>, %arg2: memref<2x12x32xf32, #tpu.memory_space<vmem>>, %arg3: memref<64x64xbf16, #tpu.memory_space<vmem>>, %arg4: memref<1x64xf32, #tpu.memory_space<vmem>>, %arg5: memref<4x64x32xbf16, #tpu.memory_space<vmem>>, %arg6: memref<4x1x32xf32, #tpu.memory_space<vmem>>, %arg7: memref<2x1x32xf32, #tpu.memory_space<vmem>>, %arg8: memref<2x1x32xf32, #tpu.memory_space<vmem>>, %arg9: memref<8x32x8xbf16, #tpu.memory_space<vmem>>, %arg10: memref<8x1x8xf32, #tpu.memory_space<vmem>>, %arg11: memref<8x32x8xbf16, #tpu.memory_space<vmem>>, %arg12: memref<8x1x8xf32, #tpu.memory_space<vmem>>, %arg13: memref<8x32x8xbf16, #tpu.memory_space<vmem>>, %arg14: memref<8x1x8xf32, #tpu.memory_space<vmem>>, %arg15: memref<8x8x32xbf16, #tpu.memory_space<vmem>>, %arg16: memref<2x1x32xf32, #tpu.memory_space<vmem>>, %arg17: memref<2x1x32xf32, #tpu.memory_space<vmem>>, %arg18: memref<2x1x32xf32, #tpu.memory_space<vmem>>, %arg19: memref<2x32x128xbf16, #tpu.memory_space<vmem>>, %arg20: memref<2x1x128xf32, #tpu.memory_space<vmem>>, %arg21: memref<2x128x32xbf16, #tpu.memory_space<vmem>>, %arg22: memref<2x1x32xf32, #tpu.memory_space<vmem>>, %arg23: memref<1x32xf32, #tpu.memory_space<vmem>>, %arg24: memref<1x32xf32, #tpu.memory_space<vmem>>, %arg25: memref<32x128xbf16, #tpu.memory_space<vmem>>, %arg26: memref<2x16x128xf32, #tpu.memory_space<vmem>>, %arg27: memref<32x32xf32, #tpu.memory_space<vmem>>) attributes {dimension_semantics = [#tpu.dimension_semantics<parallel>], iteration_bounds = array<i64: 2>, scalar_prefetch = 0 : i64, scratch_operands = 1 : i64, tpu.core_type = #tpu.core_type<tc>, window_params = [{transform_indices = @transform_0, window_bounds = array<i64: 2, 1, 64>}, {transform_indices = @transform_1, window_bounds = array<i64: 2, 12, 32>}, {pipeline_mode = #tpu.pipeline_mode<synchronous>, transform_indices = @transform_2, window_bounds = array<i64: 64, 64>}, {pipeline_mode = #tpu.pipeline_mode<synchronous>, transform_indices = @transform_3, window_bounds = array<i64: 1, 64>}, {pipeline_mode = #tpu.pipeline_mode<synchronous>, transform_indices = @transform_4, window_bounds = array<i64: 4, 64, 32>}, {pipeline_mode = #tpu.pipeline_mode<synchronous>, transform_indices = @transform_5, window_bounds = array<i64: 4, 1, 32>}, {pipeline_mode = #tpu.pipeline_mode<synchronous>, transform_indices = @transform_6, window_bounds = array<i64: 2, 1, 32>}, {pipeline_mode = #tpu.pipeline_mode<synchronous>, transform_indices = @transform_7, window_bounds = array<i64: 2, 1, 32>}, {pipeline_mode = #tpu.pipeline_mode<synchronous>, transform_indices = @transform_8, window_bounds = array<i64: 8, 32, 8>}, {pipeline_mode = #tpu.pipeline_mode<synchronous>, transform_indices = @transform_9, window_bounds = array<i64: 8, 1, 8>}, {pipeline_mode = #tpu.pipeline_mode<synchronous>, transform_indices = @transform_10, window_bounds = array<i64: 8, 32, 8>}, {pipeline_mode = #tpu.pipeline_mode<synchronous>, transform_indices = @transform_11, window_bounds = array<i64: 8, 1, 8>}, {pipeline_mode = #tpu.pipeline_mode<synchronous>, transform_indices = @transform_12, window_bounds = array<i64: 8, 32, 8>}, {pipeline_mode = #tpu.pipeline_mode<synchronous>, transform_indices = @transform_13, window_bounds = array<i64: 8, 1, 8>}, {pipeline_mode = #tpu.pipeline_mode<synchronous>, transform_indices = @transform_14, window_bounds = array<i64: 8, 8, 32>}, {pipeline_mode = #tpu.pipeline_mode<synchronous>, transform_indices = @transform_15, window_bounds = array<i64: 2, 1, 32>}, {pipeline_mode = #tpu.pipeline_mode<synchronous>, transform_indices = @transform_16, window_bounds = array<i64: 2, 1, 32>}, {pipeline_mode = #tpu.pipeline_mode<synchronous>, transform_indices = @transform_17, window_bounds = array<i64: 2, 1, 32>}, {pipeline_mode = #tpu.pipeline_mode<synchronous>, transform_indices = @transform_18, window_bounds = array<i64: 2, 32, 128>}, {pipeline_mode = #tpu.pipeline_mode<synchronous>, transform_indices = @transform_19, window_bounds = array<i64: 2, 1, 128>}, {pipeline_mode = #tpu.pipeline_mode<synchronous>, transform_indices = @transform_20, window_bounds = array<i64: 2, 128, 32>}, {pipeline_mode = #tpu.pipeline_mode<synchronous>, transform_indices = @transform_21, window_bounds = array<i64: 2, 1, 32>}, {pipeline_mode = #tpu.pipeline_mode<synchronous>, transform_indices = @transform_22, window_bounds = array<i64: 1, 32>}, {pipeline_mode = #tpu.pipeline_mode<synchronous>, transform_indices = @transform_23, window_bounds = array<i64: 1, 32>}, {pipeline_mode = #tpu.pipeline_mode<synchronous>, transform_indices = @transform_24, window_bounds = array<i64: 32, 128>}, {transform_indices = @transform_25, window_bounds = array<i64: 2, 16, 128>}]} {
    %c0 = arith.constant 0 : index
    %c0_0 = arith.constant 0 : index
    %c0_1 = arith.constant 0 : index
    %0 = vector.load %arg1[%c0, %c0_0, %c0_1] : memref<2x1x64xf32, #tpu.memory_space<vmem>>, vector<2x1x64xf32>
    %1 = vector.shape_cast %0 : vector<2x1x64xf32> to vector<2x64xf32>
    %2 = arith.truncf %1 : vector<2x64xf32> to vector<2x64xbf16>
    %c0_2 = arith.constant 0 : index
    %c0_3 = arith.constant 0 : index
    %3 = vector.load %arg3[%c0_2, %c0_3] : memref<64x64xbf16, #tpu.memory_space<vmem>>, vector<64x64xbf16>
    %cst = arith.constant dense<0.000000e+00> : vector<2x64xf32>
    %4 = tpu.matmul %2, %3, %cst {dimension_numbers = #tpu.dot_dimension_numbers<[1], [0], [0], [1], [0, 0, 1, 1], [], []>} : vector<2x64xbf16>, vector<64x64xbf16>, vector<2x64xf32> -> vector<2x64xf32>
    %c0_4 = arith.constant 0 : index
    %c0_5 = arith.constant 0 : index
    %5 = vector.load %arg4[%c0_4, %c0_5] : memref<1x64xf32, #tpu.memory_space<vmem>>, vector<1x64xf32>
    %6 = vector.broadcast %5 : vector<1x64xf32> to vector<2x64xf32>
    %7 = arith.addf %4, %6 : vector<2x64xf32>
    %8 = math.tanh %7 : vector<2x64xf32>
    %9 = arith.truncf %8 : vector<2x64xf32> to vector<2x64xbf16>
    %c0_6 = arith.constant 0 : index
    %c0_7 = arith.constant 0 : index
    %c0_8 = arith.constant 0 : index
    %10 = vector.load %arg5[%c0_6, %c0_7, %c0_8] : memref<4x64x32xbf16, #tpu.memory_space<vmem>>, vector<1x64x32xbf16>
    %11 = vector.shape_cast %10 : vector<1x64x32xbf16> to vector<64x32xbf16>
    %cst_9 = arith.constant dense<0.000000e+00> : vector<2x32xf32>
    %12 = tpu.matmul %9, %11, %cst_9 {dimension_numbers = #tpu.dot_dimension_numbers<[1], [0], [0], [1], [0, 0, 1, 1], [], []>} : vector<2x64xbf16>, vector<64x32xbf16>, vector<2x32xf32> -> vector<2x32xf32>
    %c0_10 = arith.constant 0 : index
    %c0_11 = arith.constant 0 : index
    %c0_12 = arith.constant 0 : index
    %13 = vector.load %arg6[%c0_10, %c0_11, %c0_12] : memref<4x1x32xf32, #tpu.memory_space<vmem>>, vector<1x1x32xf32>
    %14 = vector.shape_cast %13 : vector<1x1x32xf32> to vector<1x32xf32>
    %15 = vector.broadcast %14 : vector<1x32xf32> to vector<2x32xf32>
    %16 = arith.addf %12, %15 : vector<2x32xf32>
    %17 = vector.extract_strided_slice %16 {offsets = [0, 0], sizes = [1, 32], strides = [1, 1]} : vector<2x32xf32> to vector<1x32xf32>
    %c0_13 = arith.constant 0 : index
    %c0_14 = arith.constant 0 : index
    %18 = vector.load %arg27[%c0_13, %c0_14] : memref<32x32xf32, #tpu.memory_space<vmem>>, vector<1x32xf32>
    tpu.vector_store %arg27[%c0_13, %c0_14], %17 {strides = array<i32>} : memref<32x32xf32, #tpu.memory_space<vmem>>, vector<1x32xf32>,
    %19 = vector.extract_strided_slice %16 {offsets = [1, 0], sizes = [1, 32], strides = [1, 1]} : vector<2x32xf32> to vector<1x32xf32>
    %c16 = arith.constant 16 : index
    %c0_15 = arith.constant 0 : index
    %20 = vector.load %arg27[%c16, %c0_15] : memref<32x32xf32, #tpu.memory_space<vmem>>, vector<1x32xf32>
    tpu.vector_store %arg27[%c16, %c0_15], %19 {strides = array<i32>} : memref<32x32xf32, #tpu.memory_space<vmem>>, vector<1x32xf32>,
    %c1 = arith.constant 1 : index
    %c0_16 = arith.constant 0 : index
    %c0_17 = arith.constant 0 : index
    %21 = vector.load %arg5[%c1, %c0_16, %c0_17] : memref<4x64x32xbf16, #tpu.memory_space<vmem>>, vector<1x64x32xbf16>
    %22 = vector.shape_cast %21 : vector<1x64x32xbf16> to vector<64x32xbf16>
    %cst_18 = arith.constant dense<0.000000e+00> : vector<2x32xf32>
    %23 = tpu.matmul %9, %22, %cst_18 {dimension_numbers = #tpu.dot_dimension_numbers<[1], [0], [0], [1], [0, 0, 1, 1], [], []>} : vector<2x64xbf16>, vector<64x32xbf16>, vector<2x32xf32> -> vector<2x32xf32>
    %c1_19 = arith.constant 1 : index
    %c0_20 = arith.constant 0 : index
    %c0_21 = arith.constant 0 : index
    %24 = vector.load %arg6[%c1_19, %c0_20, %c0_21] : memref<4x1x32xf32, #tpu.memory_space<vmem>>, vector<1x1x32xf32>
    %25 = vector.shape_cast %24 : vector<1x1x32xf32> to vector<1x32xf32>
    %26 = vector.broadcast %25 : vector<1x32xf32> to vector<2x32xf32>
    %27 = arith.addf %23, %26 : vector<2x32xf32>
    %28 = vector.extract_strided_slice %27 {offsets = [0, 0], sizes = [1, 32], strides = [1, 1]} : vector<2x32xf32> to vector<1x32xf32>
    %c1_22 = arith.constant 1 : index
    %c0_23 = arith.constant 0 : index
    %29 = vector.load %arg27[%c1_22, %c0_23] : memref<32x32xf32, #tpu.memory_space<vmem>>, vector<1x32xf32>
    tpu.vector_store %arg27[%c1_22, %c0_23], %28 {strides = array<i32>} : memref<32x32xf32, #tpu.memory_space<vmem>>, vector<1x32xf32>,
    %30 = vector.extract_strided_slice %27 {offsets = [1, 0], sizes = [1, 32], strides = [1, 1]} : vector<2x32xf32> to vector<1x32xf32>
    %c17 = arith.constant 17 : index
    %c0_24 = arith.constant 0 : index
    %31 = vector.load %arg27[%c17, %c0_24] : memref<32x32xf32, #tpu.memory_space<vmem>>, vector<1x32xf32>
    tpu.vector_store %arg27[%c17, %c0_24], %30 {strides = array<i32>} : memref<32x32xf32, #tpu.memory_space<vmem>>, vector<1x32xf32>,
    %c2 = arith.constant 2 : index
    %c0_25 = arith.constant 0 : index
    %c0_26 = arith.constant 0 : index
    %32 = vector.load %arg5[%c2, %c0_25, %c0_26] : memref<4x64x32xbf16, #tpu.memory_space<vmem>>, vector<1x64x32xbf16>
    %33 = vector.shape_cast %32 : vector<1x64x32xbf16> to vector<64x32xbf16>
    %cst_27 = arith.constant dense<0.000000e+00> : vector<2x32xf32>
    %34 = tpu.matmul %9, %33, %cst_27 {dimension_numbers = #tpu.dot_dimension_numbers<[1], [0], [0], [1], [0, 0, 1, 1], [], []>} : vector<2x64xbf16>, vector<64x32xbf16>, vector<2x32xf32> -> vector<2x32xf32>
    %c2_28 = arith.constant 2 : index
    %c0_29 = arith.constant 0 : index
    %c0_30 = arith.constant 0 : index
    %35 = vector.load %arg6[%c2_28, %c0_29, %c0_30] : memref<4x1x32xf32, #tpu.memory_space<vmem>>, vector<1x1x32xf32>
    %36 = vector.shape_cast %35 : vector<1x1x32xf32> to vector<1x32xf32>
    %37 = vector.broadcast %36 : vector<1x32xf32> to vector<2x32xf32>
    %38 = arith.addf %34, %37 : vector<2x32xf32>
    %39 = vector.extract_strided_slice %38 {offsets = [0, 0], sizes = [1, 32], strides = [1, 1]} : vector<2x32xf32> to vector<1x32xf32>
    %c2_31 = arith.constant 2 : index
    %c0_32 = arith.constant 0 : index
    %40 = vector.load %arg27[%c2_31, %c0_32] : memref<32x32xf32, #tpu.memory_space<vmem>>, vector<1x32xf32>
    tpu.vector_store %arg27[%c2_31, %c0_32], %39 {strides = array<i32>} : memref<32x32xf32, #tpu.memory_space<vmem>>, vector<1x32xf32>,
    %41 = vector.extract_strided_slice %38 {offsets = [1, 0], sizes = [1, 32], strides = [1, 1]} : vector<2x32xf32> to vector<1x32xf32>
    %c18 = arith.constant 18 : index
    %c0_33 = arith.constant 0 : index
    %42 = vector.load %arg27[%c18, %c0_33] : memref<32x32xf32, #tpu.memory_space<vmem>>, vector<1x32xf32>
    tpu.vector_store %arg27[%c18, %c0_33], %41 {strides = array<i32>} : memref<32x32xf32, #tpu.memory_space<vmem>>, vector<1x32xf32>,
    %c3 = arith.constant 3 : index
    %c0_34 = arith.constant 0 : index
    %c0_35 = arith.constant 0 : index
    %43 = vector.load %arg5[%c3, %c0_34, %c0_35] : memref<4x64x32xbf16, #tpu.memory_space<vmem>>, vector<1x64x32xbf16>
    %44 = vector.shape_cast %43 : vector<1x64x32xbf16> to vector<64x32xbf16>
    %cst_36 = arith.constant dense<0.000000e+00> : vector<2x32xf32>
    %45 = tpu.matmul %9, %44, %cst_36 {dimension_numbers = #tpu.dot_dimension_numbers<[1], [0], [0], [1], [0, 0, 1, 1], [], []>} : vector<2x64xbf16>, vector<64x32xbf16>, vector<2x32xf32> -> vector<2x32xf32>
    %c3_37 = arith.constant 3 : index
    %c0_38 = arith.constant 0 : index
    %c0_39 = arith.constant 0 : index
    %46 = vector.load %arg6[%c3_37, %c0_38, %c0_39] : memref<4x1x32xf32, #tpu.memory_space<vmem>>, vector<1x1x32xf32>
    %47 = vector.shape_cast %46 : vector<1x1x32xf32> to vector<1x32xf32>
    %48 = vector.broadcast %47 : vector<1x32xf32> to vector<2x32xf32>
    %49 = arith.addf %45, %48 : vector<2x32xf32>
    %50 = vector.extract_strided_slice %49 {offsets = [0, 0], sizes = [1, 32], strides = [1, 1]} : vector<2x32xf32> to vector<1x32xf32>
    %c3_40 = arith.constant 3 : index
    %c0_41 = arith.constant 0 : index
    %51 = vector.load %arg27[%c3_40, %c0_41] : memref<32x32xf32, #tpu.memory_space<vmem>>, vector<1x32xf32>
    tpu.vector_store %arg27[%c3_40, %c0_41], %50 {strides = array<i32>} : memref<32x32xf32, #tpu.memory_space<vmem>>, vector<1x32xf32>,
    %52 = vector.extract_strided_slice %49 {offsets = [1, 0], sizes = [1, 32], strides = [1, 1]} : vector<2x32xf32> to vector<1x32xf32>
    %c19 = arith.constant 19 : index
    %c0_42 = arith.constant 0 : index
    %53 = vector.load %arg27[%c19, %c0_42] : memref<32x32xf32, #tpu.memory_space<vmem>>, vector<1x32xf32>
    tpu.vector_store %arg27[%c19, %c0_42], %52 {strides = array<i32>} : memref<32x32xf32, #tpu.memory_space<vmem>>, vector<1x32xf32>,
    %c0_43 = arith.constant 0 : index
    %c0_44 = arith.constant 0 : index
    %c0_45 = arith.constant 0 : index
    %54 = vector.load %arg2[%c0_43, %c0_44, %c0_45] : memref<2x12x32xf32, #tpu.memory_space<vmem>>, vector<1x12x32xf32>
    %55 = vector.shape_cast %54 : vector<1x12x32xf32> to vector<12x32xf32>
    %c4 = arith.constant 4 : index
    %c0_46 = arith.constant 0 : index
    %56 = vector.load %arg27[%c4, %c0_46] : memref<32x32xf32, #tpu.memory_space<vmem>>, vector<12x32xf32>
    tpu.vector_store %arg27[%c4, %c0_46], %55 {strides = array<i32>} : memref<32x32xf32, #tpu.memory_space<vmem>>, vector<12x32xf32>,
    %c1_47 = arith.constant 1 : index
    %c0_48 = arith.constant 0 : index
    %c0_49 = arith.constant 0 : index
    %57 = vector.load %arg2[%c1_47, %c0_48, %c0_49] : memref<2x12x32xf32, #tpu.memory_space<vmem>>, vector<1x12x32xf32>
    %58 = vector.shape_cast %57 : vector<1x12x32xf32> to vector<12x32xf32>
    %c20 = arith.constant 20 : index
    %c0_50 = arith.constant 0 : index
    %59 = vector.load %arg27[%c20, %c0_50] : memref<32x32xf32, #tpu.memory_space<vmem>>, vector<12x32xf32>
    tpu.vector_store %arg27[%c20, %c0_50], %58 {strides = array<i32>} : memref<32x32xf32, #tpu.memory_space<vmem>>, vector<12x32xf32>,
    %c0_51 = arith.constant 0 : index
    %c0_52 = arith.constant 0 : index
    %60 = vector.load %arg27[%c0_51, %c0_52] : memref<32x32xf32, #tpu.memory_space<vmem>>, vector<32x32xf32>
    %61 = tpu.iota {dimensions = array<i32: 0>} : vector<16x16xi32>
    %62 = tpu.iota {dimensions = array<i32: 1>} : vector<16x16xi32>
    %63 = arith.cmpi sle, %62, %61 : vector<16x16xi32>
    %c0_53 = arith.constant 0 : index
    %c0_54 = arith.constant 0 : index
    %c0_55 = arith.constant 0 : index
    %64 = vector.load %arg7[%c0_53, %c0_54, %c0_55] : memref<2x1x32xf32, #tpu.memory_space<vmem>>, vector<1x1x32xf32>
    %65 = vector.shape_cast %64 : vector<1x1x32xf32> to vector<1x32xf32>
    %c0_56 = arith.constant 0 : index
    %c0_57 = arith.constant 0 : index
    %c0_58 = arith.constant 0 : index
    %66 = vector.load %arg8[%c0_56, %c0_57, %c0_58] : memref<2x1x32xf32, #tpu.memory_space<vmem>>, vector<1x1x32xf32>
    %67 = vector.shape_cast %66 : vector<1x1x32xf32> to vector<1x32xf32>
    %cst_59 = arith.constant dense<0.000000e+00> : vector<32xf32>
    %68 = vector.multi_reduction <add>, %60, %cst_59 [1] : vector<32x32xf32> to vector<32xf32>
    %69 = vector.shape_cast %68 : vector<32xf32> to vector<32x1xf32>
    %cst_60 = arith.constant 3.200000e+01 : f32
    %70 = vector.broadcast %cst_60 : f32 to vector<32x1xf32>
    %71 = arith.divf %69, %70 : vector<32x1xf32>
    %72 = vector.broadcast %71 : vector<32x1xf32> to vector<32x32xf32>
    %73 = arith.subf %60, %72 : vector<32x32xf32>
    %74 = arith.mulf %73, %73 : vector<32x32xf32>
    %cst_61 = arith.constant dense<0.000000e+00> : vector<32xf32>
    %75 = vector.multi_reduction <add>, %74, %cst_61 [1] : vector<32x32xf32> to vector<32xf32>
    %76 = vector.shape_cast %75 : vector<32xf32> to vector<32x1xf32>
    %cst_62 = arith.constant 3.200000e+01 : f32
    %77 = vector.broadcast %cst_62 : f32 to vector<32x1xf32>
    %78 = arith.divf %76, %77 : vector<32x1xf32>
    %79 = vector.broadcast %71 : vector<32x1xf32> to vector<32x32xf32>
    %80 = arith.subf %60, %79 : vector<32x32xf32>
    %cst_63 = arith.constant 9.99999974E-6 : f32
    %81 = vector.broadcast %cst_63 : f32 to vector<32x1xf32>
    %82 = arith.addf %78, %81 : vector<32x1xf32>
    %83 = math.rsqrt %82 : vector<32x1xf32>
    %84 = vector.broadcast %83 : vector<32x1xf32> to vector<32x32xf32>
    %85 = arith.mulf %80, %84 : vector<32x32xf32>
    %86 = vector.broadcast %65 : vector<1x32xf32> to vector<32x32xf32>
    %87 = arith.mulf %85, %86 : vector<32x32xf32>
    %88 = vector.broadcast %67 : vector<1x32xf32> to vector<32x32xf32>
    %89 = arith.addf %87, %88 : vector<32x32xf32>
    %90 = arith.truncf %89 : vector<32x32xf32> to vector<32x32xbf16>
    %cst_64 = arith.constant 0.000000e+00 : f32
    %91 = vector.broadcast %cst_64 : f32 to vector<32x32xf32>
    %c0_65 = arith.constant 0 : index
    %c0_66 = arith.constant 0 : index
    %c0_67 = arith.constant 0 : index
    %92 = vector.load %arg9[%c0_65, %c0_66, %c0_67] : memref<8x32x8xbf16, #tpu.memory_space<vmem>>, vector<1x32x8xbf16>
    %93 = vector.shape_cast %92 : vector<1x32x8xbf16> to vector<32x8xbf16>
    %cst_68 = arith.constant dense<0.000000e+00> : vector<32x8xf32>
    %94 = tpu.matmul %90, %93, %cst_68 {dimension_numbers = #tpu.dot_dimension_numbers<[1], [0], [0], [1], [0, 0, 1, 1], [], []>} : vector<32x32xbf16>, vector<32x8xbf16>, vector<32x8xf32> -> vector<32x8xf32>
    %c0_69 = arith.constant 0 : index
    %c0_70 = arith.constant 0 : index
    %c0_71 = arith.constant 0 : index
    %95 = vector.load %arg10[%c0_69, %c0_70, %c0_71] : memref<8x1x8xf32, #tpu.memory_space<vmem>>, vector<1x1x8xf32>
    %96 = vector.shape_cast %95 : vector<1x1x8xf32> to vector<1x8xf32>
    %97 = vector.broadcast %96 : vector<1x8xf32> to vector<32x8xf32>
    %98 = arith.addf %94, %97 : vector<32x8xf32>
    %99 = arith.truncf %98 : vector<32x8xf32> to vector<32x8xbf16>
    %c0_72 = arith.constant 0 : index
    %c0_73 = arith.constant 0 : index
    %c0_74 = arith.constant 0 : index
    %100 = vector.load %arg11[%c0_72, %c0_73, %c0_74] : memref<8x32x8xbf16, #tpu.memory_space<vmem>>, vector<1x32x8xbf16>
    %101 = vector.shape_cast %100 : vector<1x32x8xbf16> to vector<32x8xbf16>
    %cst_75 = arith.constant dense<0.000000e+00> : vector<32x8xf32>
    %102 = tpu.matmul %90, %101, %cst_75 {dimension_numbers = #tpu.dot_dimension_numbers<[1], [0], [0], [1], [0, 0, 1, 1], [], []>} : vector<32x32xbf16>, vector<32x8xbf16>, vector<32x8xf32> -> vector<32x8xf32>
    %c0_76 = arith.constant 0 : index
    %c0_77 = arith.constant 0 : index
    %c0_78 = arith.constant 0 : index
    %103 = vector.load %arg12[%c0_76, %c0_77, %c0_78] : memref<8x1x8xf32, #tpu.memory_space<vmem>>, vector<1x1x8xf32>
    %104 = vector.shape_cast %103 : vector<1x1x8xf32> to vector<1x8xf32>
    %105 = vector.broadcast %104 : vector<1x8xf32> to vector<32x8xf32>
    %106 = arith.addf %102, %105 : vector<32x8xf32>
    %107 = arith.truncf %106 : vector<32x8xf32> to vector<32x8xbf16>
    %c0_79 = arith.constant 0 : index
    %c0_80 = arith.constant 0 : index
    %c0_81 = arith.constant 0 : index
    %108 = vector.load %arg13[%c0_79, %c0_80, %c0_81] : memref<8x32x8xbf16, #tpu.memory_space<vmem>>, vector<1x32x8xbf16>
    %109 = vector.shape_cast %108 : vector<1x32x8xbf16> to vector<32x8xbf16>
    %cst_82 = arith.constant dense<0.000000e+00> : vector<32x8xf32>
    %110 = tpu.matmul %90, %109, %cst_82 {dimension_numbers = #tpu.dot_dimension_numbers<[1], [0], [0], [1], [0, 0, 1, 1], [], []>} : vector<32x32xbf16>, vector<32x8xbf16>, vector<32x8xf32> -> vector<32x8xf32>
    %c0_83 = arith.constant 0 : index
    %c0_84 = arith.constant 0 : index
    %c0_85 = arith.constant 0 : index
    %111 = vector.load %arg14[%c0_83, %c0_84, %c0_85] : memref<8x1x8xf32, #tpu.memory_space<vmem>>, vector<1x1x8xf32>
    %112 = vector.shape_cast %111 : vector<1x1x8xf32> to vector<1x8xf32>
    %113 = vector.broadcast %112 : vector<1x8xf32> to vector<32x8xf32>
    %114 = arith.addf %110, %113 : vector<32x8xf32>
    %115 = arith.truncf %114 : vector<32x8xf32> to vector<32x8xbf16>
    %116 = vector.extract_strided_slice %99 {offsets = [0, 0], sizes = [16, 8], strides = [1, 1]} : vector<32x8xbf16> to vector<16x8xbf16>
    %117 = vector.extract_strided_slice %107 {offsets = [0, 0], sizes = [16, 8], strides = [1, 1]} : vector<32x8xbf16> to vector<16x8xbf16>
    %cst_86 = arith.constant dense<0.000000e+00> : vector<16x16xf32>
    %118 = tpu.matmul %116, %117, %cst_86 {dimension_numbers = #tpu.dot_dimension_numbers<[1], [1], [0], [0], [0, 0, 1, 0], [], []>} : vector<16x8xbf16>, vector<16x8xbf16>, vector<16x16xf32> -> vector<16x16xf32>
    %cst_87 = arith.constant 0.353553385 : f32
    %119 = vector.broadcast %cst_87 : f32 to vector<16x16xf32>
    %120 = arith.mulf %118, %119 : vector<16x16xf32>
    %cst_88 = arith.constant -1.000000e+30 : f32
    %121 = vector.broadcast %cst_88 : f32 to vector<16x16xf32>
    %122 = arith.select %63, %120, %121 : vector<16x16xi1>, vector<16x16xf32>
    %cst_89 = arith.constant dense<0xFF800000> : vector<16xf32>
    %123 = vector.multi_reduction <maximumf>, %122, %cst_89 [1] : vector<16x16xf32> to vector<16xf32>
    %124 = vector.shape_cast %123 : vector<16xf32> to vector<16x1xf32>
    %125 = vector.broadcast %124 : vector<16x1xf32> to vector<16x16xf32>
    %126 = arith.subf %122, %125 : vector<16x16xf32>
    %127 = math.exp %126 : vector<16x16xf32>
    %cst_90 = arith.constant dense<0.000000e+00> : vector<16xf32>
    %128 = vector.multi_reduction <add>, %127, %cst_90 [1] : vector<16x16xf32> to vector<16xf32>
    %129 = vector.shape_cast %128 : vector<16xf32> to vector<16x1xf32>
    %130 = tpu.reciprocal %129 {approx = true} : vector<16x1xf32> -> vector<16x1xf32>
    %131 = vector.broadcast %130 : vector<16x1xf32> to vector<16x16xf32>
    %132 = arith.mulf %127, %131 : vector<16x16xf32>
    %133 = arith.truncf %132 : vector<16x16xf32> to vector<16x16xbf16>
    %134 = vector.extract_strided_slice %115 {offsets = [0, 0], sizes = [16, 8], strides = [1, 1]} : vector<32x8xbf16> to vector<16x8xbf16>
    %cst_91 = arith.constant dense<0.000000e+00> : vector<16x8xf32>
    %135 = tpu.matmul %133, %134, %cst_91 {dimension_numbers = #tpu.dot_dimension_numbers<[1], [0], [0], [1], [0, 0, 1, 1], [], []>} : vector<16x16xbf16>, vector<16x8xbf16>, vector<16x8xf32> -> vector<16x8xf32>
    %136 = vector.extract_strided_slice %99 {offsets = [16, 0], sizes = [16, 8], strides = [1, 1]} : vector<32x8xbf16> to vector<16x8xbf16>
    %137 = vector.extract_strided_slice %107 {offsets = [16, 0], sizes = [16, 8], strides = [1, 1]} : vector<32x8xbf16> to vector<16x8xbf16>
    %cst_92 = arith.constant dense<0.000000e+00> : vector<16x16xf32>
    %138 = tpu.matmul %136, %137, %cst_92 {dimension_numbers = #tpu.dot_dimension_numbers<[1], [1], [0], [0], [0, 0, 1, 0], [], []>} : vector<16x8xbf16>, vector<16x8xbf16>, vector<16x16xf32> -> vector<16x16xf32>
    %cst_93 = arith.constant 0.353553385 : f32
    %139 = vector.broadcast %cst_93 : f32 to vector<16x16xf32>
    %140 = arith.mulf %138, %139 : vector<16x16xf32>
    %cst_94 = arith.constant -1.000000e+30 : f32
    %141 = vector.broadcast %cst_94 : f32 to vector<16x16xf32>
    %142 = arith.select %63, %140, %141 : vector<16x16xi1>, vector<16x16xf32>
    %cst_95 = arith.constant dense<0xFF800000> : vector<16xf32>
    %143 = vector.multi_reduction <maximumf>, %142, %cst_95 [1] : vector<16x16xf32> to vector<16xf32>
    %144 = vector.shape_cast %143 : vector<16xf32> to vector<16x1xf32>
    %145 = vector.broadcast %144 : vector<16x1xf32> to vector<16x16xf32>
    %146 = arith.subf %142, %145 : vector<16x16xf32>
    %147 = math.exp %146 : vector<16x16xf32>
    %cst_96 = arith.constant dense<0.000000e+00> : vector<16xf32>
    %148 = vector.multi_reduction <add>, %147, %cst_96 [1] : vector<16x16xf32> to vector<16xf32>
    %149 = vector.shape_cast %148 : vector<16xf32> to vector<16x1xf32>
    %150 = tpu.reciprocal %149 {approx = true} : vector<16x1xf32> -> vector<16x1xf32>
    %151 = vector.broadcast %150 : vector<16x1xf32> to vector<16x16xf32>
    %152 = arith.mulf %147, %151 : vector<16x16xf32>
    %153 = arith.truncf %152 : vector<16x16xf32> to vector<16x16xbf16>
    %154 = vector.extract_strided_slice %115 {offsets = [16, 0], sizes = [16, 8], strides = [1, 1]} : vector<32x8xbf16> to vector<16x8xbf16>
    %cst_97 = arith.constant dense<0.000000e+00> : vector<16x8xf32>
    %155 = tpu.matmul %153, %154, %cst_97 {dimension_numbers = #tpu.dot_dimension_numbers<[1], [0], [0], [1], [0, 0, 1, 1], [], []>} : vector<16x16xbf16>, vector<16x8xbf16>, vector<16x8xf32> -> vector<16x8xf32>
    %156 = tpu.concatenate %135, %155 in 0 : vector<16x8xf32>, vector<16x8xf32> -> vector<32x8xf32>
    %157 = arith.truncf %156 : vector<32x8xf32> to vector<32x8xbf16>
    %c0_98 = arith.constant 0 : index
    %c0_99 = arith.constant 0 : index
    %c0_100 = arith.constant 0 : index
    %158 = vector.load %arg15[%c0_98, %c0_99, %c0_100] : memref<8x8x32xbf16, #tpu.memory_space<vmem>>, vector<1x8x32xbf16>
    %159 = vector.shape_cast %158 : vector<1x8x32xbf16> to vector<8x32xbf16>
    %cst_101 = arith.constant dense<0.000000e+00> : vector<32x32xf32>
    %160 = tpu.matmul %157, %159, %cst_101 {dimension_numbers = #tpu.dot_dimension_numbers<[1], [0], [0], [1], [0, 0, 1, 1], [], []>} : vector<32x8xbf16>, vector<8x32xbf16>, vector<32x32xf32> -> vector<32x32xf32>
    %161 = arith.addf %91, %160 : vector<32x32xf32>
    %c1_102 = arith.constant 1 : index
    %c0_103 = arith.constant 0 : index
    %c0_104 = arith.constant 0 : index
    %162 = vector.load %arg9[%c1_102, %c0_103, %c0_104] : memref<8x32x8xbf16, #tpu.memory_space<vmem>>, vector<1x32x8xbf16>
    %163 = vector.shape_cast %162 : vector<1x32x8xbf16> to vector<32x8xbf16>
    %cst_105 = arith.constant dense<0.000000e+00> : vector<32x8xf32>
    %164 = tpu.matmul %90, %163, %cst_105 {dimension_numbers = #tpu.dot_dimension_numbers<[1], [0], [0], [1], [0, 0, 1, 1], [], []>} : vector<32x32xbf16>, vector<32x8xbf16>, vector<32x8xf32> -> vector<32x8xf32>
    %c1_106 = arith.constant 1 : index
    %c0_107 = arith.constant 0 : index
    %c0_108 = arith.constant 0 : index
    %165 = vector.load %arg10[%c1_106, %c0_107, %c0_108] : memref<8x1x8xf32, #tpu.memory_space<vmem>>, vector<1x1x8xf32>
    %166 = vector.shape_cast %165 : vector<1x1x8xf32> to vector<1x8xf32>
    %167 = vector.broadcast %166 : vector<1x8xf32> to vector<32x8xf32>
    %168 = arith.addf %164, %167 : vector<32x8xf32>
    %169 = arith.truncf %168 : vector<32x8xf32> to vector<32x8xbf16>
    %c1_109 = arith.constant 1 : index
    %c0_110 = arith.constant 0 : index
    %c0_111 = arith.constant 0 : index
    %170 = vector.load %arg11[%c1_109, %c0_110, %c0_111] : memref<8x32x8xbf16, #tpu.memory_space<vmem>>, vector<1x32x8xbf16>
    %171 = vector.shape_cast %170 : vector<1x32x8xbf16> to vector<32x8xbf16>
    %cst_112 = arith.constant dense<0.000000e+00> : vector<32x8xf32>
    %172 = tpu.matmul %90, %171, %cst_112 {dimension_numbers = #tpu.dot_dimension_numbers<[1], [0], [0], [1], [0, 0, 1, 1], [], []>} : vector<32x32xbf16>, vector<32x8xbf16>, vector<32x8xf32> -> vector<32x8xf32>
    %c1_113 = arith.constant 1 : index
    %c0_114 = arith.constant 0 : index
    %c0_115 = arith.constant 0 : index
    %173 = vector.load %arg12[%c1_113, %c0_114, %c0_115] : memref<8x1x8xf32, #tpu.memory_space<vmem>>, vector<1x1x8xf32>
    %174 = vector.shape_cast %173 : vector<1x1x8xf32> to vector<1x8xf32>
    %175 = vector.broadcast %174 : vector<1x8xf32> to vector<32x8xf32>
    %176 = arith.addf %172, %175 : vector<32x8xf32>
    %177 = arith.truncf %176 : vector<32x8xf32> to vector<32x8xbf16>
    %c1_116 = arith.constant 1 : index
    %c0_117 = arith.constant 0 : index
    %c0_118 = arith.constant 0 : index
    %178 = vector.load %arg13[%c1_116, %c0_117, %c0_118] : memref<8x32x8xbf16, #tpu.memory_space<vmem>>, vector<1x32x8xbf16>
    %179 = vector.shape_cast %178 : vector<1x32x8xbf16> to vector<32x8xbf16>
    %cst_119 = arith.constant dense<0.000000e+00> : vector<32x8xf32>
    %180 = tpu.matmul %90, %179, %cst_119 {dimension_numbers = #tpu.dot_dimension_numbers<[1], [0], [0], [1], [0, 0, 1, 1], [], []>} : vector<32x32xbf16>, vector<32x8xbf16>, vector<32x8xf32> -> vector<32x8xf32>
    %c1_120 = arith.constant 1 : index
    %c0_121 = arith.constant 0 : index
    %c0_122 = arith.constant 0 : index
    %181 = vector.load %arg14[%c1_120, %c0_121, %c0_122] : memref<8x1x8xf32, #tpu.memory_space<vmem>>, vector<1x1x8xf32>
    %182 = vector.shape_cast %181 : vector<1x1x8xf32> to vector<1x8xf32>
    %183 = vector.broadcast %182 : vector<1x8xf32> to vector<32x8xf32>
    %184 = arith.addf %180, %183 : vector<32x8xf32>
    %185 = arith.truncf %184 : vector<32x8xf32> to vector<32x8xbf16>
    %186 = vector.extract_strided_slice %169 {offsets = [0, 0], sizes = [16, 8], strides = [1, 1]} : vector<32x8xbf16> to vector<16x8xbf16>
    %187 = vector.extract_strided_slice %177 {offsets = [0, 0], sizes = [16, 8], strides = [1, 1]} : vector<32x8xbf16> to vector<16x8xbf16>
    %cst_123 = arith.constant dense<0.000000e+00> : vector<16x16xf32>
    %188 = tpu.matmul %186, %187, %cst_123 {dimension_numbers = #tpu.dot_dimension_numbers<[1], [1], [0], [0], [0, 0, 1, 0], [], []>} : vector<16x8xbf16>, vector<16x8xbf16>, vector<16x16xf32> -> vector<16x16xf32>
    %cst_124 = arith.constant 0.353553385 : f32
    %189 = vector.broadcast %cst_124 : f32 to vector<16x16xf32>
    %190 = arith.mulf %188, %189 : vector<16x16xf32>
    %cst_125 = arith.constant -1.000000e+30 : f32
    %191 = vector.broadcast %cst_125 : f32 to vector<16x16xf32>
    %192 = arith.select %63, %190, %191 : vector<16x16xi1>, vector<16x16xf32>
    %cst_126 = arith.constant dense<0xFF800000> : vector<16xf32>
    %193 = vector.multi_reduction <maximumf>, %192, %cst_126 [1] : vector<16x16xf32> to vector<16xf32>
    %194 = vector.shape_cast %193 : vector<16xf32> to vector<16x1xf32>
    %195 = vector.broadcast %194 : vector<16x1xf32> to vector<16x16xf32>
    %196 = arith.subf %192, %195 : vector<16x16xf32>
    %197 = math.exp %196 : vector<16x16xf32>
    %cst_127 = arith.constant dense<0.000000e+00> : vector<16xf32>
    %198 = vector.multi_reduction <add>, %197, %cst_127 [1] : vector<16x16xf32> to vector<16xf32>
    %199 = vector.shape_cast %198 : vector<16xf32> to vector<16x1xf32>
    %200 = tpu.reciprocal %199 {approx = true} : vector<16x1xf32> -> vector<16x1xf32>
    %201 = vector.broadcast %200 : vector<16x1xf32> to vector<16x16xf32>
    %202 = arith.mulf %197, %201 : vector<16x16xf32>
    %203 = arith.truncf %202 : vector<16x16xf32> to vector<16x16xbf16>
    %204 = vector.extract_strided_slice %185 {offsets = [0, 0], sizes = [16, 8], strides = [1, 1]} : vector<32x8xbf16> to vector<16x8xbf16>
    %cst_128 = arith.constant dense<0.000000e+00> : vector<16x8xf32>
    %205 = tpu.matmul %203, %204, %cst_128 {dimension_numbers = #tpu.dot_dimension_numbers<[1], [0], [0], [1], [0, 0, 1, 1], [], []>} : vector<16x16xbf16>, vector<16x8xbf16>, vector<16x8xf32> -> vector<16x8xf32>
    %206 = vector.extract_strided_slice %169 {offsets = [16, 0], sizes = [16, 8], strides = [1, 1]} : vector<32x8xbf16> to vector<16x8xbf16>
    %207 = vector.extract_strided_slice %177 {offsets = [16, 0], sizes = [16, 8], strides = [1, 1]} : vector<32x8xbf16> to vector<16x8xbf16>
    %cst_129 = arith.constant dense<0.000000e+00> : vector<16x16xf32>
    %208 = tpu.matmul %206, %207, %cst_129 {dimension_numbers = #tpu.dot_dimension_numbers<[1], [1], [0], [0], [0, 0, 1, 0], [], []>} : vector<16x8xbf16>, vector<16x8xbf16>, vector<16x16xf32> -> vector<16x16xf32>
    %cst_130 = arith.constant 0.353553385 : f32
    %209 = vector.broadcast %cst_130 : f32 to vector<16x16xf32>
    %210 = arith.mulf %208, %209 : vector<16x16xf32>
    %cst_131 = arith.constant -1.000000e+30 : f32
    %211 = vector.broadcast %cst_131 : f32 to vector<16x16xf32>
    %212 = arith.select %63, %210, %211 : vector<16x16xi1>, vector<16x16xf32>
    %cst_132 = arith.constant dense<0xFF800000> : vector<16xf32>
    %213 = vector.multi_reduction <maximumf>, %212, %cst_132 [1] : vector<16x16xf32> to vector<16xf32>
    %214 = vector.shape_cast %213 : vector<16xf32> to vector<16x1xf32>
    %215 = vector.broadcast %214 : vector<16x1xf32> to vector<16x16xf32>
    %216 = arith.subf %212, %215 : vector<16x16xf32>
    %217 = math.exp %216 : vector<16x16xf32>
    %cst_133 = arith.constant dense<0.000000e+00> : vector<16xf32>
    %218 = vector.multi_reduction <add>, %217, %cst_133 [1] : vector<16x16xf32> to vector<16xf32>
    %219 = vector.shape_cast %218 : vector<16xf32> to vector<16x1xf32>
    %220 = tpu.reciprocal %219 {approx = true} : vector<16x1xf32> -> vector<16x1xf32>
    %221 = vector.broadcast %220 : vector<16x1xf32> to vector<16x16xf32>
    %222 = arith.mulf %217, %221 : vector<16x16xf32>
    %223 = arith.truncf %222 : vector<16x16xf32> to vector<16x16xbf16>
    %224 = vector.extract_strided_slice %185 {offsets = [16, 0], sizes = [16, 8], strides = [1, 1]} : vector<32x8xbf16> to vector<16x8xbf16>
    %cst_134 = arith.constant dense<0.000000e+00> : vector<16x8xf32>
    %225 = tpu.matmul %223, %224, %cst_134 {dimension_numbers = #tpu.dot_dimension_numbers<[1], [0], [0], [1], [0, 0, 1, 1], [], []>} : vector<16x16xbf16>, vector<16x8xbf16>, vector<16x8xf32> -> vector<16x8xf32>
    %226 = tpu.concatenate %205, %225 in 0 : vector<16x8xf32>, vector<16x8xf32> -> vector<32x8xf32>
    %227 = arith.truncf %226 : vector<32x8xf32> to vector<32x8xbf16>
    %c1_135 = arith.constant 1 : index
    %c0_136 = arith.constant 0 : index
    %c0_137 = arith.constant 0 : index
    %228 = vector.load %arg15[%c1_135, %c0_136, %c0_137] : memref<8x8x32xbf16, #tpu.memory_space<vmem>>, vector<1x8x32xbf16>
    %229 = vector.shape_cast %228 : vector<1x8x32xbf16> to vector<8x32xbf16>
    %cst_138 = arith.constant dense<0.000000e+00> : vector<32x32xf32>
    %230 = tpu.matmul %227, %229, %cst_138 {dimension_numbers = #tpu.dot_dimension_numbers<[1], [0], [0], [1], [0, 0, 1, 1], [], []>} : vector<32x8xbf16>, vector<8x32xbf16>, vector<32x32xf32> -> vector<32x32xf32>
    %231 = arith.addf %161, %230 : vector<32x32xf32>
    %c2_139 = arith.constant 2 : index
    %c0_140 = arith.constant 0 : index
    %c0_141 = arith.constant 0 : index
    %232 = vector.load %arg9[%c2_139, %c0_140, %c0_141] : memref<8x32x8xbf16, #tpu.memory_space<vmem>>, vector<1x32x8xbf16>
    %233 = vector.shape_cast %232 : vector<1x32x8xbf16> to vector<32x8xbf16>
    %cst_142 = arith.constant dense<0.000000e+00> : vector<32x8xf32>
    %234 = tpu.matmul %90, %233, %cst_142 {dimension_numbers = #tpu.dot_dimension_numbers<[1], [0], [0], [1], [0, 0, 1, 1], [], []>} : vector<32x32xbf16>, vector<32x8xbf16>, vector<32x8xf32> -> vector<32x8xf32>
    %c2_143 = arith.constant 2 : index
    %c0_144 = arith.constant 0 : index
    %c0_145 = arith.constant 0 : index
    %235 = vector.load %arg10[%c2_143, %c0_144, %c0_145] : memref<8x1x8xf32, #tpu.memory_space<vmem>>, vector<1x1x8xf32>
    %236 = vector.shape_cast %235 : vector<1x1x8xf32> to vector<1x8xf32>
    %237 = vector.broadcast %236 : vector<1x8xf32> to vector<32x8xf32>
    %238 = arith.addf %234, %237 : vector<32x8xf32>
    %239 = arith.truncf %238 : vector<32x8xf32> to vector<32x8xbf16>
    %c2_146 = arith.constant 2 : index
    %c0_147 = arith.constant 0 : index
    %c0_148 = arith.constant 0 : index
    %240 = vector.load %arg11[%c2_146, %c0_147, %c0_148] : memref<8x32x8xbf16, #tpu.memory_space<vmem>>, vector<1x32x8xbf16>
    %241 = vector.shape_cast %240 : vector<1x32x8xbf16> to vector<32x8xbf16>
    %cst_149 = arith.constant dense<0.000000e+00> : vector<32x8xf32>
    %242 = tpu.matmul %90, %241, %cst_149 {dimension_numbers = #tpu.dot_dimension_numbers<[1], [0], [0], [1], [0, 0, 1, 1], [], []>} : vector<32x32xbf16>, vector<32x8xbf16>, vector<32x8xf32> -> vector<32x8xf32>
    %c2_150 = arith.constant 2 : index
    %c0_151 = arith.constant 0 : index
    %c0_152 = arith.constant 0 : index
    %243 = vector.load %arg12[%c2_150, %c0_151, %c0_152] : memref<8x1x8xf32, #tpu.memory_space<vmem>>, vector<1x1x8xf32>
    %244 = vector.shape_cast %243 : vector<1x1x8xf32> to vector<1x8xf32>
    %245 = vector.broadcast %244 : vector<1x8xf32> to vector<32x8xf32>
    %246 = arith.addf %242, %245 : vector<32x8xf32>
    %247 = arith.truncf %246 : vector<32x8xf32> to vector<32x8xbf16>
    %c2_153 = arith.constant 2 : index
    %c0_154 = arith.constant 0 : index
    %c0_155 = arith.constant 0 : index
    %248 = vector.load %arg13[%c2_153, %c0_154, %c0_155] : memref<8x32x8xbf16, #tpu.memory_space<vmem>>, vector<1x32x8xbf16>
    %249 = vector.shape_cast %248 : vector<1x32x8xbf16> to vector<32x8xbf16>
    %cst_156 = arith.constant dense<0.000000e+00> : vector<32x8xf32>
    %250 = tpu.matmul %90, %249, %cst_156 {dimension_numbers = #tpu.dot_dimension_numbers<[1], [0], [0], [1], [0, 0, 1, 1], [], []>} : vector<32x32xbf16>, vector<32x8xbf16>, vector<32x8xf32> -> vector<32x8xf32>
    %c2_157 = arith.constant 2 : index
    %c0_158 = arith.constant 0 : index
    %c0_159 = arith.constant 0 : index
    %251 = vector.load %arg14[%c2_157, %c0_158, %c0_159] : memref<8x1x8xf32, #tpu.memory_space<vmem>>, vector<1x1x8xf32>
    %252 = vector.shape_cast %251 : vector<1x1x8xf32> to vector<1x8xf32>
    %253 = vector.broadcast %252 : vector<1x8xf32> to vector<32x8xf32>
    %254 = arith.addf %250, %253 : vector<32x8xf32>
    %255 = arith.truncf %254 : vector<32x8xf32> to vector<32x8xbf16>
    %256 = vector.extract_strided_slice %239 {offsets = [0, 0], sizes = [16, 8], strides = [1, 1]} : vector<32x8xbf16> to vector<16x8xbf16>
    %257 = vector.extract_strided_slice %247 {offsets = [0, 0], sizes = [16, 8], strides = [1, 1]} : vector<32x8xbf16> to vector<16x8xbf16>
    %cst_160 = arith.constant dense<0.000000e+00> : vector<16x16xf32>
    %258 = tpu.matmul %256, %257, %cst_160 {dimension_numbers = #tpu.dot_dimension_numbers<[1], [1], [0], [0], [0, 0, 1, 0], [], []>} : vector<16x8xbf16>, vector<16x8xbf16>, vector<16x16xf32> -> vector<16x16xf32>
    %cst_161 = arith.constant 0.353553385 : f32
    %259 = vector.broadcast %cst_161 : f32 to vector<16x16xf32>
    %260 = arith.mulf %258, %259 : vector<16x16xf32>
    %cst_162 = arith.constant -1.000000e+30 : f32
    %261 = vector.broadcast %cst_162 : f32 to vector<16x16xf32>
    %262 = arith.select %63, %260, %261 : vector<16x16xi1>, vector<16x16xf32>
    %cst_163 = arith.constant dense<0xFF800000> : vector<16xf32>
    %263 = vector.multi_reduction <maximumf>, %262, %cst_163 [1] : vector<16x16xf32> to vector<16xf32>
    %264 = vector.shape_cast %263 : vector<16xf32> to vector<16x1xf32>
    %265 = vector.broadcast %264 : vector<16x1xf32> to vector<16x16xf32>
    %266 = arith.subf %262, %265 : vector<16x16xf32>
    %267 = math.exp %266 : vector<16x16xf32>
    %cst_164 = arith.constant dense<0.000000e+00> : vector<16xf32>
    %268 = vector.multi_reduction <add>, %267, %cst_164 [1] : vector<16x16xf32> to vector<16xf32>
    %269 = vector.shape_cast %268 : vector<16xf32> to vector<16x1xf32>
    %270 = tpu.reciprocal %269 {approx = true} : vector<16x1xf32> -> vector<16x1xf32>
    %271 = vector.broadcast %270 : vector<16x1xf32> to vector<16x16xf32>
    %272 = arith.mulf %267, %271 : vector<16x16xf32>
    %273 = arith.truncf %272 : vector<16x16xf32> to vector<16x16xbf16>
    %274 = vector.extract_strided_slice %255 {offsets = [0, 0], sizes = [16, 8], strides = [1, 1]} : vector<32x8xbf16> to vector<16x8xbf16>
    %cst_165 = arith.constant dense<0.000000e+00> : vector<16x8xf32>
    %275 = tpu.matmul %273, %274, %cst_165 {dimension_numbers = #tpu.dot_dimension_numbers<[1], [0], [0], [1], [0, 0, 1, 1], [], []>} : vector<16x16xbf16>, vector<16x8xbf16>, vector<16x8xf32> -> vector<16x8xf32>
    %276 = vector.extract_strided_slice %239 {offsets = [16, 0], sizes = [16, 8], strides = [1, 1]} : vector<32x8xbf16> to vector<16x8xbf16>
    %277 = vector.extract_strided_slice %247 {offsets = [16, 0], sizes = [16, 8], strides = [1, 1]} : vector<32x8xbf16> to vector<16x8xbf16>
    %cst_166 = arith.constant dense<0.000000e+00> : vector<16x16xf32>
    %278 = tpu.matmul %276, %277, %cst_166 {dimension_numbers = #tpu.dot_dimension_numbers<[1], [1], [0], [0], [0, 0, 1, 0], [], []>} : vector<16x8xbf16>, vector<16x8xbf16>, vector<16x16xf32> -> vector<16x16xf32>
    %cst_167 = arith.constant 0.353553385 : f32
    %279 = vector.broadcast %cst_167 : f32 to vector<16x16xf32>
    %280 = arith.mulf %278, %279 : vector<16x16xf32>
    %cst_168 = arith.constant -1.000000e+30 : f32
    %281 = vector.broadcast %cst_168 : f32 to vector<16x16xf32>
    %282 = arith.select %63, %280, %281 : vector<16x16xi1>, vector<16x16xf32>
    %cst_169 = arith.constant dense<0xFF800000> : vector<16xf32>
    %283 = vector.multi_reduction <maximumf>, %282, %cst_169 [1] : vector<16x16xf32> to vector<16xf32>
    %284 = vector.shape_cast %283 : vector<16xf32> to vector<16x1xf32>
    %285 = vector.broadcast %284 : vector<16x1xf32> to vector<16x16xf32>
    %286 = arith.subf %282, %285 : vector<16x16xf32>
    %287 = math.exp %286 : vector<16x16xf32>
    %cst_170 = arith.constant dense<0.000000e+00> : vector<16xf32>
    %288 = vector.multi_reduction <add>, %287, %cst_170 [1] : vector<16x16xf32> to vector<16xf32>
    %289 = vector.shape_cast %288 : vector<16xf32> to vector<16x1xf32>
    %290 = tpu.reciprocal %289 {approx = true} : vector<16x1xf32> -> vector<16x1xf32>
    %291 = vector.broadcast %290 : vector<16x1xf32> to vector<16x16xf32>
    %292 = arith.mulf %287, %291 : vector<16x16xf32>
    %293 = arith.truncf %292 : vector<16x16xf32> to vector<16x16xbf16>
    %294 = vector.extract_strided_slice %255 {offsets = [16, 0], sizes = [16, 8], strides = [1, 1]} : vector<32x8xbf16> to vector<16x8xbf16>
    %cst_171 = arith.constant dense<0.000000e+00> : vector<16x8xf32>
    %295 = tpu.matmul %293, %294, %cst_171 {dimension_numbers = #tpu.dot_dimension_numbers<[1], [0], [0], [1], [0, 0, 1, 1], [], []>} : vector<16x16xbf16>, vector<16x8xbf16>, vector<16x8xf32> -> vector<16x8xf32>
    %296 = tpu.concatenate %275, %295 in 0 : vector<16x8xf32>, vector<16x8xf32> -> vector<32x8xf32>
    %297 = arith.truncf %296 : vector<32x8xf32> to vector<32x8xbf16>
    %c2_172 = arith.constant 2 : index
    %c0_173 = arith.constant 0 : index
    %c0_174 = arith.constant 0 : index
    %298 = vector.load %arg15[%c2_172, %c0_173, %c0_174] : memref<8x8x32xbf16, #tpu.memory_space<vmem>>, vector<1x8x32xbf16>
    %299 = vector.shape_cast %298 : vector<1x8x32xbf16> to vector<8x32xbf16>
    %cst_175 = arith.constant dense<0.000000e+00> : vector<32x32xf32>
    %300 = tpu.matmul %297, %299, %cst_175 {dimension_numbers = #tpu.dot_dimension_numbers<[1], [0], [0], [1], [0, 0, 1, 1], [], []>} : vector<32x8xbf16>, vector<8x32xbf16>, vector<32x32xf32> -> vector<32x32xf32>
    %301 = arith.addf %231, %300 : vector<32x32xf32>
    %c3_176 = arith.constant 3 : index
    %c0_177 = arith.constant 0 : index
    %c0_178 = arith.constant 0 : index
    %302 = vector.load %arg9[%c3_176, %c0_177, %c0_178] : memref<8x32x8xbf16, #tpu.memory_space<vmem>>, vector<1x32x8xbf16>
    %303 = vector.shape_cast %302 : vector<1x32x8xbf16> to vector<32x8xbf16>
    %cst_179 = arith.constant dense<0.000000e+00> : vector<32x8xf32>
    %304 = tpu.matmul %90, %303, %cst_179 {dimension_numbers = #tpu.dot_dimension_numbers<[1], [0], [0], [1], [0, 0, 1, 1], [], []>} : vector<32x32xbf16>, vector<32x8xbf16>, vector<32x8xf32> -> vector<32x8xf32>
    %c3_180 = arith.constant 3 : index
    %c0_181 = arith.constant 0 : index
    %c0_182 = arith.constant 0 : index
    %305 = vector.load %arg10[%c3_180, %c0_181, %c0_182] : memref<8x1x8xf32, #tpu.memory_space<vmem>>, vector<1x1x8xf32>
    %306 = vector.shape_cast %305 : vector<1x1x8xf32> to vector<1x8xf32>
    %307 = vector.broadcast %306 : vector<1x8xf32> to vector<32x8xf32>
    %308 = arith.addf %304, %307 : vector<32x8xf32>
    %309 = arith.truncf %308 : vector<32x8xf32> to vector<32x8xbf16>
    %c3_183 = arith.constant 3 : index
    %c0_184 = arith.constant 0 : index
    %c0_185 = arith.constant 0 : index
    %310 = vector.load %arg11[%c3_183, %c0_184, %c0_185] : memref<8x32x8xbf16, #tpu.memory_space<vmem>>, vector<1x32x8xbf16>
    %311 = vector.shape_cast %310 : vector<1x32x8xbf16> to vector<32x8xbf16>
    %cst_186 = arith.constant dense<0.000000e+00> : vector<32x8xf32>
    %312 = tpu.matmul %90, %311, %cst_186 {dimension_numbers = #tpu.dot_dimension_numbers<[1], [0], [0], [1], [0, 0, 1, 1], [], []>} : vector<32x32xbf16>, vector<32x8xbf16>, vector<32x8xf32> -> vector<32x8xf32>
    %c3_187 = arith.constant 3 : index
    %c0_188 = arith.constant 0 : index
    %c0_189 = arith.constant 0 : index
    %313 = vector.load %arg12[%c3_187, %c0_188, %c0_189] : memref<8x1x8xf32, #tpu.memory_space<vmem>>, vector<1x1x8xf32>
    %314 = vector.shape_cast %313 : vector<1x1x8xf32> to vector<1x8xf32>
    %315 = vector.broadcast %314 : vector<1x8xf32> to vector<32x8xf32>
    %316 = arith.addf %312, %315 : vector<32x8xf32>
    %317 = arith.truncf %316 : vector<32x8xf32> to vector<32x8xbf16>
    %c3_190 = arith.constant 3 : index
    %c0_191 = arith.constant 0 : index
    %c0_192 = arith.constant 0 : index
    %318 = vector.load %arg13[%c3_190, %c0_191, %c0_192] : memref<8x32x8xbf16, #tpu.memory_space<vmem>>, vector<1x32x8xbf16>
    %319 = vector.shape_cast %318 : vector<1x32x8xbf16> to vector<32x8xbf16>
    %cst_193 = arith.constant dense<0.000000e+00> : vector<32x8xf32>
    %320 = tpu.matmul %90, %319, %cst_193 {dimension_numbers = #tpu.dot_dimension_numbers<[1], [0], [0], [1], [0, 0, 1, 1], [], []>} : vector<32x32xbf16>, vector<32x8xbf16>, vector<32x8xf32> -> vector<32x8xf32>
    %c3_194 = arith.constant 3 : index
    %c0_195 = arith.constant 0 : index
    %c0_196 = arith.constant 0 : index
    %321 = vector.load %arg14[%c3_194, %c0_195, %c0_196] : memref<8x1x8xf32, #tpu.memory_space<vmem>>, vector<1x1x8xf32>
    %322 = vector.shape_cast %321 : vector<1x1x8xf32> to vector<1x8xf32>
    %323 = vector.broadcast %322 : vector<1x8xf32> to vector<32x8xf32>
    %324 = arith.addf %320, %323 : vector<32x8xf32>
    %325 = arith.truncf %324 : vector<32x8xf32> to vector<32x8xbf16>
    %326 = vector.extract_strided_slice %309 {offsets = [0, 0], sizes = [16, 8], strides = [1, 1]} : vector<32x8xbf16> to vector<16x8xbf16>
    %327 = vector.extract_strided_slice %317 {offsets = [0, 0], sizes = [16, 8], strides = [1, 1]} : vector<32x8xbf16> to vector<16x8xbf16>
    %cst_197 = arith.constant dense<0.000000e+00> : vector<16x16xf32>
    %328 = tpu.matmul %326, %327, %cst_197 {dimension_numbers = #tpu.dot_dimension_numbers<[1], [1], [0], [0], [0, 0, 1, 0], [], []>} : vector<16x8xbf16>, vector<16x8xbf16>, vector<16x16xf32> -> vector<16x16xf32>
    %cst_198 = arith.constant 0.353553385 : f32
    %329 = vector.broadcast %cst_198 : f32 to vector<16x16xf32>
    %330 = arith.mulf %328, %329 : vector<16x16xf32>
    %cst_199 = arith.constant -1.000000e+30 : f32
    %331 = vector.broadcast %cst_199 : f32 to vector<16x16xf32>
    %332 = arith.select %63, %330, %331 : vector<16x16xi1>, vector<16x16xf32>
    %cst_200 = arith.constant dense<0xFF800000> : vector<16xf32>
    %333 = vector.multi_reduction <maximumf>, %332, %cst_200 [1] : vector<16x16xf32> to vector<16xf32>
    %334 = vector.shape_cast %333 : vector<16xf32> to vector<16x1xf32>
    %335 = vector.broadcast %334 : vector<16x1xf32> to vector<16x16xf32>
    %336 = arith.subf %332, %335 : vector<16x16xf32>
    %337 = math.exp %336 : vector<16x16xf32>
    %cst_201 = arith.constant dense<0.000000e+00> : vector<16xf32>
    %338 = vector.multi_reduction <add>, %337, %cst_201 [1] : vector<16x16xf32> to vector<16xf32>
    %339 = vector.shape_cast %338 : vector<16xf32> to vector<16x1xf32>
    %340 = tpu.reciprocal %339 {approx = true} : vector<16x1xf32> -> vector<16x1xf32>
    %341 = vector.broadcast %340 : vector<16x1xf32> to vector<16x16xf32>
    %342 = arith.mulf %337, %341 : vector<16x16xf32>
    %343 = arith.truncf %342 : vector<16x16xf32> to vector<16x16xbf16>
    %344 = vector.extract_strided_slice %325 {offsets = [0, 0], sizes = [16, 8], strides = [1, 1]} : vector<32x8xbf16> to vector<16x8xbf16>
    %cst_202 = arith.constant dense<0.000000e+00> : vector<16x8xf32>
    %345 = tpu.matmul %343, %344, %cst_202 {dimension_numbers = #tpu.dot_dimension_numbers<[1], [0], [0], [1], [0, 0, 1, 1], [], []>} : vector<16x16xbf16>, vector<16x8xbf16>, vector<16x8xf32> -> vector<16x8xf32>
    %346 = vector.extract_strided_slice %309 {offsets = [16, 0], sizes = [16, 8], strides = [1, 1]} : vector<32x8xbf16> to vector<16x8xbf16>
    %347 = vector.extract_strided_slice %317 {offsets = [16, 0], sizes = [16, 8], strides = [1, 1]} : vector<32x8xbf16> to vector<16x8xbf16>
    %cst_203 = arith.constant dense<0.000000e+00> : vector<16x16xf32>
    %348 = tpu.matmul %346, %347, %cst_203 {dimension_numbers = #tpu.dot_dimension_numbers<[1], [1], [0], [0], [0, 0, 1, 0], [], []>} : vector<16x8xbf16>, vector<16x8xbf16>, vector<16x16xf32> -> vector<16x16xf32>
    %cst_204 = arith.constant 0.353553385 : f32
    %349 = vector.broadcast %cst_204 : f32 to vector<16x16xf32>
    %350 = arith.mulf %348, %349 : vector<16x16xf32>
    %cst_205 = arith.constant -1.000000e+30 : f32
    %351 = vector.broadcast %cst_205 : f32 to vector<16x16xf32>
    %352 = arith.select %63, %350, %351 : vector<16x16xi1>, vector<16x16xf32>
    %cst_206 = arith.constant dense<0xFF800000> : vector<16xf32>
    %353 = vector.multi_reduction <maximumf>, %352, %cst_206 [1] : vector<16x16xf32> to vector<16xf32>
    %354 = vector.shape_cast %353 : vector<16xf32> to vector<16x1xf32>
    %355 = vector.broadcast %354 : vector<16x1xf32> to vector<16x16xf32>
    %356 = arith.subf %352, %355 : vector<16x16xf32>
    %357 = math.exp %356 : vector<16x16xf32>
    %cst_207 = arith.constant dense<0.000000e+00> : vector<16xf32>
    %358 = vector.multi_reduction <add>, %357, %cst_207 [1] : vector<16x16xf32> to vector<16xf32>
    %359 = vector.shape_cast %358 : vector<16xf32> to vector<16x1xf32>
    %360 = tpu.reciprocal %359 {approx = true} : vector<16x1xf32> -> vector<16x1xf32>
    %361 = vector.broadcast %360 : vector<16x1xf32> to vector<16x16xf32>
    %362 = arith.mulf %357, %361 : vector<16x16xf32>
    %363 = arith.truncf %362 : vector<16x16xf32> to vector<16x16xbf16>
    %364 = vector.extract_strided_slice %325 {offsets = [16, 0], sizes = [16, 8], strides = [1, 1]} : vector<32x8xbf16> to vector<16x8xbf16>
    %cst_208 = arith.constant dense<0.000000e+00> : vector<16x8xf32>
    %365 = tpu.matmul %363, %364, %cst_208 {dimension_numbers = #tpu.dot_dimension_numbers<[1], [0], [0], [1], [0, 0, 1, 1], [], []>} : vector<16x16xbf16>, vector<16x8xbf16>, vector<16x8xf32> -> vector<16x8xf32>
    %366 = tpu.concatenate %345, %365 in 0 : vector<16x8xf32>, vector<16x8xf32> -> vector<32x8xf32>
    %367 = arith.truncf %366 : vector<32x8xf32> to vector<32x8xbf16>
    %c3_209 = arith.constant 3 : index
    %c0_210 = arith.constant 0 : index
    %c0_211 = arith.constant 0 : index
    %368 = vector.load %arg15[%c3_209, %c0_210, %c0_211] : memref<8x8x32xbf16, #tpu.memory_space<vmem>>, vector<1x8x32xbf16>
    %369 = vector.shape_cast %368 : vector<1x8x32xbf16> to vector<8x32xbf16>
    %cst_212 = arith.constant dense<0.000000e+00> : vector<32x32xf32>
    %370 = tpu.matmul %367, %369, %cst_212 {dimension_numbers = #tpu.dot_dimension_numbers<[1], [0], [0], [1], [0, 0, 1, 1], [], []>} : vector<32x8xbf16>, vector<8x32xbf16>, vector<32x32xf32> -> vector<32x32xf32>
    %371 = arith.addf %301, %370 : vector<32x32xf32>
    %372 = arith.addf %60, %371 : vector<32x32xf32>
    %c0_213 = arith.constant 0 : index
    %c0_214 = arith.constant 0 : index
    %c0_215 = arith.constant 0 : index
    %373 = vector.load %arg16[%c0_213, %c0_214, %c0_215] : memref<2x1x32xf32, #tpu.memory_space<vmem>>, vector<1x1x32xf32>
    %374 = vector.shape_cast %373 : vector<1x1x32xf32> to vector<1x32xf32>
    %375 = vector.broadcast %374 : vector<1x32xf32> to vector<32x32xf32>
    %376 = arith.addf %372, %375 : vector<32x32xf32>
    %c0_216 = arith.constant 0 : index
    %c0_217 = arith.constant 0 : index
    %c0_218 = arith.constant 0 : index
    %377 = vector.load %arg17[%c0_216, %c0_217, %c0_218] : memref<2x1x32xf32, #tpu.memory_space<vmem>>, vector<1x1x32xf32>
    %378 = vector.shape_cast %377 : vector<1x1x32xf32> to vector<1x32xf32>
    %c0_219 = arith.constant 0 : index
    %c0_220 = arith.constant 0 : index
    %c0_221 = arith.constant 0 : index
    %379 = vector.load %arg18[%c0_219, %c0_220, %c0_221] : memref<2x1x32xf32, #tpu.memory_space<vmem>>, vector<1x1x32xf32>
    %380 = vector.shape_cast %379 : vector<1x1x32xf32> to vector<1x32xf32>
    %cst_222 = arith.constant dense<0.000000e+00> : vector<32xf32>
    %381 = vector.multi_reduction <add>, %376, %cst_222 [1] : vector<32x32xf32> to vector<32xf32>
    %382 = vector.shape_cast %381 : vector<32xf32> to vector<32x1xf32>
    %cst_223 = arith.constant 3.200000e+01 : f32
    %383 = vector.broadcast %cst_223 : f32 to vector<32x1xf32>
    %384 = arith.divf %382, %383 : vector<32x1xf32>
    %385 = vector.broadcast %384 : vector<32x1xf32> to vector<32x32xf32>
    %386 = arith.subf %376, %385 : vector<32x32xf32>
    %387 = arith.mulf %386, %386 : vector<32x32xf32>
    %cst_224 = arith.constant dense<0.000000e+00> : vector<32xf32>
    %388 = vector.multi_reduction <add>, %387, %cst_224 [1] : vector<32x32xf32> to vector<32xf32>
    %389 = vector.shape_cast %388 : vector<32xf32> to vector<32x1xf32>
    %cst_225 = arith.constant 3.200000e+01 : f32
    %390 = vector.broadcast %cst_225 : f32 to vector<32x1xf32>
    %391 = arith.divf %389, %390 : vector<32x1xf32>
    %392 = vector.broadcast %384 : vector<32x1xf32> to vector<32x32xf32>
    %393 = arith.subf %376, %392 : vector<32x32xf32>
    %cst_226 = arith.constant 9.99999974E-6 : f32
    %394 = vector.broadcast %cst_226 : f32 to vector<32x1xf32>
    %395 = arith.addf %391, %394 : vector<32x1xf32>
    %396 = math.rsqrt %395 : vector<32x1xf32>
    %397 = vector.broadcast %396 : vector<32x1xf32> to vector<32x32xf32>
    %398 = arith.mulf %393, %397 : vector<32x32xf32>
    %399 = vector.broadcast %378 : vector<1x32xf32> to vector<32x32xf32>
    %400 = arith.mulf %398, %399 : vector<32x32xf32>
    %401 = vector.broadcast %380 : vector<1x32xf32> to vector<32x32xf32>
    %402 = arith.addf %400, %401 : vector<32x32xf32>
    %403 = arith.truncf %402 : vector<32x32xf32> to vector<32x32xbf16>
    %c0_227 = arith.constant 0 : index
    %c0_228 = arith.constant 0 : index
    %c0_229 = arith.constant 0 : index
    %404 = vector.load %arg19[%c0_227, %c0_228, %c0_229] : memref<2x32x128xbf16, #tpu.memory_space<vmem>>, vector<1x32x128xbf16>
    %405 = vector.shape_cast %404 : vector<1x32x128xbf16> to vector<32x128xbf16>
    %cst_230 = arith.constant dense<0.000000e+00> : vector<32x128xf32>
    %406 = tpu.matmul %403, %405, %cst_230 {dimension_numbers = #tpu.dot_dimension_numbers<[1], [0], [0], [1], [0, 0, 1, 1], [], []>} : vector<32x32xbf16>, vector<32x128xbf16>, vector<32x128xf32> -> vector<32x128xf32>
    %c0_231 = arith.constant 0 : index
    %c0_232 = arith.constant 0 : index
    %c0_233 = arith.constant 0 : index
    %407 = vector.load %arg20[%c0_231, %c0_232, %c0_233] : memref<2x1x128xf32, #tpu.memory_space<vmem>>, vector<1x1x128xf32>
    %408 = vector.shape_cast %407 : vector<1x1x128xf32> to vector<1x128xf32>
    %409 = vector.broadcast %408 : vector<1x128xf32> to vector<32x128xf32>
    %410 = arith.addf %406, %409 : vector<32x128xf32>
    %cst_234 = arith.constant 5.000000e-01 : f32
    %411 = vector.broadcast %cst_234 : f32 to vector<32x128xf32>
    %412 = arith.mulf %411, %410 : vector<32x128xf32>
    %cst_235 = arith.constant 4.471500e-02 : f32
    %413 = vector.broadcast %cst_235 : f32 to vector<32x128xf32>
    %414 = arith.mulf %413, %410 : vector<32x128xf32>
    %415 = arith.mulf %414, %410 : vector<32x128xf32>
    %416 = arith.mulf %415, %410 : vector<32x128xf32>
    %417 = arith.addf %410, %416 : vector<32x128xf32>
    %cst_236 = arith.constant 0.797884583 : f32
    %418 = vector.broadcast %cst_236 : f32 to vector<32x128xf32>
    %419 = arith.mulf %418, %417 : vector<32x128xf32>
    %420 = math.tanh %419 : vector<32x128xf32>
    %cst_237 = arith.constant 1.000000e+00 : f32
    %421 = vector.broadcast %cst_237 : f32 to vector<32x128xf32>
    %422 = arith.addf %421, %420 : vector<32x128xf32>
    %423 = arith.mulf %412, %422 : vector<32x128xf32>
    %424 = arith.truncf %423 : vector<32x128xf32> to vector<32x128xbf16>
    %c0_238 = arith.constant 0 : index
    %c0_239 = arith.constant 0 : index
    %c0_240 = arith.constant 0 : index
    %425 = vector.load %arg21[%c0_238, %c0_239, %c0_240] : memref<2x128x32xbf16, #tpu.memory_space<vmem>>, vector<1x128x32xbf16>
    %426 = vector.shape_cast %425 : vector<1x128x32xbf16> to vector<128x32xbf16>
    %cst_241 = arith.constant dense<0.000000e+00> : vector<32x32xf32>
    %427 = tpu.matmul %424, %426, %cst_241 {dimension_numbers = #tpu.dot_dimension_numbers<[1], [0], [0], [1], [0, 0, 1, 1], [], []>} : vector<32x128xbf16>, vector<128x32xbf16>, vector<32x32xf32> -> vector<32x32xf32>
    %428 = arith.addf %376, %427 : vector<32x32xf32>
    %c0_242 = arith.constant 0 : index
    %c0_243 = arith.constant 0 : index
    %c0_244 = arith.constant 0 : index
    %429 = vector.load %arg22[%c0_242, %c0_243, %c0_244] : memref<2x1x32xf32, #tpu.memory_space<vmem>>, vector<1x1x32xf32>
    %430 = vector.shape_cast %429 : vector<1x1x32xf32> to vector<1x32xf32>
    %431 = vector.broadcast %430 : vector<1x32xf32> to vector<32x32xf32>
    %432 = arith.addf %428, %431 : vector<32x32xf32>
    %c1_245 = arith.constant 1 : index
    %c0_246 = arith.constant 0 : index
    %c0_247 = arith.constant 0 : index
    %433 = vector.load %arg7[%c1_245, %c0_246, %c0_247] : memref<2x1x32xf32, #tpu.memory_space<vmem>>, vector<1x1x32xf32>
    %434 = vector.shape_cast %433 : vector<1x1x32xf32> to vector<1x32xf32>
    %c1_248 = arith.constant 1 : index
    %c0_249 = arith.constant 0 : index
    %c0_250 = arith.constant 0 : index
    %435 = vector.load %arg8[%c1_248, %c0_249, %c0_250] : memref<2x1x32xf32, #tpu.memory_space<vmem>>, vector<1x1x32xf32>
    %436 = vector.shape_cast %435 : vector<1x1x32xf32> to vector<1x32xf32>
    %cst_251 = arith.constant dense<0.000000e+00> : vector<32xf32>
    %437 = vector.multi_reduction <add>, %432, %cst_251 [1] : vector<32x32xf32> to vector<32xf32>
    %438 = vector.shape_cast %437 : vector<32xf32> to vector<32x1xf32>
    %cst_252 = arith.constant 3.200000e+01 : f32
    %439 = vector.broadcast %cst_252 : f32 to vector<32x1xf32>
    %440 = arith.divf %438, %439 : vector<32x1xf32>
    %441 = vector.broadcast %440 : vector<32x1xf32> to vector<32x32xf32>
    %442 = arith.subf %432, %441 : vector<32x32xf32>
    %443 = arith.mulf %442, %442 : vector<32x32xf32>
    %cst_253 = arith.constant dense<0.000000e+00> : vector<32xf32>
    %444 = vector.multi_reduction <add>, %443, %cst_253 [1] : vector<32x32xf32> to vector<32xf32>
    %445 = vector.shape_cast %444 : vector<32xf32> to vector<32x1xf32>
    %cst_254 = arith.constant 3.200000e+01 : f32
    %446 = vector.broadcast %cst_254 : f32 to vector<32x1xf32>
    %447 = arith.divf %445, %446 : vector<32x1xf32>
    %448 = vector.broadcast %440 : vector<32x1xf32> to vector<32x32xf32>
    %449 = arith.subf %432, %448 : vector<32x32xf32>
    %cst_255 = arith.constant 9.99999974E-6 : f32
    %450 = vector.broadcast %cst_255 : f32 to vector<32x1xf32>
    %451 = arith.addf %447, %450 : vector<32x1xf32>
    %452 = math.rsqrt %451 : vector<32x1xf32>
    %453 = vector.broadcast %452 : vector<32x1xf32> to vector<32x32xf32>
    %454 = arith.mulf %449, %453 : vector<32x32xf32>
    %455 = vector.broadcast %434 : vector<1x32xf32> to vector<32x32xf32>
    %456 = arith.mulf %454, %455 : vector<32x32xf32>
    %457 = vector.broadcast %436 : vector<1x32xf32> to vector<32x32xf32>
    %458 = arith.addf %456, %457 : vector<32x32xf32>
    %459 = arith.truncf %458 : vector<32x32xf32> to vector<32x32xbf16>
    %cst_256 = arith.constant 0.000000e+00 : f32
    %460 = vector.broadcast %cst_256 : f32 to vector<32x32xf32>
    %c4_257 = arith.constant 4 : index
    %c0_258 = arith.constant 0 : index
    %c0_259 = arith.constant 0 : index
    %461 = vector.load %arg9[%c4_257, %c0_258, %c0_259] : memref<8x32x8xbf16, #tpu.memory_space<vmem>>, vector<1x32x8xbf16>
    %462 = vector.shape_cast %461 : vector<1x32x8xbf16> to vector<32x8xbf16>
    %cst_260 = arith.constant dense<0.000000e+00> : vector<32x8xf32>
    %463 = tpu.matmul %459, %462, %cst_260 {dimension_numbers = #tpu.dot_dimension_numbers<[1], [0], [0], [1], [0, 0, 1, 1], [], []>} : vector<32x32xbf16>, vector<32x8xbf16>, vector<32x8xf32> -> vector<32x8xf32>
    %c4_261 = arith.constant 4 : index
    %c0_262 = arith.constant 0 : index
    %c0_263 = arith.constant 0 : index
    %464 = vector.load %arg10[%c4_261, %c0_262, %c0_263] : memref<8x1x8xf32, #tpu.memory_space<vmem>>, vector<1x1x8xf32>
    %465 = vector.shape_cast %464 : vector<1x1x8xf32> to vector<1x8xf32>
    %466 = vector.broadcast %465 : vector<1x8xf32> to vector<32x8xf32>
    %467 = arith.addf %463, %466 : vector<32x8xf32>
    %468 = arith.truncf %467 : vector<32x8xf32> to vector<32x8xbf16>
    %c4_264 = arith.constant 4 : index
    %c0_265 = arith.constant 0 : index
    %c0_266 = arith.constant 0 : index
    %469 = vector.load %arg11[%c4_264, %c0_265, %c0_266] : memref<8x32x8xbf16, #tpu.memory_space<vmem>>, vector<1x32x8xbf16>
    %470 = vector.shape_cast %469 : vector<1x32x8xbf16> to vector<32x8xbf16>
    %cst_267 = arith.constant dense<0.000000e+00> : vector<32x8xf32>
    %471 = tpu.matmul %459, %470, %cst_267 {dimension_numbers = #tpu.dot_dimension_numbers<[1], [0], [0], [1], [0, 0, 1, 1], [], []>} : vector<32x32xbf16>, vector<32x8xbf16>, vector<32x8xf32> -> vector<32x8xf32>
    %c4_268 = arith.constant 4 : index
    %c0_269 = arith.constant 0 : index
    %c0_270 = arith.constant 0 : index
    %472 = vector.load %arg12[%c4_268, %c0_269, %c0_270] : memref<8x1x8xf32, #tpu.memory_space<vmem>>, vector<1x1x8xf32>
    %473 = vector.shape_cast %472 : vector<1x1x8xf32> to vector<1x8xf32>
    %474 = vector.broadcast %473 : vector<1x8xf32> to vector<32x8xf32>
    %475 = arith.addf %471, %474 : vector<32x8xf32>
    %476 = arith.truncf %475 : vector<32x8xf32> to vector<32x8xbf16>
    %c4_271 = arith.constant 4 : index
    %c0_272 = arith.constant 0 : index
    %c0_273 = arith.constant 0 : index
    %477 = vector.load %arg13[%c4_271, %c0_272, %c0_273] : memref<8x32x8xbf16, #tpu.memory_space<vmem>>, vector<1x32x8xbf16>
    %478 = vector.shape_cast %477 : vector<1x32x8xbf16> to vector<32x8xbf16>
    %cst_274 = arith.constant dense<0.000000e+00> : vector<32x8xf32>
    %479 = tpu.matmul %459, %478, %cst_274 {dimension_numbers = #tpu.dot_dimension_numbers<[1], [0], [0], [1], [0, 0, 1, 1], [], []>} : vector<32x32xbf16>, vector<32x8xbf16>, vector<32x8xf32> -> vector<32x8xf32>
    %c4_275 = arith.constant 4 : index
    %c0_276 = arith.constant 0 : index
    %c0_277 = arith.constant 0 : index
    %480 = vector.load %arg14[%c4_275, %c0_276, %c0_277] : memref<8x1x8xf32, #tpu.memory_space<vmem>>, vector<1x1x8xf32>
    %481 = vector.shape_cast %480 : vector<1x1x8xf32> to vector<1x8xf32>
    %482 = vector.broadcast %481 : vector<1x8xf32> to vector<32x8xf32>
    %483 = arith.addf %479, %482 : vector<32x8xf32>
    %484 = arith.truncf %483 : vector<32x8xf32> to vector<32x8xbf16>
    %485 = vector.extract_strided_slice %468 {offsets = [0, 0], sizes = [16, 8], strides = [1, 1]} : vector<32x8xbf16> to vector<16x8xbf16>
    %486 = vector.extract_strided_slice %476 {offsets = [0, 0], sizes = [16, 8], strides = [1, 1]} : vector<32x8xbf16> to vector<16x8xbf16>
    %cst_278 = arith.constant dense<0.000000e+00> : vector<16x16xf32>
    %487 = tpu.matmul %485, %486, %cst_278 {dimension_numbers = #tpu.dot_dimension_numbers<[1], [1], [0], [0], [0, 0, 1, 0], [], []>} : vector<16x8xbf16>, vector<16x8xbf16>, vector<16x16xf32> -> vector<16x16xf32>
    %cst_279 = arith.constant 0.353553385 : f32
    %488 = vector.broadcast %cst_279 : f32 to vector<16x16xf32>
    %489 = arith.mulf %487, %488 : vector<16x16xf32>
    %cst_280 = arith.constant -1.000000e+30 : f32
    %490 = vector.broadcast %cst_280 : f32 to vector<16x16xf32>
    %491 = arith.select %63, %489, %490 : vector<16x16xi1>, vector<16x16xf32>
    %cst_281 = arith.constant dense<0xFF800000> : vector<16xf32>
    %492 = vector.multi_reduction <maximumf>, %491, %cst_281 [1] : vector<16x16xf32> to vector<16xf32>
    %493 = vector.shape_cast %492 : vector<16xf32> to vector<16x1xf32>
    %494 = vector.broadcast %493 : vector<16x1xf32> to vector<16x16xf32>
    %495 = arith.subf %491, %494 : vector<16x16xf32>
    %496 = math.exp %495 : vector<16x16xf32>
    %cst_282 = arith.constant dense<0.000000e+00> : vector<16xf32>
    %497 = vector.multi_reduction <add>, %496, %cst_282 [1] : vector<16x16xf32> to vector<16xf32>
    %498 = vector.shape_cast %497 : vector<16xf32> to vector<16x1xf32>
    %499 = tpu.reciprocal %498 {approx = true} : vector<16x1xf32> -> vector<16x1xf32>
    %500 = vector.broadcast %499 : vector<16x1xf32> to vector<16x16xf32>
    %501 = arith.mulf %496, %500 : vector<16x16xf32>
    %502 = arith.truncf %501 : vector<16x16xf32> to vector<16x16xbf16>
    %503 = vector.extract_strided_slice %484 {offsets = [0, 0], sizes = [16, 8], strides = [1, 1]} : vector<32x8xbf16> to vector<16x8xbf16>
    %cst_283 = arith.constant dense<0.000000e+00> : vector<16x8xf32>
    %504 = tpu.matmul %502, %503, %cst_283 {dimension_numbers = #tpu.dot_dimension_numbers<[1], [0], [0], [1], [0, 0, 1, 1], [], []>} : vector<16x16xbf16>, vector<16x8xbf16>, vector<16x8xf32> -> vector<16x8xf32>
    %505 = vector.extract_strided_slice %468 {offsets = [16, 0], sizes = [16, 8], strides = [1, 1]} : vector<32x8xbf16> to vector<16x8xbf16>
    %506 = vector.extract_strided_slice %476 {offsets = [16, 0], sizes = [16, 8], strides = [1, 1]} : vector<32x8xbf16> to vector<16x8xbf16>
    %cst_284 = arith.constant dense<0.000000e+00> : vector<16x16xf32>
    %507 = tpu.matmul %505, %506, %cst_284 {dimension_numbers = #tpu.dot_dimension_numbers<[1], [1], [0], [0], [0, 0, 1, 0], [], []>} : vector<16x8xbf16>, vector<16x8xbf16>, vector<16x16xf32> -> vector<16x16xf32>
    %cst_285 = arith.constant 0.353553385 : f32
    %508 = vector.broadcast %cst_285 : f32 to vector<16x16xf32>
    %509 = arith.mulf %507, %508 : vector<16x16xf32>
    %cst_286 = arith.constant -1.000000e+30 : f32
    %510 = vector.broadcast %cst_286 : f32 to vector<16x16xf32>
    %511 = arith.select %63, %509, %510 : vector<16x16xi1>, vector<16x16xf32>
    %cst_287 = arith.constant dense<0xFF800000> : vector<16xf32>
    %512 = vector.multi_reduction <maximumf>, %511, %cst_287 [1] : vector<16x16xf32> to vector<16xf32>
    %513 = vector.shape_cast %512 : vector<16xf32> to vector<16x1xf32>
    %514 = vector.broadcast %513 : vector<16x1xf32> to vector<16x16xf32>
    %515 = arith.subf %511, %514 : vector<16x16xf32>
    %516 = math.exp %515 : vector<16x16xf32>
    %cst_288 = arith.constant dense<0.000000e+00> : vector<16xf32>
    %517 = vector.multi_reduction <add>, %516, %cst_288 [1] : vector<16x16xf32> to vector<16xf32>
    %518 = vector.shape_cast %517 : vector<16xf32> to vector<16x1xf32>
    %519 = tpu.reciprocal %518 {approx = true} : vector<16x1xf32> -> vector<16x1xf32>
    %520 = vector.broadcast %519 : vector<16x1xf32> to vector<16x16xf32>
    %521 = arith.mulf %516, %520 : vector<16x16xf32>
    %522 = arith.truncf %521 : vector<16x16xf32> to vector<16x16xbf16>
    %523 = vector.extract_strided_slice %484 {offsets = [16, 0], sizes = [16, 8], strides = [1, 1]} : vector<32x8xbf16> to vector<16x8xbf16>
    %cst_289 = arith.constant dense<0.000000e+00> : vector<16x8xf32>
    %524 = tpu.matmul %522, %523, %cst_289 {dimension_numbers = #tpu.dot_dimension_numbers<[1], [0], [0], [1], [0, 0, 1, 1], [], []>} : vector<16x16xbf16>, vector<16x8xbf16>, vector<16x8xf32> -> vector<16x8xf32>
    %525 = tpu.concatenate %504, %524 in 0 : vector<16x8xf32>, vector<16x8xf32> -> vector<32x8xf32>
    %526 = arith.truncf %525 : vector<32x8xf32> to vector<32x8xbf16>
    %c4_290 = arith.constant 4 : index
    %c0_291 = arith.constant 0 : index
    %c0_292 = arith.constant 0 : index
    %527 = vector.load %arg15[%c4_290, %c0_291, %c0_292] : memref<8x8x32xbf16, #tpu.memory_space<vmem>>, vector<1x8x32xbf16>
    %528 = vector.shape_cast %527 : vector<1x8x32xbf16> to vector<8x32xbf16>
    %cst_293 = arith.constant dense<0.000000e+00> : vector<32x32xf32>
    %529 = tpu.matmul %526, %528, %cst_293 {dimension_numbers = #tpu.dot_dimension_numbers<[1], [0], [0], [1], [0, 0, 1, 1], [], []>} : vector<32x8xbf16>, vector<8x32xbf16>, vector<32x32xf32> -> vector<32x32xf32>
    %530 = arith.addf %460, %529 : vector<32x32xf32>
    %c5 = arith.constant 5 : index
    %c0_294 = arith.constant 0 : index
    %c0_295 = arith.constant 0 : index
    %531 = vector.load %arg9[%c5, %c0_294, %c0_295] : memref<8x32x8xbf16, #tpu.memory_space<vmem>>, vector<1x32x8xbf16>
    %532 = vector.shape_cast %531 : vector<1x32x8xbf16> to vector<32x8xbf16>
    %cst_296 = arith.constant dense<0.000000e+00> : vector<32x8xf32>
    %533 = tpu.matmul %459, %532, %cst_296 {dimension_numbers = #tpu.dot_dimension_numbers<[1], [0], [0], [1], [0, 0, 1, 1], [], []>} : vector<32x32xbf16>, vector<32x8xbf16>, vector<32x8xf32> -> vector<32x8xf32>
    %c5_297 = arith.constant 5 : index
    %c0_298 = arith.constant 0 : index
    %c0_299 = arith.constant 0 : index
    %534 = vector.load %arg10[%c5_297, %c0_298, %c0_299] : memref<8x1x8xf32, #tpu.memory_space<vmem>>, vector<1x1x8xf32>
    %535 = vector.shape_cast %534 : vector<1x1x8xf32> to vector<1x8xf32>
    %536 = vector.broadcast %535 : vector<1x8xf32> to vector<32x8xf32>
    %537 = arith.addf %533, %536 : vector<32x8xf32>
    %538 = arith.truncf %537 : vector<32x8xf32> to vector<32x8xbf16>
    %c5_300 = arith.constant 5 : index
    %c0_301 = arith.constant 0 : index
    %c0_302 = arith.constant 0 : index
    %539 = vector.load %arg11[%c5_300, %c0_301, %c0_302] : memref<8x32x8xbf16, #tpu.memory_space<vmem>>, vector<1x32x8xbf16>
    %540 = vector.shape_cast %539 : vector<1x32x8xbf16> to vector<32x8xbf16>
    %cst_303 = arith.constant dense<0.000000e+00> : vector<32x8xf32>
    %541 = tpu.matmul %459, %540, %cst_303 {dimension_numbers = #tpu.dot_dimension_numbers<[1], [0], [0], [1], [0, 0, 1, 1], [], []>} : vector<32x32xbf16>, vector<32x8xbf16>, vector<32x8xf32> -> vector<32x8xf32>
    %c5_304 = arith.constant 5 : index
    %c0_305 = arith.constant 0 : index
    %c0_306 = arith.constant 0 : index
    %542 = vector.load %arg12[%c5_304, %c0_305, %c0_306] : memref<8x1x8xf32, #tpu.memory_space<vmem>>, vector<1x1x8xf32>
    %543 = vector.shape_cast %542 : vector<1x1x8xf32> to vector<1x8xf32>
    %544 = vector.broadcast %543 : vector<1x8xf32> to vector<32x8xf32>
    %545 = arith.addf %541, %544 : vector<32x8xf32>
    %546 = arith.truncf %545 : vector<32x8xf32> to vector<32x8xbf16>
    %c5_307 = arith.constant 5 : index
    %c0_308 = arith.constant 0 : index
    %c0_309 = arith.constant 0 : index
    %547 = vector.load %arg13[%c5_307, %c0_308, %c0_309] : memref<8x32x8xbf16, #tpu.memory_space<vmem>>, vector<1x32x8xbf16>
    %548 = vector.shape_cast %547 : vector<1x32x8xbf16> to vector<32x8xbf16>
    %cst_310 = arith.constant dense<0.000000e+00> : vector<32x8xf32>
    %549 = tpu.matmul %459, %548, %cst_310 {dimension_numbers = #tpu.dot_dimension_numbers<[1], [0], [0], [1], [0, 0, 1, 1], [], []>} : vector<32x32xbf16>, vector<32x8xbf16>, vector<32x8xf32> -> vector<32x8xf32>
    %c5_311 = arith.constant 5 : index
    %c0_312 = arith.constant 0 : index
    %c0_313 = arith.constant 0 : index
    %550 = vector.load %arg14[%c5_311, %c0_312, %c0_313] : memref<8x1x8xf32, #tpu.memory_space<vmem>>, vector<1x1x8xf32>
    %551 = vector.shape_cast %550 : vector<1x1x8xf32> to vector<1x8xf32>
    %552 = vector.broadcast %551 : vector<1x8xf32> to vector<32x8xf32>
    %553 = arith.addf %549, %552 : vector<32x8xf32>
    %554 = arith.truncf %553 : vector<32x8xf32> to vector<32x8xbf16>
    %555 = vector.extract_strided_slice %538 {offsets = [0, 0], sizes = [16, 8], strides = [1, 1]} : vector<32x8xbf16> to vector<16x8xbf16>
    %556 = vector.extract_strided_slice %546 {offsets = [0, 0], sizes = [16, 8], strides = [1, 1]} : vector<32x8xbf16> to vector<16x8xbf16>
    %cst_314 = arith.constant dense<0.000000e+00> : vector<16x16xf32>
    %557 = tpu.matmul %555, %556, %cst_314 {dimension_numbers = #tpu.dot_dimension_numbers<[1], [1], [0], [0], [0, 0, 1, 0], [], []>} : vector<16x8xbf16>, vector<16x8xbf16>, vector<16x16xf32> -> vector<16x16xf32>
    %cst_315 = arith.constant 0.353553385 : f32
    %558 = vector.broadcast %cst_315 : f32 to vector<16x16xf32>
    %559 = arith.mulf %557, %558 : vector<16x16xf32>
    %cst_316 = arith.constant -1.000000e+30 : f32
    %560 = vector.broadcast %cst_316 : f32 to vector<16x16xf32>
    %561 = arith.select %63, %559, %560 : vector<16x16xi1>, vector<16x16xf32>
    %cst_317 = arith.constant dense<0xFF800000> : vector<16xf32>
    %562 = vector.multi_reduction <maximumf>, %561, %cst_317 [1] : vector<16x16xf32> to vector<16xf32>
    %563 = vector.shape_cast %562 : vector<16xf32> to vector<16x1xf32>
    %564 = vector.broadcast %563 : vector<16x1xf32> to vector<16x16xf32>
    %565 = arith.subf %561, %564 : vector<16x16xf32>
    %566 = math.exp %565 : vector<16x16xf32>
    %cst_318 = arith.constant dense<0.000000e+00> : vector<16xf32>
    %567 = vector.multi_reduction <add>, %566, %cst_318 [1] : vector<16x16xf32> to vector<16xf32>
    %568 = vector.shape_cast %567 : vector<16xf32> to vector<16x1xf32>
    %569 = tpu.reciprocal %568 {approx = true} : vector<16x1xf32> -> vector<16x1xf32>
    %570 = vector.broadcast %569 : vector<16x1xf32> to vector<16x16xf32>
    %571 = arith.mulf %566, %570 : vector<16x16xf32>
    %572 = arith.truncf %571 : vector<16x16xf32> to vector<16x16xbf16>
    %573 = vector.extract_strided_slice %554 {offsets = [0, 0], sizes = [16, 8], strides = [1, 1]} : vector<32x8xbf16> to vector<16x8xbf16>
    %cst_319 = arith.constant dense<0.000000e+00> : vector<16x8xf32>
    %574 = tpu.matmul %572, %573, %cst_319 {dimension_numbers = #tpu.dot_dimension_numbers<[1], [0], [0], [1], [0, 0, 1, 1], [], []>} : vector<16x16xbf16>, vector<16x8xbf16>, vector<16x8xf32> -> vector<16x8xf32>
    %575 = vector.extract_strided_slice %538 {offsets = [16, 0], sizes = [16, 8], strides = [1, 1]} : vector<32x8xbf16> to vector<16x8xbf16>
    %576 = vector.extract_strided_slice %546 {offsets = [16, 0], sizes = [16, 8], strides = [1, 1]} : vector<32x8xbf16> to vector<16x8xbf16>
    %cst_320 = arith.constant dense<0.000000e+00> : vector<16x16xf32>
    %577 = tpu.matmul %575, %576, %cst_320 {dimension_numbers = #tpu.dot_dimension_numbers<[1], [1], [0], [0], [0, 0, 1, 0], [], []>} : vector<16x8xbf16>, vector<16x8xbf16>, vector<16x16xf32> -> vector<16x16xf32>
    %cst_321 = arith.constant 0.353553385 : f32
    %578 = vector.broadcast %cst_321 : f32 to vector<16x16xf32>
    %579 = arith.mulf %577, %578 : vector<16x16xf32>
    %cst_322 = arith.constant -1.000000e+30 : f32
    %580 = vector.broadcast %cst_322 : f32 to vector<16x16xf32>
    %581 = arith.select %63, %579, %580 : vector<16x16xi1>, vector<16x16xf32>
    %cst_323 = arith.constant dense<0xFF800000> : vector<16xf32>
    %582 = vector.multi_reduction <maximumf>, %581, %cst_323 [1] : vector<16x16xf32> to vector<16xf32>
    %583 = vector.shape_cast %582 : vector<16xf32> to vector<16x1xf32>
    %584 = vector.broadcast %583 : vector<16x1xf32> to vector<16x16xf32>
    %585 = arith.subf %581, %584 : vector<16x16xf32>
    %586 = math.exp %585 : vector<16x16xf32>
    %cst_324 = arith.constant dense<0.000000e+00> : vector<16xf32>
    %587 = vector.multi_reduction <add>, %586, %cst_324 [1] : vector<16x16xf32> to vector<16xf32>
    %588 = vector.shape_cast %587 : vector<16xf32> to vector<16x1xf32>
    %589 = tpu.reciprocal %588 {approx = true} : vector<16x1xf32> -> vector<16x1xf32>
    %590 = vector.broadcast %589 : vector<16x1xf32> to vector<16x16xf32>
    %591 = arith.mulf %586, %590 : vector<16x16xf32>
    %592 = arith.truncf %591 : vector<16x16xf32> to vector<16x16xbf16>
    %593 = vector.extract_strided_slice %554 {offsets = [16, 0], sizes = [16, 8], strides = [1, 1]} : vector<32x8xbf16> to vector<16x8xbf16>
    %cst_325 = arith.constant dense<0.000000e+00> : vector<16x8xf32>
    %594 = tpu.matmul %592, %593, %cst_325 {dimension_numbers = #tpu.dot_dimension_numbers<[1], [0], [0], [1], [0, 0, 1, 1], [], []>} : vector<16x16xbf16>, vector<16x8xbf16>, vector<16x8xf32> -> vector<16x8xf32>
    %595 = tpu.concatenate %574, %594 in 0 : vector<16x8xf32>, vector<16x8xf32> -> vector<32x8xf32>
    %596 = arith.truncf %595 : vector<32x8xf32> to vector<32x8xbf16>
    %c5_326 = arith.constant 5 : index
    %c0_327 = arith.constant 0 : index
    %c0_328 = arith.constant 0 : index
    %597 = vector.load %arg15[%c5_326, %c0_327, %c0_328] : memref<8x8x32xbf16, #tpu.memory_space<vmem>>, vector<1x8x32xbf16>
    %598 = vector.shape_cast %597 : vector<1x8x32xbf16> to vector<8x32xbf16>
    %cst_329 = arith.constant dense<0.000000e+00> : vector<32x32xf32>
    %599 = tpu.matmul %596, %598, %cst_329 {dimension_numbers = #tpu.dot_dimension_numbers<[1], [0], [0], [1], [0, 0, 1, 1], [], []>} : vector<32x8xbf16>, vector<8x32xbf16>, vector<32x32xf32> -> vector<32x32xf32>
    %600 = arith.addf %530, %599 : vector<32x32xf32>
    %c6 = arith.constant 6 : index
    %c0_330 = arith.constant 0 : index
    %c0_331 = arith.constant 0 : index
    %601 = vector.load %arg9[%c6, %c0_330, %c0_331] : memref<8x32x8xbf16, #tpu.memory_space<vmem>>, vector<1x32x8xbf16>
    %602 = vector.shape_cast %601 : vector<1x32x8xbf16> to vector<32x8xbf16>
    %cst_332 = arith.constant dense<0.000000e+00> : vector<32x8xf32>
    %603 = tpu.matmul %459, %602, %cst_332 {dimension_numbers = #tpu.dot_dimension_numbers<[1], [0], [0], [1], [0, 0, 1, 1], [], []>} : vector<32x32xbf16>, vector<32x8xbf16>, vector<32x8xf32> -> vector<32x8xf32>
    %c6_333 = arith.constant 6 : index
    %c0_334 = arith.constant 0 : index
    %c0_335 = arith.constant 0 : index
    %604 = vector.load %arg10[%c6_333, %c0_334, %c0_335] : memref<8x1x8xf32, #tpu.memory_space<vmem>>, vector<1x1x8xf32>
    %605 = vector.shape_cast %604 : vector<1x1x8xf32> to vector<1x8xf32>
    %606 = vector.broadcast %605 : vector<1x8xf32> to vector<32x8xf32>
    %607 = arith.addf %603, %606 : vector<32x8xf32>
    %608 = arith.truncf %607 : vector<32x8xf32> to vector<32x8xbf16>
    %c6_336 = arith.constant 6 : index
    %c0_337 = arith.constant 0 : index
    %c0_338 = arith.constant 0 : index
    %609 = vector.load %arg11[%c6_336, %c0_337, %c0_338] : memref<8x32x8xbf16, #tpu.memory_space<vmem>>, vector<1x32x8xbf16>
    %610 = vector.shape_cast %609 : vector<1x32x8xbf16> to vector<32x8xbf16>
    %cst_339 = arith.constant dense<0.000000e+00> : vector<32x8xf32>
    %611 = tpu.matmul %459, %610, %cst_339 {dimension_numbers = #tpu.dot_dimension_numbers<[1], [0], [0], [1], [0, 0, 1, 1], [], []>} : vector<32x32xbf16>, vector<32x8xbf16>, vector<32x8xf32> -> vector<32x8xf32>
    %c6_340 = arith.constant 6 : index
    %c0_341 = arith.constant 0 : index
    %c0_342 = arith.constant 0 : index
    %612 = vector.load %arg12[%c6_340, %c0_341, %c0_342] : memref<8x1x8xf32, #tpu.memory_space<vmem>>, vector<1x1x8xf32>
    %613 = vector.shape_cast %612 : vector<1x1x8xf32> to vector<1x8xf32>
    %614 = vector.broadcast %613 : vector<1x8xf32> to vector<32x8xf32>
    %615 = arith.addf %611, %614 : vector<32x8xf32>
    %616 = arith.truncf %615 : vector<32x8xf32> to vector<32x8xbf16>
    %c6_343 = arith.constant 6 : index
    %c0_344 = arith.constant 0 : index
    %c0_345 = arith.constant 0 : index
    %617 = vector.load %arg13[%c6_343, %c0_344, %c0_345] : memref<8x32x8xbf16, #tpu.memory_space<vmem>>, vector<1x32x8xbf16>
    %618 = vector.shape_cast %617 : vector<1x32x8xbf16> to vector<32x8xbf16>
    %cst_346 = arith.constant dense<0.000000e+00> : vector<32x8xf32>
    %619 = tpu.matmul %459, %618, %cst_346 {dimension_numbers = #tpu.dot_dimension_numbers<[1], [0], [0], [1], [0, 0, 1, 1], [], []>} : vector<32x32xbf16>, vector<32x8xbf16>, vector<32x8xf32> -> vector<32x8xf32>
    %c6_347 = arith.constant 6 : index
    %c0_348 = arith.constant 0 : index
    %c0_349 = arith.constant 0 : index
    %620 = vector.load %arg14[%c6_347, %c0_348, %c0_349] : memref<8x1x8xf32, #tpu.memory_space<vmem>>, vector<1x1x8xf32>
    %621 = vector.shape_cast %620 : vector<1x1x8xf32> to vector<1x8xf32>
    %622 = vector.broadcast %621 : vector<1x8xf32> to vector<32x8xf32>
    %623 = arith.addf %619, %622 : vector<32x8xf32>
    %624 = arith.truncf %623 : vector<32x8xf32> to vector<32x8xbf16>
    %625 = vector.extract_strided_slice %608 {offsets = [0, 0], sizes = [16, 8], strides = [1, 1]} : vector<32x8xbf16> to vector<16x8xbf16>
    %626 = vector.extract_strided_slice %616 {offsets = [0, 0], sizes = [16, 8], strides = [1, 1]} : vector<32x8xbf16> to vector<16x8xbf16>
    %cst_350 = arith.constant dense<0.000000e+00> : vector<16x16xf32>
    %627 = tpu.matmul %625, %626, %cst_350 {dimension_numbers = #tpu.dot_dimension_numbers<[1], [1], [0], [0], [0, 0, 1, 0], [], []>} : vector<16x8xbf16>, vector<16x8xbf16>, vector<16x16xf32> -> vector<16x16xf32>
    %cst_351 = arith.constant 0.353553385 : f32
    %628 = vector.broadcast %cst_351 : f32 to vector<16x16xf32>
    %629 = arith.mulf %627, %628 : vector<16x16xf32>
    %cst_352 = arith.constant -1.000000e+30 : f32
    %630 = vector.broadcast %cst_352 : f32 to vector<16x16xf32>
    %631 = arith.select %63, %629, %630 : vector<16x16xi1>, vector<16x16xf32>
    %cst_353 = arith.constant dense<0xFF800000> : vector<16xf32>
    %632 = vector.multi_reduction <maximumf>, %631, %cst_353 [1] : vector<16x16xf32> to vector<16xf32>
    %633 = vector.shape_cast %632 : vector<16xf32> to vector<16x1xf32>
    %634 = vector.broadcast %633 : vector<16x1xf32> to vector<16x16xf32>
    %635 = arith.subf %631, %634 : vector<16x16xf32>
    %636 = math.exp %635 : vector<16x16xf32>
    %cst_354 = arith.constant dense<0.000000e+00> : vector<16xf32>
    %637 = vector.multi_reduction <add>, %636, %cst_354 [1] : vector<16x16xf32> to vector<16xf32>
    %638 = vector.shape_cast %637 : vector<16xf32> to vector<16x1xf32>
    %639 = tpu.reciprocal %638 {approx = true} : vector<16x1xf32> -> vector<16x1xf32>
    %640 = vector.broadcast %639 : vector<16x1xf32> to vector<16x16xf32>
    %641 = arith.mulf %636, %640 : vector<16x16xf32>
    %642 = arith.truncf %641 : vector<16x16xf32> to vector<16x16xbf16>
    %643 = vector.extract_strided_slice %624 {offsets = [0, 0], sizes = [16, 8], strides = [1, 1]} : vector<32x8xbf16> to vector<16x8xbf16>
    %cst_355 = arith.constant dense<0.000000e+00> : vector<16x8xf32>
    %644 = tpu.matmul %642, %643, %cst_355 {dimension_numbers = #tpu.dot_dimension_numbers<[1], [0], [0], [1], [0, 0, 1, 1], [], []>} : vector<16x16xbf16>, vector<16x8xbf16>, vector<16x8xf32> -> vector<16x8xf32>
    %645 = vector.extract_strided_slice %608 {offsets = [16, 0], sizes = [16, 8], strides = [1, 1]} : vector<32x8xbf16> to vector<16x8xbf16>
    %646 = vector.extract_strided_slice %616 {offsets = [16, 0], sizes = [16, 8], strides = [1, 1]} : vector<32x8xbf16> to vector<16x8xbf16>
    %cst_356 = arith.constant dense<0.000000e+00> : vector<16x16xf32>
    %647 = tpu.matmul %645, %646, %cst_356 {dimension_numbers = #tpu.dot_dimension_numbers<[1], [1], [0], [0], [0, 0, 1, 0], [], []>} : vector<16x8xbf16>, vector<16x8xbf16>, vector<16x16xf32> -> vector<16x16xf32>
    %cst_357 = arith.constant 0.353553385 : f32
    %648 = vector.broadcast %cst_357 : f32 to vector<16x16xf32>
    %649 = arith.mulf %647, %648 : vector<16x16xf32>
    %cst_358 = arith.constant -1.000000e+30 : f32
    %650 = vector.broadcast %cst_358 : f32 to vector<16x16xf32>
    %651 = arith.select %63, %649, %650 : vector<16x16xi1>, vector<16x16xf32>
    %cst_359 = arith.constant dense<0xFF800000> : vector<16xf32>
    %652 = vector.multi_reduction <maximumf>, %651, %cst_359 [1] : vector<16x16xf32> to vector<16xf32>
    %653 = vector.shape_cast %652 : vector<16xf32> to vector<16x1xf32>
    %654 = vector.broadcast %653 : vector<16x1xf32> to vector<16x16xf32>
    %655 = arith.subf %651, %654 : vector<16x16xf32>
    %656 = math.exp %655 : vector<16x16xf32>
    %cst_360 = arith.constant dense<0.000000e+00> : vector<16xf32>
    %657 = vector.multi_reduction <add>, %656, %cst_360 [1] : vector<16x16xf32> to vector<16xf32>
    %658 = vector.shape_cast %657 : vector<16xf32> to vector<16x1xf32>
    %659 = tpu.reciprocal %658 {approx = true} : vector<16x1xf32> -> vector<16x1xf32>
    %660 = vector.broadcast %659 : vector<16x1xf32> to vector<16x16xf32>
    %661 = arith.mulf %656, %660 : vector<16x16xf32>
    %662 = arith.truncf %661 : vector<16x16xf32> to vector<16x16xbf16>
    %663 = vector.extract_strided_slice %624 {offsets = [16, 0], sizes = [16, 8], strides = [1, 1]} : vector<32x8xbf16> to vector<16x8xbf16>
    %cst_361 = arith.constant dense<0.000000e+00> : vector<16x8xf32>
    %664 = tpu.matmul %662, %663, %cst_361 {dimension_numbers = #tpu.dot_dimension_numbers<[1], [0], [0], [1], [0, 0, 1, 1], [], []>} : vector<16x16xbf16>, vector<16x8xbf16>, vector<16x8xf32> -> vector<16x8xf32>
    %665 = tpu.concatenate %644, %664 in 0 : vector<16x8xf32>, vector<16x8xf32> -> vector<32x8xf32>
    %666 = arith.truncf %665 : vector<32x8xf32> to vector<32x8xbf16>
    %c6_362 = arith.constant 6 : index
    %c0_363 = arith.constant 0 : index
    %c0_364 = arith.constant 0 : index
    %667 = vector.load %arg15[%c6_362, %c0_363, %c0_364] : memref<8x8x32xbf16, #tpu.memory_space<vmem>>, vector<1x8x32xbf16>
    %668 = vector.shape_cast %667 : vector<1x8x32xbf16> to vector<8x32xbf16>
    %cst_365 = arith.constant dense<0.000000e+00> : vector<32x32xf32>
    %669 = tpu.matmul %666, %668, %cst_365 {dimension_numbers = #tpu.dot_dimension_numbers<[1], [0], [0], [1], [0, 0, 1, 1], [], []>} : vector<32x8xbf16>, vector<8x32xbf16>, vector<32x32xf32> -> vector<32x32xf32>
    %670 = arith.addf %600, %669 : vector<32x32xf32>
    %c7 = arith.constant 7 : index
    %c0_366 = arith.constant 0 : index
    %c0_367 = arith.constant 0 : index
    %671 = vector.load %arg9[%c7, %c0_366, %c0_367] : memref<8x32x8xbf16, #tpu.memory_space<vmem>>, vector<1x32x8xbf16>
    %672 = vector.shape_cast %671 : vector<1x32x8xbf16> to vector<32x8xbf16>
    %cst_368 = arith.constant dense<0.000000e+00> : vector<32x8xf32>
    %673 = tpu.matmul %459, %672, %cst_368 {dimension_numbers = #tpu.dot_dimension_numbers<[1], [0], [0], [1], [0, 0, 1, 1], [], []>} : vector<32x32xbf16>, vector<32x8xbf16>, vector<32x8xf32> -> vector<32x8xf32>
    %c7_369 = arith.constant 7 : index
    %c0_370 = arith.constant 0 : index
    %c0_371 = arith.constant 0 : index
    %674 = vector.load %arg10[%c7_369, %c0_370, %c0_371] : memref<8x1x8xf32, #tpu.memory_space<vmem>>, vector<1x1x8xf32>
    %675 = vector.shape_cast %674 : vector<1x1x8xf32> to vector<1x8xf32>
    %676 = vector.broadcast %675 : vector<1x8xf32> to vector<32x8xf32>
    %677 = arith.addf %673, %676 : vector<32x8xf32>
    %678 = arith.truncf %677 : vector<32x8xf32> to vector<32x8xbf16>
    %c7_372 = arith.constant 7 : index
    %c0_373 = arith.constant 0 : index
    %c0_374 = arith.constant 0 : index
    %679 = vector.load %arg11[%c7_372, %c0_373, %c0_374] : memref<8x32x8xbf16, #tpu.memory_space<vmem>>, vector<1x32x8xbf16>
    %680 = vector.shape_cast %679 : vector<1x32x8xbf16> to vector<32x8xbf16>
    %cst_375 = arith.constant dense<0.000000e+00> : vector<32x8xf32>
    %681 = tpu.matmul %459, %680, %cst_375 {dimension_numbers = #tpu.dot_dimension_numbers<[1], [0], [0], [1], [0, 0, 1, 1], [], []>} : vector<32x32xbf16>, vector<32x8xbf16>, vector<32x8xf32> -> vector<32x8xf32>
    %c7_376 = arith.constant 7 : index
    %c0_377 = arith.constant 0 : index
    %c0_378 = arith.constant 0 : index
    %682 = vector.load %arg12[%c7_376, %c0_377, %c0_378] : memref<8x1x8xf32, #tpu.memory_space<vmem>>, vector<1x1x8xf32>
    %683 = vector.shape_cast %682 : vector<1x1x8xf32> to vector<1x8xf32>
    %684 = vector.broadcast %683 : vector<1x8xf32> to vector<32x8xf32>
    %685 = arith.addf %681, %684 : vector<32x8xf32>
    %686 = arith.truncf %685 : vector<32x8xf32> to vector<32x8xbf16>
    %c7_379 = arith.constant 7 : index
    %c0_380 = arith.constant 0 : index
    %c0_381 = arith.constant 0 : index
    %687 = vector.load %arg13[%c7_379, %c0_380, %c0_381] : memref<8x32x8xbf16, #tpu.memory_space<vmem>>, vector<1x32x8xbf16>
    %688 = vector.shape_cast %687 : vector<1x32x8xbf16> to vector<32x8xbf16>
    %cst_382 = arith.constant dense<0.000000e+00> : vector<32x8xf32>
    %689 = tpu.matmul %459, %688, %cst_382 {dimension_numbers = #tpu.dot_dimension_numbers<[1], [0], [0], [1], [0, 0, 1, 1], [], []>} : vector<32x32xbf16>, vector<32x8xbf16>, vector<32x8xf32> -> vector<32x8xf32>
    %c7_383 = arith.constant 7 : index
    %c0_384 = arith.constant 0 : index
    %c0_385 = arith.constant 0 : index
    %690 = vector.load %arg14[%c7_383, %c0_384, %c0_385] : memref<8x1x8xf32, #tpu.memory_space<vmem>>, vector<1x1x8xf32>
    %691 = vector.shape_cast %690 : vector<1x1x8xf32> to vector<1x8xf32>
    %692 = vector.broadcast %691 : vector<1x8xf32> to vector<32x8xf32>
    %693 = arith.addf %689, %692 : vector<32x8xf32>
    %694 = arith.truncf %693 : vector<32x8xf32> to vector<32x8xbf16>
    %695 = vector.extract_strided_slice %678 {offsets = [0, 0], sizes = [16, 8], strides = [1, 1]} : vector<32x8xbf16> to vector<16x8xbf16>
    %696 = vector.extract_strided_slice %686 {offsets = [0, 0], sizes = [16, 8], strides = [1, 1]} : vector<32x8xbf16> to vector<16x8xbf16>
    %cst_386 = arith.constant dense<0.000000e+00> : vector<16x16xf32>
    %697 = tpu.matmul %695, %696, %cst_386 {dimension_numbers = #tpu.dot_dimension_numbers<[1], [1], [0], [0], [0, 0, 1, 0], [], []>} : vector<16x8xbf16>, vector<16x8xbf16>, vector<16x16xf32> -> vector<16x16xf32>
    %cst_387 = arith.constant 0.353553385 : f32
    %698 = vector.broadcast %cst_387 : f32 to vector<16x16xf32>
    %699 = arith.mulf %697, %698 : vector<16x16xf32>
    %cst_388 = arith.constant -1.000000e+30 : f32
    %700 = vector.broadcast %cst_388 : f32 to vector<16x16xf32>
    %701 = arith.select %63, %699, %700 : vector<16x16xi1>, vector<16x16xf32>
    %cst_389 = arith.constant dense<0xFF800000> : vector<16xf32>
    %702 = vector.multi_reduction <maximumf>, %701, %cst_389 [1] : vector<16x16xf32> to vector<16xf32>
    %703 = vector.shape_cast %702 : vector<16xf32> to vector<16x1xf32>
    %704 = vector.broadcast %703 : vector<16x1xf32> to vector<16x16xf32>
    %705 = arith.subf %701, %704 : vector<16x16xf32>
    %706 = math.exp %705 : vector<16x16xf32>
    %cst_390 = arith.constant dense<0.000000e+00> : vector<16xf32>
    %707 = vector.multi_reduction <add>, %706, %cst_390 [1] : vector<16x16xf32> to vector<16xf32>
    %708 = vector.shape_cast %707 : vector<16xf32> to vector<16x1xf32>
    %709 = tpu.reciprocal %708 {approx = true} : vector<16x1xf32> -> vector<16x1xf32>
    %710 = vector.broadcast %709 : vector<16x1xf32> to vector<16x16xf32>
    %711 = arith.mulf %706, %710 : vector<16x16xf32>
    %712 = arith.truncf %711 : vector<16x16xf32> to vector<16x16xbf16>
    %713 = vector.extract_strided_slice %694 {offsets = [0, 0], sizes = [16, 8], strides = [1, 1]} : vector<32x8xbf16> to vector<16x8xbf16>
    %cst_391 = arith.constant dense<0.000000e+00> : vector<16x8xf32>
    %714 = tpu.matmul %712, %713, %cst_391 {dimension_numbers = #tpu.dot_dimension_numbers<[1], [0], [0], [1], [0, 0, 1, 1], [], []>} : vector<16x16xbf16>, vector<16x8xbf16>, vector<16x8xf32> -> vector<16x8xf32>
    %715 = vector.extract_strided_slice %678 {offsets = [16, 0], sizes = [16, 8], strides = [1, 1]} : vector<32x8xbf16> to vector<16x8xbf16>
    %716 = vector.extract_strided_slice %686 {offsets = [16, 0], sizes = [16, 8], strides = [1, 1]} : vector<32x8xbf16> to vector<16x8xbf16>
    %cst_392 = arith.constant dense<0.000000e+00> : vector<16x16xf32>
    %717 = tpu.matmul %715, %716, %cst_392 {dimension_numbers = #tpu.dot_dimension_numbers<[1], [1], [0], [0], [0, 0, 1, 0], [], []>} : vector<16x8xbf16>, vector<16x8xbf16>, vector<16x16xf32> -> vector<16x16xf32>
    %cst_393 = arith.constant 0.353553385 : f32
    %718 = vector.broadcast %cst_393 : f32 to vector<16x16xf32>
    %719 = arith.mulf %717, %718 : vector<16x16xf32>
    %cst_394 = arith.constant -1.000000e+30 : f32
    %720 = vector.broadcast %cst_394 : f32 to vector<16x16xf32>
    %721 = arith.select %63, %719, %720 : vector<16x16xi1>, vector<16x16xf32>
    %cst_395 = arith.constant dense<0xFF800000> : vector<16xf32>
    %722 = vector.multi_reduction <maximumf>, %721, %cst_395 [1] : vector<16x16xf32> to vector<16xf32>
    %723 = vector.shape_cast %722 : vector<16xf32> to vector<16x1xf32>
    %724 = vector.broadcast %723 : vector<16x1xf32> to vector<16x16xf32>
    %725 = arith.subf %721, %724 : vector<16x16xf32>
    %726 = math.exp %725 : vector<16x16xf32>
    %cst_396 = arith.constant dense<0.000000e+00> : vector<16xf32>
    %727 = vector.multi_reduction <add>, %726, %cst_396 [1] : vector<16x16xf32> to vector<16xf32>
    %728 = vector.shape_cast %727 : vector<16xf32> to vector<16x1xf32>
    %729 = tpu.reciprocal %728 {approx = true} : vector<16x1xf32> -> vector<16x1xf32>
    %730 = vector.broadcast %729 : vector<16x1xf32> to vector<16x16xf32>
    %731 = arith.mulf %726, %730 : vector<16x16xf32>
    %732 = arith.truncf %731 : vector<16x16xf32> to vector<16x16xbf16>
    %733 = vector.extract_strided_slice %694 {offsets = [16, 0], sizes = [16, 8], strides = [1, 1]} : vector<32x8xbf16> to vector<16x8xbf16>
    %cst_397 = arith.constant dense<0.000000e+00> : vector<16x8xf32>
    %734 = tpu.matmul %732, %733, %cst_397 {dimension_numbers = #tpu.dot_dimension_numbers<[1], [0], [0], [1], [0, 0, 1, 1], [], []>} : vector<16x16xbf16>, vector<16x8xbf16>, vector<16x8xf32> -> vector<16x8xf32>
    %735 = tpu.concatenate %714, %734 in 0 : vector<16x8xf32>, vector<16x8xf32> -> vector<32x8xf32>
    %736 = arith.truncf %735 : vector<32x8xf32> to vector<32x8xbf16>
    %c7_398 = arith.constant 7 : index
    %c0_399 = arith.constant 0 : index
    %c0_400 = arith.constant 0 : index
    %737 = vector.load %arg15[%c7_398, %c0_399, %c0_400] : memref<8x8x32xbf16, #tpu.memory_space<vmem>>, vector<1x8x32xbf16>
    %738 = vector.shape_cast %737 : vector<1x8x32xbf16> to vector<8x32xbf16>
    %cst_401 = arith.constant dense<0.000000e+00> : vector<32x32xf32>
    %739 = tpu.matmul %736, %738, %cst_401 {dimension_numbers = #tpu.dot_dimension_numbers<[1], [0], [0], [1], [0, 0, 1, 1], [], []>} : vector<32x8xbf16>, vector<8x32xbf16>, vector<32x32xf32> -> vector<32x32xf32>
    %740 = arith.addf %670, %739 : vector<32x32xf32>
    %741 = arith.addf %432, %740 : vector<32x32xf32>
    %c1_402 = arith.constant 1 : index
    %c0_403 = arith.constant 0 : index
    %c0_404 = arith.constant 0 : index
    %742 = vector.load %arg16[%c1_402, %c0_403, %c0_404] : memref<2x1x32xf32, #tpu.memory_space<vmem>>, vector<1x1x32xf32>
    %743 = vector.shape_cast %742 : vector<1x1x32xf32> to vector<1x32xf32>
    %744 = vector.broadcast %743 : vector<1x32xf32> to vector<32x32xf32>
    %745 = arith.addf %741, %744 : vector<32x32xf32>
    %c1_405 = arith.constant 1 : index
    %c0_406 = arith.constant 0 : index
    %c0_407 = arith.constant 0 : index
    %746 = vector.load %arg17[%c1_405, %c0_406, %c0_407] : memref<2x1x32xf32, #tpu.memory_space<vmem>>, vector<1x1x32xf32>
    %747 = vector.shape_cast %746 : vector<1x1x32xf32> to vector<1x32xf32>
    %c1_408 = arith.constant 1 : index
    %c0_409 = arith.constant 0 : index
    %c0_410 = arith.constant 0 : index
    %748 = vector.load %arg18[%c1_408, %c0_409, %c0_410] : memref<2x1x32xf32, #tpu.memory_space<vmem>>, vector<1x1x32xf32>
    %749 = vector.shape_cast %748 : vector<1x1x32xf32> to vector<1x32xf32>
    %cst_411 = arith.constant dense<0.000000e+00> : vector<32xf32>
    %750 = vector.multi_reduction <add>, %745, %cst_411 [1] : vector<32x32xf32> to vector<32xf32>
    %751 = vector.shape_cast %750 : vector<32xf32> to vector<32x1xf32>
    %cst_412 = arith.constant 3.200000e+01 : f32
    %752 = vector.broadcast %cst_412 : f32 to vector<32x1xf32>
    %753 = arith.divf %751, %752 : vector<32x1xf32>
    %754 = vector.broadcast %753 : vector<32x1xf32> to vector<32x32xf32>
    %755 = arith.subf %745, %754 : vector<32x32xf32>
    %756 = arith.mulf %755, %755 : vector<32x32xf32>
    %cst_413 = arith.constant dense<0.000000e+00> : vector<32xf32>
    %757 = vector.multi_reduction <add>, %756, %cst_413 [1] : vector<32x32xf32> to vector<32xf32>
    %758 = vector.shape_cast %757 : vector<32xf32> to vector<32x1xf32>
    %cst_414 = arith.constant 3.200000e+01 : f32
    %759 = vector.broadcast %cst_414 : f32 to vector<32x1xf32>
    %760 = arith.divf %758, %759 : vector<32x1xf32>
    %761 = vector.broadcast %753 : vector<32x1xf32> to vector<32x32xf32>
    %762 = arith.subf %745, %761 : vector<32x32xf32>
    %cst_415 = arith.constant 9.99999974E-6 : f32
    %763 = vector.broadcast %cst_415 : f32 to vector<32x1xf32>
    %764 = arith.addf %760, %763 : vector<32x1xf32>
    %765 = math.rsqrt %764 : vector<32x1xf32>
    %766 = vector.broadcast %765 : vector<32x1xf32> to vector<32x32xf32>
    %767 = arith.mulf %762, %766 : vector<32x32xf32>
    %768 = vector.broadcast %747 : vector<1x32xf32> to vector<32x32xf32>
    %769 = arith.mulf %767, %768 : vector<32x32xf32>
    %770 = vector.broadcast %749 : vector<1x32xf32> to vector<32x32xf32>
    %771 = arith.addf %769, %770 : vector<32x32xf32>
    %772 = arith.truncf %771 : vector<32x32xf32> to vector<32x32xbf16>
    %c1_416 = arith.constant 1 : index
    %c0_417 = arith.constant 0 : index
    %c0_418 = arith.constant 0 : index
    %773 = vector.load %arg19[%c1_416, %c0_417, %c0_418] : memref<2x32x128xbf16, #tpu.memory_space<vmem>>, vector<1x32x128xbf16>
    %774 = vector.shape_cast %773 : vector<1x32x128xbf16> to vector<32x128xbf16>
    %cst_419 = arith.constant dense<0.000000e+00> : vector<32x128xf32>
    %775 = tpu.matmul %772, %774, %cst_419 {dimension_numbers = #tpu.dot_dimension_numbers<[1], [0], [0], [1], [0, 0, 1, 1], [], []>} : vector<32x32xbf16>, vector<32x128xbf16>, vector<32x128xf32> -> vector<32x128xf32>
    %c1_420 = arith.constant 1 : index
    %c0_421 = arith.constant 0 : index
    %c0_422 = arith.constant 0 : index
    %776 = vector.load %arg20[%c1_420, %c0_421, %c0_422] : memref<2x1x128xf32, #tpu.memory_space<vmem>>, vector<1x1x128xf32>
    %777 = vector.shape_cast %776 : vector<1x1x128xf32> to vector<1x128xf32>
    %778 = vector.broadcast %777 : vector<1x128xf32> to vector<32x128xf32>
    %779 = arith.addf %775, %778 : vector<32x128xf32>
    %cst_423 = arith.constant 5.000000e-01 : f32
    %780 = vector.broadcast %cst_423 : f32 to vector<32x128xf32>
    %781 = arith.mulf %780, %779 : vector<32x128xf32>
    %cst_424 = arith.constant 4.471500e-02 : f32
    %782 = vector.broadcast %cst_424 : f32 to vector<32x128xf32>
    %783 = arith.mulf %782, %779 : vector<32x128xf32>
    %784 = arith.mulf %783, %779 : vector<32x128xf32>
    %785 = arith.mulf %784, %779 : vector<32x128xf32>
    %786 = arith.addf %779, %785 : vector<32x128xf32>
    %cst_425 = arith.constant 0.797884583 : f32
    %787 = vector.broadcast %cst_425 : f32 to vector<32x128xf32>
    %788 = arith.mulf %787, %786 : vector<32x128xf32>
    %789 = math.tanh %788 : vector<32x128xf32>
    %cst_426 = arith.constant 1.000000e+00 : f32
    %790 = vector.broadcast %cst_426 : f32 to vector<32x128xf32>
    %791 = arith.addf %790, %789 : vector<32x128xf32>
    %792 = arith.mulf %781, %791 : vector<32x128xf32>
    %793 = arith.truncf %792 : vector<32x128xf32> to vector<32x128xbf16>
    %c1_427 = arith.constant 1 : index
    %c0_428 = arith.constant 0 : index
    %c0_429 = arith.constant 0 : index
    %794 = vector.load %arg21[%c1_427, %c0_428, %c0_429] : memref<2x128x32xbf16, #tpu.memory_space<vmem>>, vector<1x128x32xbf16>
    %795 = vector.shape_cast %794 : vector<1x128x32xbf16> to vector<128x32xbf16>
    %cst_430 = arith.constant dense<0.000000e+00> : vector<32x32xf32>
    %796 = tpu.matmul %793, %795, %cst_430 {dimension_numbers = #tpu.dot_dimension_numbers<[1], [0], [0], [1], [0, 0, 1, 1], [], []>} : vector<32x128xbf16>, vector<128x32xbf16>, vector<32x32xf32> -> vector<32x32xf32>
    %797 = arith.addf %745, %796 : vector<32x32xf32>
    %c1_431 = arith.constant 1 : index
    %c0_432 = arith.constant 0 : index
    %c0_433 = arith.constant 0 : index
    %798 = vector.load %arg22[%c1_431, %c0_432, %c0_433] : memref<2x1x32xf32, #tpu.memory_space<vmem>>, vector<1x1x32xf32>
    %799 = vector.shape_cast %798 : vector<1x1x32xf32> to vector<1x32xf32>
    %800 = vector.broadcast %799 : vector<1x32xf32> to vector<32x32xf32>
    %801 = arith.addf %797, %800 : vector<32x32xf32>
    %c0_434 = arith.constant 0 : index
    %c0_435 = arith.constant 0 : index
    %802 = vector.load %arg23[%c0_434, %c0_435] : memref<1x32xf32, #tpu.memory_space<vmem>>, vector<1x32xf32>
    %c0_436 = arith.constant 0 : index
    %c0_437 = arith.constant 0 : index
    %803 = vector.load %arg24[%c0_436, %c0_437] : memref<1x32xf32, #tpu.memory_space<vmem>>, vector<1x32xf32>
    %cst_438 = arith.constant dense<0.000000e+00> : vector<32xf32>
    %804 = vector.multi_reduction <add>, %801, %cst_438 [1] : vector<32x32xf32> to vector<32xf32>
    %805 = vector.shape_cast %804 : vector<32xf32> to vector<32x1xf32>
    %cst_439 = arith.constant 3.200000e+01 : f32
    %806 = vector.broadcast %cst_439 : f32 to vector<32x1xf32>
    %807 = arith.divf %805, %806 : vector<32x1xf32>
    %808 = vector.broadcast %807 : vector<32x1xf32> to vector<32x32xf32>
    %809 = arith.subf %801, %808 : vector<32x32xf32>
    %810 = arith.mulf %809, %809 : vector<32x32xf32>
    %cst_440 = arith.constant dense<0.000000e+00> : vector<32xf32>
    %811 = vector.multi_reduction <add>, %810, %cst_440 [1] : vector<32x32xf32> to vector<32xf32>
    %812 = vector.shape_cast %811 : vector<32xf32> to vector<32x1xf32>
    %cst_441 = arith.constant 3.200000e+01 : f32
    %813 = vector.broadcast %cst_441 : f32 to vector<32x1xf32>
    %814 = arith.divf %812, %813 : vector<32x1xf32>
    %815 = vector.broadcast %807 : vector<32x1xf32> to vector<32x32xf32>
    %816 = arith.subf %801, %815 : vector<32x32xf32>
    %cst_442 = arith.constant 9.99999974E-6 : f32
    %817 = vector.broadcast %cst_442 : f32 to vector<32x1xf32>
    %818 = arith.addf %814, %817 : vector<32x1xf32>
    %819 = math.rsqrt %818 : vector<32x1xf32>
    %820 = vector.broadcast %819 : vector<32x1xf32> to vector<32x32xf32>
    %821 = arith.mulf %816, %820 : vector<32x32xf32>
    %822 = vector.broadcast %802 : vector<1x32xf32> to vector<32x32xf32>
    %823 = arith.mulf %821, %822 : vector<32x32xf32>
    %824 = vector.broadcast %803 : vector<1x32xf32> to vector<32x32xf32>
    %825 = arith.addf %823, %824 : vector<32x32xf32>
    %826 = arith.truncf %825 : vector<32x32xf32> to vector<32x32xbf16>
    %c0_443 = arith.constant 0 : index
    %c0_444 = arith.constant 0 : index
    %827 = vector.load %arg25[%c0_443, %c0_444] : memref<32x128xbf16, #tpu.memory_space<vmem>>, vector<32x128xbf16>
    %cst_445 = arith.constant dense<0.000000e+00> : vector<32x128xf32>
    %828 = tpu.matmul %826, %827, %cst_445 {dimension_numbers = #tpu.dot_dimension_numbers<[1], [0], [0], [1], [0, 0, 1, 1], [], []>} : vector<32x32xbf16>, vector<32x128xbf16>, vector<32x128xf32> -> vector<32x128xf32>
    %829 = vector.extract_strided_slice %828 {offsets = [0, 0], sizes = [16, 128], strides = [1, 1]} : vector<32x128xf32> to vector<16x128xf32>
    %c0_446 = arith.constant 0 : index
    %c0_447 = arith.constant 0 : index
    %c0_448 = arith.constant 0 : index
    %830 = vector.load %arg26[%c0_446, %c0_447, %c0_448] : memref<2x16x128xf32, #tpu.memory_space<vmem>>, vector<1x16x128xf32>
    %831 = vector.shape_cast %830 : vector<1x16x128xf32> to vector<16x128xf32>
    %832 = vector.shape_cast %829 : vector<16x128xf32> to vector<1x16x128xf32>
    tpu.vector_store %arg26[%c0_446, %c0_447, %c0_448], %832 {strides = array<i32>} : memref<2x16x128xf32, #tpu.memory_space<vmem>>, vector<1x16x128xf32>,
    %833 = vector.extract_strided_slice %828 {offsets = [16, 0], sizes = [16, 128], strides = [1, 1]} : vector<32x128xf32> to vector<16x128xf32>
    %c1_449 = arith.constant 1 : index
    %c0_450 = arith.constant 0 : index
    %c0_451 = arith.constant 0 : index
    %834 = vector.load %arg26[%c1_449, %c0_450, %c0_451] : memref<2x16x128xf32, #tpu.memory_space<vmem>>, vector<1x16x128xf32>
    %835 = vector.shape_cast %834 : vector<1x16x128xf32> to vector<16x128xf32>
    %836 = vector.shape_cast %833 : vector<16x128xf32> to vector<1x16x128xf32>
    tpu.vector_store %arg26[%c1_449, %c0_450, %c0_451], %836 {strides = array<i32>} : memref<2x16x128xf32, #tpu.memory_space<vmem>>, vector<1x16x128xf32>,
    return
  }
  func.func @transform_0(%arg0: i32) -> (i32, i32, i32) {
    %c0_i32 = arith.constant 0 : i32
    %c0_i32_0 = arith.constant 0 : i32
    %c0_i32_1 = arith.constant 0 : i32
    return %arg0, %c0_i32, %c0_i32_0 : i32, i32, i32
  }
  func.func @transform_1(%arg0: i32) -> (i32, i32, i32) {
    %c0_i32 = arith.constant 0 : i32
    %c0_i32_0 = arith.constant 0 : i32
    %c0_i32_1 = arith.constant 0 : i32
    return %arg0, %c0_i32, %c0_i32_0 : i32, i32, i32
  }
  func.func @transform_2(%arg0: i32) -> (i32, i32) {
    %c0_i32 = arith.constant 0 : i32
    %c0_i32_0 = arith.constant 0 : i32
    %c0_i32_1 = arith.constant 0 : i32
    return %c0_i32, %c0_i32_0 : i32, i32
  }
  func.func @transform_3(%arg0: i32) -> (i32, i32) {
    %c0_i32 = arith.constant 0 : i32
    %c0_i32_0 = arith.constant 0 : i32
    %c0_i32_1 = arith.constant 0 : i32
    return %c0_i32, %c0_i32_0 : i32, i32
  }
  func.func @transform_4(%arg0: i32) -> (i32, i32, i32) {
    %c0_i32 = arith.constant 0 : i32
    %c0_i32_0 = arith.constant 0 : i32
    %c0_i32_1 = arith.constant 0 : i32
    %c0_i32_2 = arith.constant 0 : i32
    return %c0_i32, %c0_i32_0, %c0_i32_1 : i32, i32, i32
  }
  func.func @transform_5(%arg0: i32) -> (i32, i32, i32) {
    %c0_i32 = arith.constant 0 : i32
    %c0_i32_0 = arith.constant 0 : i32
    %c0_i32_1 = arith.constant 0 : i32
    %c0_i32_2 = arith.constant 0 : i32
    return %c0_i32, %c0_i32_0, %c0_i32_1 : i32, i32, i32
  }
  func.func @transform_6(%arg0: i32) -> (i32, i32, i32) {
    %c0_i32 = arith.constant 0 : i32
    %c0_i32_0 = arith.constant 0 : i32
    %c0_i32_1 = arith.constant 0 : i32
    %c0_i32_2 = arith.constant 0 : i32
    return %c0_i32, %c0_i32_0, %c0_i32_1 : i32, i32, i32
  }
  func.func @transform_7(%arg0: i32) -> (i32, i32, i32) {
    %c0_i32 = arith.constant 0 : i32
    %c0_i32_0 = arith.constant 0 : i32
    %c0_i32_1 = arith.constant 0 : i32
    %c0_i32_2 = arith.constant 0 : i32
    return %c0_i32, %c0_i32_0, %c0_i32_1 : i32, i32, i32
  }
  func.func @transform_8(%arg0: i32) -> (i32, i32, i32) {
    %c0_i32 = arith.constant 0 : i32
    %c0_i32_0 = arith.constant 0 : i32
    %c0_i32_1 = arith.constant 0 : i32
    %c0_i32_2 = arith.constant 0 : i32
    return %c0_i32, %c0_i32_0, %c0_i32_1 : i32, i32, i32
  }
  func.func @transform_9(%arg0: i32) -> (i32, i32, i32) {
    %c0_i32 = arith.constant 0 : i32
    %c0_i32_0 = arith.constant 0 : i32
    %c0_i32_1 = arith.constant 0 : i32
    %c0_i32_2 = arith.constant 0 : i32
    return %c0_i32, %c0_i32_0, %c0_i32_1 : i32, i32, i32
  }
  func.func @transform_10(%arg0: i32) -> (i32, i32, i32) {
    %c0_i32 = arith.constant 0 : i32
    %c0_i32_0 = arith.constant 0 : i32
    %c0_i32_1 = arith.constant 0 : i32
    %c0_i32_2 = arith.constant 0 : i32
    return %c0_i32, %c0_i32_0, %c0_i32_1 : i32, i32, i32
  }
  func.func @transform_11(%arg0: i32) -> (i32, i32, i32) {
    %c0_i32 = arith.constant 0 : i32
    %c0_i32_0 = arith.constant 0 : i32
    %c0_i32_1 = arith.constant 0 : i32
    %c0_i32_2 = arith.constant 0 : i32
    return %c0_i32, %c0_i32_0, %c0_i32_1 : i32, i32, i32
  }
  func.func @transform_12(%arg0: i32) -> (i32, i32, i32) {
    %c0_i32 = arith.constant 0 : i32
    %c0_i32_0 = arith.constant 0 : i32
    %c0_i32_1 = arith.constant 0 : i32
    %c0_i32_2 = arith.constant 0 : i32
    return %c0_i32, %c0_i32_0, %c0_i32_1 : i32, i32, i32
  }
  func.func @transform_13(%arg0: i32) -> (i32, i32, i32) {
    %c0_i32 = arith.constant 0 : i32
    %c0_i32_0 = arith.constant 0 : i32
    %c0_i32_1 = arith.constant 0 : i32
    %c0_i32_2 = arith.constant 0 : i32
    return %c0_i32, %c0_i32_0, %c0_i32_1 : i32, i32, i32
  }
  func.func @transform_14(%arg0: i32) -> (i32, i32, i32) {
    %c0_i32 = arith.constant 0 : i32
    %c0_i32_0 = arith.constant 0 : i32
    %c0_i32_1 = arith.constant 0 : i32
    %c0_i32_2 = arith.constant 0 : i32
    return %c0_i32, %c0_i32_0, %c0_i32_1 : i32, i32, i32
  }
  func.func @transform_15(%arg0: i32) -> (i32, i32, i32) {
    %c0_i32 = arith.constant 0 : i32
    %c0_i32_0 = arith.constant 0 : i32
    %c0_i32_1 = arith.constant 0 : i32
    %c0_i32_2 = arith.constant 0 : i32
    return %c0_i32, %c0_i32_0, %c0_i32_1 : i32, i32, i32
  }
  func.func @transform_16(%arg0: i32) -> (i32, i32, i32) {
    %c0_i32 = arith.constant 0 : i32
    %c0_i32_0 = arith.constant 0 : i32
    %c0_i32_1 = arith.constant 0 : i32
    %c0_i32_2 = arith.constant 0 : i32
    return %c0_i32, %c0_i32_0, %c0_i32_1 : i32, i32, i32
  }
  func.func @transform_17(%arg0: i32) -> (i32, i32, i32) {
    %c0_i32 = arith.constant 0 : i32
    %c0_i32_0 = arith.constant 0 : i32
    %c0_i32_1 = arith.constant 0 : i32
    %c0_i32_2 = arith.constant 0 : i32
    return %c0_i32, %c0_i32_0, %c0_i32_1 : i32, i32, i32
  }
  func.func @transform_18(%arg0: i32) -> (i32, i32, i32) {
    %c0_i32 = arith.constant 0 : i32
    %c0_i32_0 = arith.constant 0 : i32
    %c0_i32_1 = arith.constant 0 : i32
    %c0_i32_2 = arith.constant 0 : i32
    return %c0_i32, %c0_i32_0, %c0_i32_1 : i32, i32, i32
  }
  func.func @transform_19(%arg0: i32) -> (i32, i32, i32) {
    %c0_i32 = arith.constant 0 : i32
    %c0_i32_0 = arith.constant 0 : i32
    %c0_i32_1 = arith.constant 0 : i32
    %c0_i32_2 = arith.constant 0 : i32
    return %c0_i32, %c0_i32_0, %c0_i32_1 : i32, i32, i32
  }
  func.func @transform_20(%arg0: i32) -> (i32, i32, i32) {
    %c0_i32 = arith.constant 0 : i32
    %c0_i32_0 = arith.constant 0 : i32
    %c0_i32_1 = arith.constant 0 : i32
    %c0_i32_2 = arith.constant 0 : i32
    return %c0_i32, %c0_i32_0, %c0_i32_1 : i32, i32, i32
  }
  func.func @transform_21(%arg0: i32) -> (i32, i32, i32) {
    %c0_i32 = arith.constant 0 : i32
    %c0_i32_0 = arith.constant 0 : i32
    %c0_i32_1 = arith.constant 0 : i32
    %c0_i32_2 = arith.constant 0 : i32
    return %c0_i32, %c0_i32_0, %c0_i32_1 : i32, i32, i32
  }
  func.func @transform_22(%arg0: i32) -> (i32, i32) {
    %c0_i32 = arith.constant 0 : i32
    %c0_i32_0 = arith.constant 0 : i32
    %c0_i32_1 = arith.constant 0 : i32
    return %c0_i32, %c0_i32_0 : i32, i32
  }
  func.func @transform_23(%arg0: i32) -> (i32, i32) {
    %c0_i32 = arith.constant 0 : i32
    %c0_i32_0 = arith.constant 0 : i32
    %c0_i32_1 = arith.constant 0 : i32
    return %c0_i32, %c0_i32_0 : i32, i32
  }
  func.func @transform_24(%arg0: i32) -> (i32, i32) {
    %c0_i32 = arith.constant 0 : i32
    %c0_i32_0 = arith.constant 0 : i32
    %c0_i32_1 = arith.constant 0 : i32
    return %c0_i32, %c0_i32_0 : i32, i32
  }
  func.func @transform_25(%arg0: i32) -> (i32, i32, i32) {
    %c0_i32 = arith.constant 0 : i32
    %c0_i32_0 = arith.constant 0 : i32
    %c0_i32_1 = arith.constant 0 : i32
    return %arg0, %c0_i32, %c0_i32_0 : i32, i32, i32
  }
}

</mosaic_0001>

<bundles_post_ra>
// kernel: clip_caption_forward.1
= control target key start
LH: loop header
LB: loop body
LE: loop exit
PB: predicated region body
PF: predicated region fallthrough
CT: control target
= control target key end

     0   :  { %s9556_s0 = inlined_call_operand.vmem [shape: f32[4,1,64], index: 0, kind: input, shape index: {}]   ;;  %s9557_s1 = inlined_call_operand.vmem [shape: f32[4,12,32], index: 1, kind: input, shape index: {}]   ;;  %s9558_s2 = inlined_call_operand.vmem [shape: bf16[64,64], index: 2, kind: input, shape index: {}]   ;;  %s9559_s3 = inlined_call_operand.vmem [shape: f32[1,64], index: 3, kind: input, shape index: {}]   ;;  %s9560_s4 = inlined_call_operand.vmem [shape: bf16[4,64,32], index: 4, kind: input, shape index: {}]   ;;  %s9561_s5 = inlined_call_operand.vmem [shape: f32[4,1,32], index: 5, kind: input, shape index: {}]   ;;  %s9562_s6 = inlined_call_operand.vmem [shape: f32[2,1,32], index: 6, kind: input, shape index: {}]   ;;  %s9563_s7 = inlined_call_operand.vmem [shape: f32[2,1,32], index: 7, kind: input, shape index: {}]   ;;  %s9564_s8 = inlined_call_operand.vmem [shape: bf16[8,32,8], index: 8, kind: input, shape index: {}]   ;;  %s9565_s9 = inlined_call_operand.vmem [shape: f32[8,1,8], index: 9, kind: input, shape index: {}]   ;;  %s9566_s10 = inlined_call_operand.vmem [shape: bf16[8,32,8], index: 10, kind: input, shape index: {}]   ;;  %s9567_s11 = inlined_call_operand.vmem [shape: f32[8,1,8], index: 11, kind: input, shape index: {}]   ;;  %s9568_s12 = inlined_call_operand.vmem [shape: bf16[8,32,8], index: 12, kind: input, shape index: {}]   ;;  %s9569_s13 = inlined_call_operand.vmem [shape: f32[8,1,8], index: 13, kind: input, shape index: {}]   ;;  %s9570_s14 = inlined_call_operand.vmem [shape: bf16[8,8,32], index: 14, kind: input, shape index: {}]   ;;  %s9571_s15 = inlined_call_operand.vmem [shape: f32[2,1,32], index: 15, kind: input, shape index: {}]   ;;  %s9572_s16 = inlined_call_operand.vmem [shape: f32[2,1,32], index: 16, kind: input, shape index: {}]   ;;  %s9573_s17 = inlined_call_operand.vmem [shape: f32[2,1,32], index: 17, kind: input, shape index: {}]   ;;  %s9574_s18 = inlined_call_operand.vmem [shape: bf16[2,32,128], index: 18, kind: input, shape index: {}]   ;;  %s9575_s19 = inlined_call_operand.vmem [shape: f32[2,1,128], index: 19, kind: input, shape index: {}]   ;;  %s9576_s20 = inlined_call_operand.vmem [shape: bf16[2,128,32], index: 20, kind: input, shape index: {}]   ;;  %s9577_s21 = inlined_call_operand.vmem [shape: f32[2,1,32], index: 21, kind: input, shape index: {}]   ;;  %s9578_s22 = inlined_call_operand.vmem [shape: f32[1,32], index: 22, kind: input, shape index: {}]   ;;  %s9579_s23 = inlined_call_operand.vmem [shape: f32[1,32], index: 23, kind: input, shape index: {}]   ;;  %s9580_s24 = inlined_call_operand.vmem [shape: bf16[32,128], index: 24, kind: input, shape index: {}]   ;;  %s9581_s25 = inlined_call_operand.hbm [shape: f32[4,16,128], index: 25, kind: output, shape index: {}]  }
   0x1   :  { %9601 = sst [smem:[#allocation13_spill]] %s9556_s0 }
   0x2   :  { %9602 = sst [smem:[#allocation14_spill]] %s9557_s1 }
   0x3   :  { %9603 = sst [smem:[#allocation15_spill]] %s9558_s2 }
   0x4   :  { %9604 = sst [smem:[#allocation16_spill]] %s9559_s3 }
   0x5   :  { %9605 = sst [smem:[#allocation17_spill]] %s9560_s4 }
   0x6   :  { %9606 = sst [smem:[#allocation18_spill]] %s9561_s5 }
   0x7   :  { %9607 = sst [smem:[#allocation19_spill]] %s9562_s6 }
   0x8   :  { %9608 = sst [smem:[#allocation20_spill]] %s9563_s7 }
   0x9   :  { %9609 = sst [smem:[#allocation21_spill]] %s9564_s8 }
   0xa   :  { %9610 = sst [smem:[#allocation22_spill]] %s9565_s9 }
   0xb   :  { %9611 = sst [smem:[#allocation23_spill]] %s9566_s10 }
   0xc   :  { %9612 = sst [smem:[#allocation24_spill]] %s9567_s11 }
   0xd   :  { %9613 = sst [smem:[#allocation25_spill]] %s9568_s12 }
   0xe   :  { %9614 = sst [smem:[#allocation26_spill]] %s9581_s25 }
   0xf   :  { %30 = vsyncpa [#allocation4], 0 }
  0x10   :  { %32 = vsyncpa [#allocation4 + $0x1], 0  ;;  %s8326_s29 = smov 0   ;;  %s8328_s2 = smov 0  }
  0x11   :  { %s8330_s6 = smov 0   ;;  %s8332_s30 = smov 0  }
  0x12 LB: > { %9615 = sst [smem:[#allocation6_spill]] %s8177_s29  ;;  %s8347_s7 = sadd.s32 4294967295, %s8189_s30   ;;  %s8189_s30 = sphi %s8332_s30, %s9650_s30   ;;  %s8185_s6 = sphi %s8330_s6, %s9652_s6   ;;  %s8181_s2 = sphi %s8328_s2, %s9654_s2   ;;  %s8177_s29 = sphi %s8326_s29, %s9653_s29  }
  0x13   : > { %9616 = sst [smem:[#allocation7_spill]] %s8185_s6  ;;  %s6545_s3 = sadd.s32 4294967294, %s8189_s30  }
  0x14   : > { %9617 = sst [smem:[#allocation8_spill]] %s8189_s30  ;;  %s8351_s26 = sadd.s32 1, %s8189_s30  }
  0x15   : > { %9618 = sst [smem:[#allocation9_spill]] %s8351_s26  ;;  %s580_s1 = sadd.s32 1, %s8185_s6 }
  0x16   : > { %s577_s8 = ssub.s32 %s8189_s30, %s8351_s26  ;;  %p590_p0 = scmp.ne.s32.totalorder %s8185_s6, %s8181_s2 }
  0x17   : > { %p578_p1 = scmp.eq.s32.totalorder %s577_s8, 0  ;;  %p591_p2 = scmp.eq.s32.totalorder %s8347_s7, 1 }
  0x18   : > { %p596_p3 = scmp.ne.s32.totalorder %s8181_s2, %s8177_s29  ;;  %p597_p4 = scmp.eq.s32.totalorder %s6545_s3, 1 }
  0x19   : > { %s8362_s27 = scalar_select %p578_p1, %s8185_s6, %s580_s1  }
  0x1a   : > { %p8364_p5 = por %p591_p2, %p590_p0  ;;  %p8368_p6 = por %p597_p4, %p596_p3 }
  0x1b   : > { %9619 = sst [smem:[#allocation10_spill]] %s8362_s27  ;;  %p6548_p7 = scmp.ge.s32.totalorder %s8189_s30, 1 }
  0x1c   : > { %s9620_s4 = scalar_select %p8364_p5, 1, 0 }
  0x1d   : > { %s9622_s28 = scalar_select %p8368_p6, 1, 0 }
  0x1e   : > { %9621 = sst [smem:[#allocation11_spill]] %s9620_s4  ;;  %p702_p8 = scmp.lt.s32.totalorder %s8189_s30, 3 }
  0x1f   : > { %9623 = sst [smem:[#allocation12_spill]] %s9622_s28 }
  0x20   : > { %p703_p9 = pnand %p6548_p7, %p702_p8 }
  0x21   : > { %s9624_s0 = sld [smem:[#allocation15_spill]] (!%p703_p9)  ;;  %v8191_v1 = vmov (!%p703_p9), 0.0   ;;  %vm8192_vm0 = vmmov (!%p703_p9), 0   ;;  %s6550_s8 = sshll.u32 (!%p703_p9), %s8347_s7, 1  ;;  %vm1223_vm1 = vcmask (!%p703_p9), 261120   ;;  %vm1225_vm2 = vcmask (!%p703_p9), 257024  }
  0x22   : > { %706 = sbr.rel (%p703_p9) target bundleno = 9727 (0x25ff), region = 120  ;;  %7216 = vmatprep.subr.bf16.mxu1 (!%p703_p9), %v8191_v1  ;;  %7240 = vmatprep.subr.bf16.mxu0 (!%p703_p9), %v8191_v1  ;;  %p776_p10 = scmp.lt.s32.totalorder (!%p703_p9), %s6550_s8, 3  ;;  %vm813_vm3 = vcmask (!%p703_p9), 1041409   ;;  %vm840_vm4 = vcmask (!%p703_p9), 523264   ;;  %vm968_vm5 = vcmask (!%p703_p9), 253952   ;;  %vm970_vm6 = vcmask (!%p703_p9), 254977  }
  0x23   : > { %7224 = vmatprep.mubr.msk.bf16.mxu1 (!%p703_p9), %vm8192_vm0, %v8191_v1  ;;  %7248 = vmatprep.mubr.msk.bf16.mxu0 (!%p703_p9), %vm8192_vm0, %v8191_v1  ;;  %s9625_s27 = sld [smem:[#allocation13_spill]] (!%p703_p9)  ;;  %s9626_s4 = sld [smem:[#allocation14_spill]] (!%p703_p9)  ;;  %vm1548_vm7 = vcmask (!%p703_p9), 64512   ;;  %vm1600_vm9 = vcmask (!%p703_p9), 130048   ;;  %vm2263_vm11 = vcmask (!%p703_p9), 1043456  }
  0x24   : > { %s9632_s25 = sld [smem:[#allocation21_spill]] (!%p703_p9)  ;;  %s9633_s12 = sld [smem:[#allocation25_spill]] (!%p703_p9) }
  0x25   : > { %s9634_s10 = sld [smem:[#allocation23_spill]] (!%p703_p9)  ;;  %s9635_s29 = sld [smem:[#allocation19_spill]] (!%p703_p9) }
  0x26   : > { %s9637_s28 = sld [smem:[#allocation20_spill]] (!%p703_p9)  ;;  %s9640_s11 = sld [smem:[#allocation24_spill]] (!%p703_p9) }
  0x27   : > { %v7847_v0 = vld [vmem:[%s9624_s0] sm:$0xff] (!%p703_p9)   ;;  %v7848_v2 = vld [vmem:[%s9624_s0 + $0x8] sm:$0xff] (!%p703_p9)   ;;  %v7849_v3 = vld [vmem:[%s9624_s0 + $0x10] sm:$0xff] (!%p703_p9)   ;;  %s6974_s30 = sshll.u32 (!%p703_p9), %s8347_s7, 9 }
  0x28   : > { %7217 = vmatpush3.bf16.msra.mxu1 (!%p703_p9), %v7847_v0  ;;  %v7850_v4 = vld [vmem:[%s9624_s0 + $0x18] sm:$0xff] (!%p703_p9)   ;;  %s772_s0 = sand.u32 (!%p703_p9), 1, %s8181_s2  }
  0x29   : > { %7218 = vmatprep.subr.bf16.mxu1 %v8191_v1  ;;  %s9656_s8 = smov (!%p776_p10, %s6550_s8), 3  ;;  %s6549_s1 = sshll.u32 %s772_s0, 5 }
  0x2a   : > { %s778_s6 = scalar_lea.vmem %s9625_s27, %s9656_s8  ;;  %s6972_s26 = sshll.u32 %s9656_s8, 4 }
  0x2b   : > { %s785_s9 = scalar_lea.vmem %s9626_s4, %s6972_s26  ;;  %v789_v5 = vld [vmem:[%s778_s6] sm:$0x1]  ;;  %v790_v6 = vld [vmem:[%s778_s6 + $0x1] sm:$0x1]  ;;  %s9627_s6 = sld [smem:[#allocation17_spill]] }
  0x2c   : > { %7219 = vmatpush3.bf16.msra.mxu1 %v7848_v2  ;;  %v791_v7 = vpack.c.bf16 %v789_v5, %v789_v5  ;;  %v792_v8 = vpack.c.bf16 %v790_v6, %v790_v6  ;;  %v1221_v9 = vld [vmem:[%s785_s9] sm:$0xff]  ;;  %v1222_v10 = vld [vmem:[%s785_s9 + $0x8] sm:$0xf]  ;;  %v6611_v11 = vld [vmem:[%s785_s9 + $0x10] sm:$0xff]  ;;  %s9629_s8 = sld [smem:[#allocation16_spill]]  ;;  %s9636_s4 = smov %s9635_s29 }
  0x2d   : > { %7220 = vmatprep.subr.bf16.mxu1 %v8191_v1  ;;  %1224 = vst.msk [vmem:[#allocation2 + $0x4] sm:$0xff] %vm1223_vm1, %v1221_v9  ;;  %v6612_v12 = vld [vmem:[%s785_s9 + $0x18] sm:$0xf]  ;;  %1230 = vst.msk [vmem:[#allocation2 + $0x14] sm:$0xff] %vm1223_vm1, %v6611_v11  ;;  %s774_s9 = scalar_lea.vmem [#allocation3], %s6549_s1  ;;  %s9515_s1 = scalar_lea.sflag [#allocation4], %s772_s0 }
  0x2e   : > { %1226 = vst.msk [vmem:[#allocation2 + $0xc] sm:$0xf] %vm1225_vm2, %v1222_v10  ;;  %v810_v13 = vunpack.c.l.b16 %v791_v7  ;;  %v811_v14 = vunpack.c.l.b16 %v792_v8  ;;  %1231 = vst.msk [vmem:[#allocation2 + $0x1c] sm:$0xf] %vm1225_vm2, %v6612_v12 }
  0x30   : > { %7221 = vmatpush3.bf16.msra.mxu1 %v7849_v3  ;;  %v812_v15 = vrot.slane %v811_v14, 7 }
  0x31   : > { %7222 = vmatprep.subr.bf16.mxu1 %v8191_v1  ;;  %s9628_s26 = smov %s9627_s6  ;;  %v7851_v18 = vld [vmem:[%s9627_s6] sm:$0xff]   ;;  %s9630_s6 = sld [smem:[#allocation18_spill]] }
  0x32   : > { %v814_v16 = vsel %vm813_vm3, %v812_v15, %v810_v13  ;;  %v7852_v19 = vld [vmem:[%s9628_s26 + $0x20] sm:$0xff]   ;;  %v7853_v20 = vld [vmem:[%s9628_s26 + $0x8] sm:$0xff]   ;;  %v7855_v22 = vld [vmem:[%s9628_s26 + $0x10] sm:$0xff]  }
  0x33   : > { %v815_v17 = vpack.c.b16 %v814_v16, %v814_v16  ;;  %7241 = vmatpush3.bf16.msra.mxu0 %v7852_v19  ;;  %v7854_v21 = vld [vmem:[%s9628_s26 + $0x28] sm:$0xff]   ;;  %v7856_v23 = vld [vmem:[%s9628_s26 + $0x30] sm:$0xff]   ;;  %v7857_v24 = vld [vmem:[%s9628_s26 + $0x18] sm:$0xff]  }
  0x34   : > { %7223 = vmatpush3.bf16.msra.mxu1 %v7850_v4  ;;  %7242 = vmatprep.subr.bf16.mxu0 %v8191_v1  ;;  %v7858_v25 = vld [vmem:[%s9628_s26 + $0x38] sm:$0xff]   ;;  %v6554_v26 = vld [vmem:[%s9629_s8] ss:$0 sm:$0xff]  ;;  %v7861_v36 = vld [vmem:[%s9628_s26 + $0x48] sm:$0xff]  }
  0x35   : > { %7228 = vmatprep.subr.bf16.mxu1 %v8191_v1  ;;  %v7859_v33 = vld [vmem:[%s9628_s26 + $0x40] sm:$0xff]   ;;  %v7862_v37 = vld [vmem:[%s9628_s26 + $0x68] sm:$0xff]   ;;  %v7863_v38 = vld [vmem:[%s9628_s26 + $0x50] sm:$0xff]  }
  0x36   : > { %v7860_v34 = vld [vmem:[%s9628_s26 + $0x60] sm:$0xff]   ;;  %v7864_v39 = vld [vmem:[%s9628_s26 + $0x70] sm:$0xff]   ;;  %v7865_v40 = vld [vmem:[%s9628_s26 + $0x58] sm:$0xff]  }
  0x37   : > { %7225 = vmatmul.mubr.msk.bf16.vlgmr.msra.gmra.mrb[0].mxu1 %vm840_vm4, %v815_v17  ;;  %7243 = vmatpush3.bf16.msra.mxu0 %v7854_v21  ;;  %v7866_v41 = vld [vmem:[%s9628_s26 + $0x78] sm:$0xff]   ;;  %s9631_s27 = smov %s9630_s6  ;;  %v6560_v42 = vld [vmem:[%s9630_s6] ss:$0 sm:$0xff]  ;;  %v1233_v3 = vld [vmem:[#allocation2 + $0x8] sm:$0xff]  ;;  %s9638_s6 = sld [smem:[#allocation22_spill]] }
  0x38   : > { %7236 = vmatprep.mubr.msk.bf16.mxu1 %vm8192_vm0, %v8191_v1  ;;  %7229 = vmatpush3.bf16.msra.mxu1 %v7851_v18  ;;  %v6575_v43 = vld [vmem:[%s9631_s27 + $0x1] ss:$0 sm:$0xff]  ;;  %v6590_v54 = vld [vmem:[%s9631_s27 + $0x2] ss:$0 sm:$0xff]  ;;  %v6605_v55 = vld [vmem:[%s9631_s27 + $0x3] ss:$0 sm:$0xff] }
  0x39   : > { %7230 = vmatprep.subr.bf16.mxu1 %v8191_v1  ;;  %7244 = vmatprep.subr.bf16.mxu0 %v8191_v1  ;;  %v1235_v6 = vld [vmem:[#allocation2 + $0x18] sm:$0xff]  ;;  %v1248_v9 = vsel %vm1223_vm1, %v1233_v3, 0.0 }
  0x3a   : > { %v1254_v10 = vsel %vm1223_vm1, %v1235_v6, 0.0 }
  0x3b   : > { %7245 = vmatpush3.bf16.msra.mxu0 %v7856_v23 }
  0x3c   : > { %7231 = vmatpush3.bf16.msra.mxu1 %v7853_v20  ;;  %7246 = vmatprep.subr.bf16.mxu0 %v8191_v1 }
  0x3d   : > { %7232 = vmatprep.subr.bf16.mxu1 %v8191_v1  ;;  %s9639_s8 = smov %s9638_s6 }
  0x3f   : > { %7247 = vmatpush3.bf16.msra.mxu0 %v7858_v25 }
  0x40   : > { %7233 = vmatpush3.bf16.msra.mxu1 %v7855_v22  ;;  %7264 = vmatprep.subr.bf16.mxu0 %v8191_v1 }
  0x41   : > { %7234 = vmatprep.subr.bf16.mxu1 %v8191_v1 }
  0x44   : > { %7235 = vmatpush3.bf16.msra.mxu1 %v7857_v24 }
  0x45   : > { %7252 = vmatprep.subr.bf16.mxu1 %v8191_v1 }
 0x10a   : > { %v878_v27 = vpop.f32.mrb[0].mxu1 }
 0x10b   : > { %v879_v28 = vadd.f32 %v6554_v26, %v878_v27  ;;  %v7226_v29 = vpop.f32.mrb[1].mxu1 }
 0x10c   : > { %v881_v30 = vpop.f32.mrb[2].mxu1 }
 0x10d   : > { %7937 = vtanh.f32 %v879_v28  ;;  %v7227_v31 = vpop.f32.mrb[3].mxu1 }
 0x10e   : > { %v7867_v31 = vld [vmem:[%s9632_s25] sm:$0xff]  }
 0x117   : > { %v7938_v32 = vpop.eup %7937 }
 0x118   : > { %v885_v35 = vpack.c.bf16 %v7938_v32, %v7938_v32  ;;  %v7868_v32 = vld [vmem:[%s9633_s12] sm:$0xff]  }
 0x11a   : > { %7237 = vmatmul.mubr.msk.bf16.vlgmr.msra.gmra.mrb[4].mxu1 %vm840_vm4, %v885_v35  ;;  %7249 = vmatmul.mubr.msk.bf16.vlgmr.msra.gmra.mrb[0].mxu0 %vm840_vm4, %v885_v35 }
 0x11b   : > { %7253 = vmatpush3.bf16.msra.mxu1 %v7859_v33  ;;  %7265 = vmatpush3.bf16.msra.mxu0 %v7860_v34  ;;  %v7869_v33 = vld [vmem:[%s9632_s25 + $0x8] sm:$0xff]  }
 0x11c   : > { %7254 = vmatprep.subr.bf16.mxu1 %v8191_v1  ;;  %7266 = vmatprep.subr.bf16.mxu0 %v8191_v1  ;;  %v7870_v34 = vld [vmem:[%s9633_s12 + $0x8] sm:$0xff]  }
 0x11d   : > { %7260 = vmatprep.mubr.msk.bf16.mxu1 %vm8192_vm0, %v8191_v1  ;;  %7272 = vmatprep.mubr.msk.bf16.mxu0 %vm8192_vm0, %v8191_v1 }
 0x11f   : > { %7255 = vmatpush3.bf16.msra.mxu1 %v7861_v36  ;;  %7267 = vmatpush3.bf16.msra.mxu0 %v7862_v37 }
 0x120   : > { %7256 = vmatprep.subr.bf16.mxu1 %v8191_v1  ;;  %7268 = vmatprep.subr.bf16.mxu0 %v8191_v1 }
 0x123   : > { %7257 = vmatpush3.bf16.msra.mxu1 %v7863_v38  ;;  %7269 = vmatpush3.bf16.msra.mxu0 %v7864_v39 }
 0x124   : > { %7258 = vmatprep.subr.bf16.mxu1 %v8191_v1  ;;  %7270 = vmatprep.subr.bf16.mxu0 %v8191_v1 }
 0x127   : > { %7259 = vmatpush3.bf16.msra.mxu1 %v7865_v40  ;;  %7271 = vmatpush3.bf16.msra.mxu0 %v7866_v41 }
 0x128   : > { %7276 = vmatprep.subr.bf16.mxu1 %v7867_v31  ;;  %7292 = vmatprep.subr.bf16.mxu0 %v7868_v32 }
 0x12a   : > { %7261 = vmatmul.mubr.msk.bf16.vlgmr.msra.gmra.mrb[8].mxu1 %vm840_vm4, %v885_v35  ;;  %7273 = vmatmul.mubr.msk.bf16.vlgmr.msra.gmra.mrb[4].mxu0 %vm840_vm4, %v885_v35  ;;  %v7871_v35 = vld [vmem:[%s9634_s10] sm:$0xff]  }
 0x12b   : > { %7277 = vmatpush3.bf16.msra.mxu1 %v7867_v31  ;;  %7293 = vmatpush3.bf16.msra.mxu0 %v7868_v32 }
 0x12c   : > { %7278 = vmatprep.subr.bf16.mxu1 %v7869_v33  ;;  %7294 = vmatprep.subr.bf16.mxu0 %v7870_v34 }
 0x12f   : > { %7279 = vmatpush3.bf16.msra.mxu1 %v7869_v33  ;;  %7295 = vmatpush3.bf16.msra.mxu0 %v7870_v34 }
 0x130   : > { %7306 = vmatprep.subr.bf16.mxu0 %v8191_v1  ;;  %7284 = vmatprep.subr.bf16.mxu1 %v7871_v35 }
 0x1ed   : > { %v962_v44 = vpop.f32.mrb[4].mxu1  ;;  %v1047_v45 = vpop.f32.mrb[0].mxu0 }
 0x1ee   : > { %v963_v46 = vadd.f32 %v6560_v42, %v962_v44  ;;  %v1048_v47 = vadd.f32 %v6575_v43, %v1047_v45  ;;  %v7238_v48 = vpop.f32.mrb[5].mxu1  ;;  %v7250_v49 = vpop.f32.mrb[1].mxu0 }
 0x1ef   : > { %v965_v50 = vpop.f32.mrb[6].mxu1  ;;  %v1050_v51 = vpop.f32.mrb[2].mxu0 }
 0x1f0   : > { %969 = vst.msk [vmem:[#allocation2] sm:$0x1] %vm968_vm5, %v963_v46  ;;  %1053 = vst.msk [vmem:[#allocation2 + $0x1] sm:$0x1] %vm968_vm5, %v1048_v47  ;;  %v7239_v52 = vpop.f32.mrb[7].mxu1  ;;  %v7251_v53 = vpop.f32.mrb[3].mxu0 }
 0x1f1   : > { %971 = vst.msk [vmem:[#allocation2 + $0xf] sm:$0x2] %vm970_vm6, %v963_v46  ;;  %1054 = vst.msk [vmem:[#allocation2 + $0x10] sm:$0x2] %vm970_vm6, %v1048_v47  ;;  %v6613_v50 = vld [vmem:[%s9635_s29] ss:$0 sm:$0xff] }
 0x1fd   : > { %v1130_v56 = vpop.f32.mrb[8].mxu1  ;;  %v1213_v57 = vpop.f32.mrb[4].mxu0 }
 0x1fe   : > { %v1131_v58 = vadd.f32 %v6590_v54, %v1130_v56  ;;  %v1214_v59 = vadd.f32 %v6605_v55, %v1213_v57  ;;  %v7262_v60 = vpop.f32.mrb[9].mxu1  ;;  %v7274_v61 = vpop.f32.mrb[5].mxu0  ;;  %v6614_v55 = vld [vmem:[%s9637_s28] ss:$0 sm:$0xff] }
 0x1ff   : > { %v1133_v62 = vpop.f32.mrb[10].mxu1  ;;  %v1216_v63 = vpop.f32.mrb[6].mxu0 }
 0x200   : > { %1136 = vst.msk [vmem:[#allocation2 + $0x2] sm:$0x1] %vm968_vm5, %v1131_v58  ;;  %1219 = vst.msk [vmem:[#allocation2 + $0x3] sm:$0x1] %vm968_vm5, %v1214_v59  ;;  %v7263_v0 = vpop.f32.mrb[11].mxu1  ;;  %v7275_v2 = vpop.f32.mrb[7].mxu0 }
 0x201   : > { %1137 = vst.msk [vmem:[#allocation2 + $0x11] sm:$0x2] %vm970_vm6, %v1131_v58  ;;  %1220 = vst.msk [vmem:[#allocation2 + $0x12] sm:$0x2] %vm970_vm6, %v1214_v59 }
 0x207   : > { %v1232_v5 = vld [vmem:[#allocation2] sm:$0xff] }
 0x208   : > { %v1234_v4 = vld [vmem:[#allocation2 + $0x10] sm:$0xff]  ;;  %v1245_v8 = vsel %vm1223_vm1, %v1232_v5, 0.0 }
 0x209   : > { %v1251_v7 = vsel %vm1223_vm1, %v1234_v4, 0.0  ;;  %1246 = vadd.xlane.f32.xlu0 %v1245_v8  ;;  %v6615_v8 = vld [vmem:[%s9638_s6] ss:$0 sm:$0xff]  ;;  %s6474_s6 = sshll.u32 %s774_s9, 4  ;;  %s9508_s6 = int_to_ptr.vmem [resolvable:$true] %s6474_s6 }
 0x20a   : > { %1252 = vadd.xlane.f32.xlu1 %v1251_v7  ;;  %s8127_s7 = scalar_lea.vmem %s9508_s6, 512 }
 0x20b   : > { %p8128_p11 = scmp.ne.s32.totalorder %s9508_s6, %s8127_s7 }
 0x20d   : > { %1249 = vadd.xlane.f32.xlu0 %v1248_v9  ;;  %p8129_p12 = pnand %p8128_p11, %p8364_p5 }
 0x20e   : > { %1255 = vadd.xlane.f32.xlu1 %v1254_v10 }
 0x20f   : > { %p8130_p13 = pneg %p8129_p12 }
 0x296   : > { %v1247_v12 = vpop.xlane.xlu0 %1246 }
 0x297   : > { %v1253_v11 = vpop.xlane.xlu1 %1252  ;;  %v1258_v14 = vmul.f32 0.03125, %v1247_v12 }
 0x298   : > { %v1260_v13 = vmul.f32 0.03125, %v1253_v11 }
 0x299   : > { %v1262_v16 = vsub.f32 %v1232_v5, %v1258_v14  ;;  %v7872_v5 = vld [vmem:[%s9634_s10 + $0x8] sm:$0xff]  }
 0x29a   : > { %v1264_v15 = vsub.f32 %v1234_v4, %v1260_v13  ;;  %v1250_v17 = vpop.xlane.xlu0 %1249 }
 0x29b   : > { %v1256_v18 = vpop.xlane.xlu1 %1255  ;;  %v1259_v19 = vmul.f32 0.03125, %v1250_v17  ;;  %v1266_v21 = vmul.f32 %v1262_v16, %v1262_v16 }
 0x29c   : > { %v1261_v20 = vmul.f32 0.03125, %v1256_v18  ;;  %v1268_v25 = vmul.f32 %v1264_v15, %v1264_v15 }
 0x29d   : > { %v1263_v22 = vsub.f32 %v1233_v3, %v1259_v19  ;;  %v1270_v24 = vsel %vm1223_vm1, %v1266_v21, 0.0 }
 0x29e   : > { %v1265_v23 = vsub.f32 %v1235_v6, %v1261_v20  ;;  %1271 = vadd.xlane.f32.xlu0 %v1270_v24  ;;  %v1276_v28 = vsel %vm1223_vm1, %v1268_v25, 0.0  ;;  %v6625_v6 = vld [vmem:[%s9569_s13] ss:$0 sm:$0xff] }
 0x29f   : > { %v1267_v26 = vmul.f32 %v1263_v22, %v1263_v22 }
 0x2a0   : > { %v1269_v27 = vmul.f32 %v1265_v23, %v1265_v23 }
 0x2a1   : > { %v1273_v29 = vsel %vm1223_vm1, %v1267_v26, 0.0 }
 0x2a2   : > { %1277 = vadd.xlane.f32.xlu0 %v1276_v28  ;;  %1274 = vadd.xlane.f32.xlu1 %v1273_v29  ;;  %v1279_v30 = vsel %vm1223_vm1, %v1269_v27, 0.0  ;;  %v6620_v29 = vld [vmem:[%s9640_s11] ss:$0 sm:$0xff] }
 0x2a6   : > { %1280 = vadd.xlane.f32.xlu1 %v1279_v30 }
 0x32b   : > { %v1272_v36 = vpop.xlane.xlu0 %1271 }
 0x32c   : > { %v1282_v37 = vmul.f32 0.03125, %v1272_v36 }
 0x32e   : > { %v1286_v38 = vadd.f32 1e-05, %v1282_v37 }
 0x32f   : > { %v1275_v39 = vpop.xlane.xlu1 %1274  ;;  %v1278_v40 = vpop.xlane.xlu0 %1277 }
 0x330   : > { %7939 = vrsqrt.f32 %v1286_v38  ;;  %v1283_v41 = vmul.f32 0.03125, %v1275_v39  ;;  %v1284_v42 = vmul.f32 0.03125, %v1278_v40  ;;  %v7873_v40 = vld [vmem:[%s9632_s25 + $0x10] sm:$0xff]  }
 0x332   : > { %v1287_v43 = vadd.f32 1e-05, %v1283_v41  ;;  %v1288_v44 = vadd.f32 1e-05, %v1284_v42  ;;  %v7874_v42 = vld [vmem:[%s9632_s25 + $0x18] sm:$0xff]  }
 0x333   : > { %v1281_v45 = vpop.xlane.xlu1 %1280 }
 0x334   : > { %7941 = vrsqrt.f32 %v1287_v43  ;;  %v1285_v46 = vmul.f32 0.03125, %v1281_v45  ;;  %v7875_v43 = vld [vmem:[%s9633_s12 + $0x10] sm:$0xff]   ;;  %v1236_v45 = vlaneseq }
 0x335   : > { %7943 = vrsqrt.f32 %v1288_v44  ;;  %v7876_v44 = vld [vmem:[%s9633_s12 + $0x18] sm:$0xff]  }
 0x336   : > { %v1289_v47 = vadd.f32 1e-05, %v1285_v46  ;;  %v1237_v46 = vshrl.u32 %v1236_v45, 7 }
 0x338   : > { %7945 = vrsqrt.f32 %v1289_v47  ;;  %v1240_v47 = vand.u32 127, %v1236_v45 }
 0x33a   : > { %v7940_v48 = vpop.eup %7939  ;;  %vm8604_vm8 = vcmp.le.s32.totalorder %v1240_v47, %v1237_v46 }
 0x33b   : > { %v1294_v49 = vmul.f32 %v7940_v48, %v1262_v16  ;;  %v1238_v48 = vadd.s32 8, %v1237_v46 }
 0x33d   : > { %v1304_v53 = vmul.f32 %v6613_v50, %v1294_v49  ;;  %vm8608_vm10 = vcmp.le.s32.totalorder %v1240_v47, %v1238_v48 }
 0x33e   : > { %v7942_v51 = vpop.eup %7941 }
 0x33f   : > { %v7944_v52 = vpop.eup %7943  ;;  %v1295_v54 = vmul.f32 %v7942_v51, %v1263_v22  ;;  %v1314_v59 = vadd.f32 %v6614_v55, %v1304_v53 }
 0x340   : > { %v1296_v56 = vmul.f32 %v7944_v52, %v1264_v15 }
 0x341   : > { %v1305_v57 = vmul.f32 %v6613_v50, %v1295_v54 }
 0x342   : > { %v7946_v58 = vpop.eup %7945  ;;  %v1306_v61 = vmul.f32 %v6613_v50, %v1296_v56 }
 0x343   : > { %v1315_v60 = vadd.f32 %v6614_v55, %v1305_v57  ;;  %v1297_v62 = vmul.f32 %v7946_v58, %v1265_v23 }
 0x344   : > { %v1316_v2 = vadd.f32 %v6614_v55, %v1306_v61 }
 0x345   : > { %v8534_v63 = vpack.c.bf16 %v1315_v60, %v1314_v59  ;;  %v1307_v0 = vmul.f32 %v6613_v50, %v1297_v62 }
 0x347   : > { %v1317_v3 = vadd.f32 %v6614_v55, %v1307_v0  ;;  %7280 = vmatprep.mubr.msk.bf16.mxu1 %vm1223_vm1, %v8534_v63  ;;  %7296 = vmatprep.mubr.msk.bf16.mxu0 %vm1223_vm1, %v8534_v63 }
 0x349   : > { %v8540_v4 = vpack.c.bf16 %v1317_v3, %v1316_v2 }
 0x34b   : > { %7281 = vmatmul.mubr.msk.bf16.vlgmr.msra.gmra.mrb[12].mxu1 %vm1223_vm1, %v8540_v4  ;;  %7297 = vmatmul.mubr.msk.bf16.vlgmr.msra.gmra.mrb[8].mxu0 %vm1223_vm1, %v8540_v4 }
 0x34c   : > { %7285 = vmatpush3.bf16.msra.mxu1 %v7871_v35  ;;  %7288 = vmatprep.mubr.msk.bf16.mxu1 %vm1223_vm1, %v8534_v63 }
 0x34d   : > { %7286 = vmatprep.subr.bf16.mxu1 %v7872_v5  ;;  %7308 = vmatprep.mubr.msk.bf16.mxu0 %vm8192_vm0, %v8191_v1 }
 0x350   : > { %7287 = vmatpush3.bf16.msra.mxu1 %v7872_v5 }
 0x351   : > { %7300 = vmatprep.subr.bf16.mxu1 %v8191_v1 }
 0x353   : > { %7289 = vmatmul.mubr.msk.bf16.vlgmr.msra.gmra.mrb[16].mxu1 %vm1223_vm1, %v8540_v4 }
 0x354   : > { %7302 = vmatprep.mubr.msk.bf16.mxu1 %vm8192_vm0, %v8191_v1 }
 0x41e   : > { %v7282_v7 = vpop.f32.mrb[12].mxu1  ;;  %v7298_v9 = vpop.f32.mrb[8].mxu0 }
 0x41f   : > { %v8564_v10 = vadd.f32 %v7298_v9, %v6625_v6  ;;  %v1383_v11 = vpop.f32.mrb[13].mxu1  ;;  %v1531_v12 = vpop.f32.mrb[9].mxu0  ;;  %v1392_v15 = vadd.f32 %v7282_v7, %v6615_v8 }
 0x420   : > { %v7283_v13 = vpop.f32.mrb[14].mxu1  ;;  %v7299_v14 = vpop.f32.mrb[10].mxu0  ;;  %v1384_v20 = vadd.f32 %v6615_v8, %v1383_v11  ;;  %v1532_v21 = vadd.f32 %v6625_v6, %v1531_v12  ;;  %v6639_v12 = vld [vmem:[%s9639_s8 + $0x1] ss:$0 sm:$0xff] }
 0x421   : > { %v1395_v16 = vadd.f32 %v7283_v13, %v6615_v8  ;;  %v8566_v17 = vadd.f32 %v7299_v14, %v6625_v6  ;;  %v1386_v18 = vpop.f32.mrb[15].mxu1  ;;  %v1534_v19 = vpop.f32.mrb[11].mxu0 }
 0x422   : > { %v1387_v22 = vadd.f32 %v6615_v8, %v1386_v18  ;;  %v1535_v23 = vadd.f32 %v6625_v6, %v1534_v19 }
 0x423   : > { %v1399_v24 = vpack.c.bf16 %v1395_v16, %v1392_v15  ;;  %v1547_v25 = vpack.c.bf16 %v8566_v17, %v8564_v10 }
 0x424   : > { %v1398_v26 = vpack.c.bf16 %v1387_v22, %v1384_v20  ;;  %v1546_v27 = vpack.c.bf16 %v1535_v23, %v1532_v21  ;;  %v6659_v23 = vld [vmem:[%s9569_s13 + $0x1] ss:$0 sm:$0xff] }
 0x426   : > { %v7290_v28 = vpop.f32.mrb[16].mxu1  ;;  %7307 = vmatpush3.bf16.msra.mxu0 %v1546_v27 }
 0x427   : > { %v1457_v30 = vpop.f32.mrb[17].mxu1  ;;  %7318 = vmatprep.subr.bf16.mxu0 %v8191_v1  ;;  %v1466_v32 = vadd.f32 %v7290_v28, %v6620_v29 }
 0x428   : > { %v7291_v31 = vpop.f32.mrb[18].mxu1  ;;  %v1458_v35 = vadd.f32 %v6620_v29, %v1457_v30 }
 0x429   : > { %v1469_v33 = vadd.f32 %v7291_v31, %v6620_v29  ;;  %v1460_v34 = vpop.f32.mrb[19].mxu1 }
 0x42a   : > { %v1461_v36 = vadd.f32 %v6620_v29, %v1460_v34 }
 0x42b   : > { %v1473_v37 = vpack.c.bf16 %v1469_v33, %v1466_v32 }
 0x42c   : > { %v1472_v38 = vpack.c.bf16 %v1461_v36, %v1458_v35 }
 0x42d   : > { %v1672_v41 = vsel %vm1548_vm7, %v1473_v37, 0 }
 0x42e   : > { %v1553_v39 = vsel %vm1548_vm7, %v1472_v38, 0 }
 0x42f   : > { %7301 = vmatpush3.bf16.xpose.msra.mxu1 %v1553_v39 }
 0x430   : > { %7312 = vmatprep.subr.bf16.mxu1 %v8191_v1 }
 0x436   : > { %7303 = vmatmul.mubr.msk.bf16.vlgmr.msra.gmra.mrb[20].mxu1 %vm1548_vm7, %v1398_v26 }
 0x437   : > { %7313 = vmatpush3.bf16.xpose.msra.mxu1 %v1672_v41  ;;  %7314 = vmatprep.mubr.msk.bf16.mxu1 %vm8192_vm0, %v8191_v1 }
 0x438   : > { %7324 = vmatprep.subr.bf16.mxu1 %v7873_v40 }
 0x43e   : > { %7315 = vmatmul.mubr.msk.bf16.vlgmr.msra.gmra.mrb[24].mxu1 %vm1548_vm7, %v1399_v24 }
 0x43f   : > { %7325 = vmatpush3.bf16.msra.mxu1 %v7873_v40  ;;  %7328 = vmatprep.mubr.msk.bf16.mxu1 %vm1223_vm1, %v8534_v63 }
 0x440   : > { %7326 = vmatprep.subr.bf16.mxu1 %v7874_v42 }
 0x443   : > { %7327 = vmatpush3.bf16.msra.mxu1 %v7874_v42 }
 0x444   : > { %7340 = vmatprep.subr.bf16.mxu1 %v7875_v43 }
 0x446   : > { %7329 = vmatmul.mubr.msk.bf16.vlgmr.msra.gmra.mrb[28].mxu1 %vm1223_vm1, %v8540_v4 }
 0x447   : > { %7341 = vmatpush3.bf16.msra.mxu1 %v7875_v43  ;;  %7344 = vmatprep.mubr.msk.bf16.mxu1 %vm1223_vm1, %v8534_v63 }
 0x448   : > { %7342 = vmatprep.subr.bf16.mxu1 %v7876_v44 }
 0x44b   : > { %7343 = vmatpush3.bf16.msra.mxu1 %v7876_v44 }
 0x44c   : > { %7354 = vmatprep.subr.bf16.mxu1 %v8191_v1 }
 0x44e   : > { %7345 = vmatmul.mubr.msk.bf16.vlgmr.msra.gmra.mrb[32].mxu1 %vm1223_vm1, %v8540_v4 }
 0x44f   : > { %7356 = vmatprep.mubr.msk.bf16.mxu1 %vm8192_vm0, %v8191_v1 }
 0x509   : > { %v1589_v49 = vpop.f32.mrb[20].mxu1 }
 0x50a   : > { %v1596_v51 = vmul.f32 0.35355338, %v1589_v49  ;;  %v7304_v52 = vpop.f32.mrb[21].mxu1 }
 0x50b   : > { %v1592_v53 = vpop.f32.mrb[22].mxu1 }
 0x50c   : > { %v1597_v55 = vmul.f32 0.35355338, %v1592_v53  ;;  %v7305_v56 = vpop.f32.mrb[23].mxu1  ;;  %v1598_v57 = vsel %vm8604_vm8, %v1596_v51, -1e+30 }
 0x50d   : > { %v1601_v58 = vsel %vm1600_vm9, %v1598_v57, -inf }
 0x50e   : > { %1602 = vmax.xlane.f32.xlu0 %v1601_v58  ;;  %v1599_v59 = vsel %vm8608_vm10, %v1597_v55, -1e+30 }
 0x50f   : > { %v1604_v60 = vsel %vm1600_vm9, %v1599_v59, -inf }
 0x510   : > { %1605 = vmax.xlane.f32.xlu1 %v1604_v60 }
 0x511   : > { %v1708_v61 = vpop.f32.mrb[24].mxu1 }
 0x512   : > { %v1715_v62 = vmul.f32 0.35355338, %v1708_v61  ;;  %v7316_v0 = vpop.f32.mrb[25].mxu1 }
 0x513   : > { %v1711_v2 = vpop.f32.mrb[26].mxu1 }
 0x514   : > { %v1716_v3 = vmul.f32 0.35355338, %v1711_v2  ;;  %v7317_v5 = vpop.f32.mrb[27].mxu1  ;;  %v1717_v6 = vsel %vm8604_vm8, %v1715_v62, -1e+30 }
 0x515   : > { %v1719_v7 = vsel %vm1600_vm9, %v1717_v6, -inf  ;;  %v7877_v5 = vld [vmem:[%s9634_s10 + $0x10] sm:$0xff]  }
 0x516   : > { %1720 = vmax.xlane.f32.xlu0 %v1719_v7  ;;  %v1718_v8 = vsel %vm8608_vm10, %v1716_v3, -1e+30 }
 0x517   : > { %v1722_v9 = vsel %vm1600_vm9, %v1718_v8, -inf }
 0x518   : > { %1723 = vmax.xlane.f32.xlu1 %v1722_v9 }
 0x519   : > { %v7330_v11 = vpop.f32.mrb[28].mxu1 }
 0x51a   : > { %v1848_v13 = vpop.f32.mrb[29].mxu1  ;;  %v8627_v15 = vadd.f32 %v7330_v11, %v6639_v12 }
 0x51b   : > { %v7331_v14 = vpop.f32.mrb[30].mxu1  ;;  %v8631_v19 = vadd.f32 %v6639_v12, %v1848_v13 }
 0x51c   : > { %v8629_v16 = vadd.f32 %v7331_v14, %v6639_v12  ;;  %v1851_v18 = vpop.f32.mrb[31].mxu1 }
 0x51d   : > { %v8633_v20 = vadd.f32 %v6639_v12, %v1851_v18  ;;  %v7878_v12 = vld [vmem:[%s9634_s10 + $0x18] sm:$0xff]  }
 0x51e   : > { %v1864_v21 = vpack.c.bf16 %v8629_v16, %v8627_v15 }
 0x51f   : > { %v1863_v22 = vpack.c.bf16 %v8633_v20, %v8631_v19 }
 0x521   : > { %v7346_v24 = vpop.f32.mrb[32].mxu1 }
 0x522   : > { %v8642_v26 = vadd.f32 %v7346_v24, %v6659_v23  ;;  %v2000_v27 = vpop.f32.mrb[33].mxu1 }
 0x523   : > { %v7347_v28 = vpop.f32.mrb[34].mxu1  ;;  %v2001_v31 = vadd.f32 %v6659_v23, %v2000_v27 }
 0x524   : > { %v8644_v29 = vadd.f32 %v7347_v28, %v6659_v23  ;;  %v2003_v30 = vpop.f32.mrb[35].mxu1 }
 0x525   : > { %v2004_v32 = vadd.f32 %v6659_v23, %v2003_v30 }
 0x526   : > { %v2016_v33 = vpack.c.bf16 %v8644_v29, %v8642_v26  ;;  %v7881_v26 = vld [vmem:[%s9634_s10 + $0x20] sm:$0xff]   ;;  %v7882_v29 = vld [vmem:[%s9634_s10 + $0x28] sm:$0xff]  }
 0x527   : > { %v2015_v34 = vpack.c.bf16 %v2004_v32, %v2001_v31  ;;  %v6649_v31 = vld [vmem:[%s9640_s11 + $0x1] ss:$0 sm:$0xff] }
 0x529   : > { %7355 = vmatpush3.bf16.msra.mxu1 %v2015_v34 }
 0x52a   : > { %7366 = vmatprep.subr.bf16.mxu1 %v8191_v1 }
 0x59b   : > { %v1603_v35 = vpop.xlane.xlu0 %1602 }
 0x59c   : > { %v1607_v36 = vsub.f32 %v1598_v57, %v1603_v35 }
 0x59d   : > { %v1606_v37 = vpop.xlane.xlu1 %1605 }
 0x59e   : > { %v1609_v38 = vmul.f32 1.442695, %v1607_v36  ;;  %v1608_v39 = vsub.f32 %v1599_v59, %v1606_v37 }
 0x5a0   : > { %7947 = vpow2.f32 %v1609_v38  ;;  %v1611_v40 = vmul.f32 1.442695, %v1608_v39 }
 0x5a2   : > { %7949 = vpow2.f32 %v1611_v40 }
 0x5a3   : > { %v1721_v41 = vpop.xlane.xlu0 %1720 }
 0x5a4   : > { %v1725_v42 = vsub.f32 %v1717_v6, %v1721_v41 }
 0x5a5   : > { %v1724_v43 = vpop.xlane.xlu1 %1723 }
 0x5a6   : > { %v1727_v44 = vmul.f32 1.442695, %v1725_v42  ;;  %v1726_v45 = vsub.f32 %v1718_v8, %v1724_v43 }
 0x5a8   : > { %7951 = vpow2.f32 %v1727_v44  ;;  %v1729_v46 = vmul.f32 1.442695, %v1726_v45 }
 0x5aa   : > { %v7948_v47 = vpop.eup %7947  ;;  %7953 = vpow2.f32 %v1729_v46 }
 0x5ab   : > { %v1613_v48 = vsel %vm1600_vm9, %v7948_v47, 0.0 }
 0x5ac   : > { %v7950_v49 = vpop.eup %7949  ;;  %1614 = vadd.xlane.f32.xlu0 %v1613_v48 }
 0x5ad   : > { %v1616_v51 = vsel %vm1600_vm9, %v7950_v49, 0.0 }
 0x5ae   : > { %1617 = vadd.xlane.f32.xlu1 %v1616_v51 }
 0x5b2   : > { %v7952_v52 = vpop.eup %7951 }
 0x5b3   : > { %v1731_v53 = vsel %vm1600_vm9, %v7952_v52, 0.0 }
 0x5b4   : > { %v7954_v55 = vpop.eup %7953  ;;  %1732 = vadd.xlane.f32.xlu0 %v1731_v53 }
 0x5b5   : > { %v1734_v56 = vsel %vm1600_vm9, %v7954_v55, 0.0 }
 0x5b6   : > { %1735 = vadd.xlane.f32.xlu1 %v1734_v56 }
 0x639   : > { %v1615_v57 = vpop.xlane.xlu0 %1614 }
 0x63a   : > { %7955 = vrcp.f32 %v1615_v57 }
 0x63b   : > { %v1618_v58 = vpop.xlane.xlu1 %1617 }
 0x63c   : > { %7957 = vrcp.f32 %v1618_v58 }
 0x641   : > { %v1733_v59 = vpop.xlane.xlu0 %1732 }
 0x642   : > { %7959 = vrcp.f32 %v1733_v59 }
 0x643   : > { %v1736_v60 = vpop.xlane.xlu1 %1735 }
 0x644   : > { %v7956_v61 = vpop.eup %7955  ;;  %7961 = vrcp.f32 %v1736_v60 }
 0x645   : > { %v1621_v0 = vmul.f32 %v7956_v61, %v7948_v47 }
 0x646   : > { %v7958_v62 = vpop.eup %7957 }
 0x647   : > { %v1622_v2 = vmul.f32 %v7958_v62, %v7950_v49 }
 0x649   : > { %v1623_v3 = vpack.c.bf16 %v1622_v2, %v1621_v0 }
 0x64b   : > { %7309 = vmatmul.mubr.msk.bf16.vlgmr.msra.gmra.mrb[12].mxu0 %vm1600_vm9, %v1623_v3 }
 0x64c   : > { %v7960_v6 = vpop.eup %7959  ;;  %7319 = vmatpush3.bf16.msra.mxu0 %v1547_v25  ;;  %7320 = vmatprep.mubr.msk.bf16.mxu0 %vm8192_vm0, %v8191_v1 }
 0x64d   : > { %7332 = vmatprep.subr.bf16.mxu0 %v7877_v5  ;;  %v1739_v8 = vmul.f32 %v7960_v6, %v7952_v52 }
 0x64e   : > { %v7962_v7 = vpop.eup %7961 }
 0x64f   : > { %v1740_v9 = vmul.f32 %v7962_v7, %v7954_v55 }
 0x651   : > { %v1741_v11 = vpack.c.bf16 %v1740_v9, %v1739_v8 }
 0x653   : > { %7321 = vmatmul.mubr.msk.bf16.vlgmr.msra.gmra.mrb[16].mxu0 %vm1600_vm9, %v1741_v11 }
 0x654   : > { %7333 = vmatpush3.bf16.msra.mxu0 %v7877_v5  ;;  %7336 = vmatprep.mubr.msk.bf16.mxu0 %vm1223_vm1, %v8534_v63 }
 0x655   : > { %7334 = vmatprep.subr.bf16.mxu0 %v7878_v12 }
 0x658   : > { %7335 = vmatpush3.bf16.msra.mxu0 %v7878_v12 }
 0x659   : > { %7348 = vmatprep.subr.bf16.mxu0 %v8191_v1 }
 0x65b   : > { %7337 = vmatmul.mubr.msk.bf16.vlgmr.msra.gmra.mrb[20].mxu0 %vm1223_vm1, %v8540_v4 }
 0x65c   : > { %7350 = vmatprep.mubr.msk.bf16.mxu0 %vm8192_vm0, %v8191_v1 }
 0x71e   : > { %v8673_v10 = vpop.f32.mrb[12].mxu0 }
 0x71f   : > { %v7310_v17 = vpop.f32.mrb[13].mxu0 }
 0x720   : > { %v8675_v25 = vpop.f32.mrb[14].mxu0 }
 0x721   : > { %v1786_v13 = vpack.c.bf16 %v8675_v25, %v8673_v10  ;;  %v7311_v14 = vpop.f32.mrb[15].mxu0  ;;  %v7884_v10 = vld [vmem:[%s9633_s12 + $0x28] sm:$0xff]  }
 0x726   : > { %v8679_v18 = vpop.f32.mrb[16].mxu0 }
 0x727   : > { %v7322_v23 = vpop.f32.mrb[17].mxu0 }
 0x728   : > { %v8681_v24 = vpop.f32.mrb[18].mxu0 }
 0x729   : > { %v1787_v27 = vpack.c.bf16 %v8681_v24, %v8679_v18  ;;  %v7323_v28 = vpop.f32.mrb[19].mxu0  ;;  %v7885_v24 = vld [vmem:[%s9632_s25 + $0x30] sm:$0xff]  }
 0x72e   : > { %v7338_v30 = vpop.f32.mrb[20].mxu0 }
 0x72f   : > { %v1924_v32 = vpop.f32.mrb[21].mxu0  ;;  %v1933_v35 = vadd.f32 %v7338_v30, %v6649_v31 }
 0x730   : > { %v7339_v34 = vpop.f32.mrb[22].mxu0  ;;  %v1925_v38 = vadd.f32 %v6649_v31, %v1924_v32 }
 0x731   : > { %v1936_v36 = vadd.f32 %v7339_v34, %v6649_v31  ;;  %v1927_v37 = vpop.f32.mrb[23].mxu0 }
 0x732   : > { %v1928_v39 = vadd.f32 %v6649_v31, %v1927_v37 }
 0x733   : > { %v1940_v40 = vpack.c.bf16 %v1936_v36, %v1933_v35 }
 0x734   : > { %v1939_v41 = vpack.c.bf16 %v1928_v39, %v1925_v38 }
 0x735   : > { %v2139_v43 = vsel %vm1548_vm7, %v1940_v40, 0 }
 0x736   : > { %v2021_v42 = vsel %vm1548_vm7, %v1939_v41, 0 }
 0x737   : > { %7349 = vmatpush3.bf16.xpose.msra.mxu0 %v2021_v42 }
 0x738   : > { %7360 = vmatprep.subr.bf16.mxu0 %v8191_v1 }
 0x73e   : > { %7351 = vmatmul.mubr.msk.bf16.vlgmr.msra.gmra.mrb[24].mxu0 %vm1548_vm7, %v1863_v22 }
 0x73f   : > { %7361 = vmatpush3.bf16.xpose.msra.mxu0 %v2139_v43  ;;  %7362 = vmatprep.mubr.msk.bf16.mxu0 %vm8192_vm0, %v8191_v1  ;;  %v7879_v43 = vld [vmem:[%s9632_s25 + $0x20] sm:$0xff]  }
 0x746   : > { %7363 = vmatmul.mubr.msk.bf16.vlgmr.msra.gmra.mrb[28].mxu0 %vm1548_vm7, %v1864_v21 }
 0x811   : > { %v2057_v44 = vpop.f32.mrb[24].mxu0 }
 0x812   : > { %v2064_v45 = vmul.f32 0.35355338, %v2057_v44  ;;  %v7352_v46 = vpop.f32.mrb[25].mxu0 }
 0x813   : > { %v2060_v47 = vpop.f32.mrb[26].mxu0 }
 0x814   : > { %v2065_v48 = vmul.f32 0.35355338, %v2060_v47  ;;  %v7353_v49 = vpop.f32.mrb[27].mxu0  ;;  %v2066_v19 = vsel %vm8604_vm8, %v2064_v45, -1e+30 }
 0x815   : > { %v2068_v20 = vsel %vm1600_vm9, %v2066_v19, -inf  ;;  %v7880_v49 = vld [vmem:[%s9632_s25 + $0x28] sm:$0xff]  }
 0x816   : > { %2069 = vmax.xlane.f32.xlu0 %v2068_v20  ;;  %v2067_v22 = vsel %vm8608_vm10, %v2065_v48, -1e+30  ;;  %v1788_v20 = vld [vmem:[%s9570_s14] sm:$0xf] }
 0x817   : > { %v2071_v51 = vsel %vm1600_vm9, %v2067_v22, -inf }
 0x818   : > { %2072 = vmax.xlane.f32.xlu1 %v2071_v51 }
 0x819   : > { %v2175_v15 = vpop.f32.mrb[28].mxu0 }
 0x81a   : > { %v2182_v16 = vmul.f32 0.35355338, %v2175_v15  ;;  %v7364_v21 = vpop.f32.mrb[29].mxu0 }
 0x81b   : > { %v2178_v52 = vpop.f32.mrb[30].mxu0 }
 0x81c   : > { %v2183_v53 = vmul.f32 0.35355338, %v2178_v52  ;;  %v7365_v55 = vpop.f32.mrb[31].mxu0  ;;  %v2184_v56 = vsel %vm8604_vm8, %v2182_v16, -1e+30 }
 0x81d   : > { %v2186_v57 = vsel %vm1600_vm9, %v2184_v56, -inf }
 0x81e   : > { %2187 = vmax.xlane.f32.xlu0 %v2186_v57  ;;  %v2185_v58 = vsel %vm8608_vm10, %v2183_v53, -1e+30 }
 0x81f   : > { %v2189_v59 = vsel %vm1600_vm9, %v2185_v58, -inf }
 0x820   : > { %2190 = vmax.xlane.f32.xlu1 %v2189_v59  ;;  %v7883_v59 = vld [vmem:[%s9633_s12 + $0x20] sm:$0xff]  }
 0x8a3   : > { %v2070_v60 = vpop.xlane.xlu0 %2069 }
 0x8a4   : > { %v2074_v61 = vsub.f32 %v2066_v19, %v2070_v60 }
 0x8a5   : > { %v2073_v62 = vpop.xlane.xlu1 %2072 }
 0x8a6   : > { %v2076_v0 = vmul.f32 1.442695, %v2074_v61  ;;  %v2075_v2 = vsub.f32 %v2067_v22, %v2073_v62  ;;  %v6678_v61 = vld [vmem:[%s9639_s8 + $0x2] ss:$0 sm:$0xff] }
 0x8a8   : > { %7963 = vpow2.f32 %v2076_v0  ;;  %v2078_v3 = vmul.f32 1.442695, %v2075_v2 }
 0x8aa   : > { %7965 = vpow2.f32 %v2078_v3 }
 0x8ab   : > { %v2188_v5 = vpop.xlane.xlu0 %2187 }
 0x8ac   : > { %v2192_v6 = vsub.f32 %v2184_v56, %v2188_v5 }
 0x8ad   : > { %v2191_v7 = vpop.xlane.xlu1 %2190 }
 0x8ae   : > { %v2194_v8 = vmul.f32 1.442695, %v2192_v6  ;;  %v2193_v9 = vsub.f32 %v2185_v58, %v2191_v7  ;;  %v2323_v58 = vsel %vm2263_vm11, %v1788_v20, 0 }
 0x8b0   : > { %7967 = vpow2.f32 %v2194_v8  ;;  %v2196_v11 = vmul.f32 1.442695, %v2193_v9 }
 0x8b2   : > { %v7964_v12 = vpop.eup %7963  ;;  %7969 = vpow2.f32 %v2196_v11 }
 0x8b3   : > { %v2080_v17 = vsel %vm1600_vm9, %v7964_v12, 0.0 }
 0x8b4   : > { %v7966_v14 = vpop.eup %7965  ;;  %2081 = vadd.xlane.f32.xlu0 %v2080_v17 }
 0x8b5   : > { %v2083_v23 = vsel %vm1600_vm9, %v7966_v14, 0.0 }
 0x8b6   : > { %2084 = vadd.xlane.f32.xlu1 %v2083_v23 }
 0x8ba   : > { %v7968_v28 = vpop.eup %7967 }
 0x8bb   : > { %v2198_v30 = vsel %vm1600_vm9, %v7968_v28, 0.0 }
 0x8bc   : > { %v7970_v31 = vpop.eup %7969  ;;  %2199 = vadd.xlane.f32.xlu0 %v2198_v30 }
 0x8bd   : > { %v2201_v32 = vsel %vm1600_vm9, %v7970_v31, 0.0 }
 0x8be   : > { %2202 = vadd.xlane.f32.xlu1 %v2201_v32 }
 0x941   : > { %v2082_v34 = vpop.xlane.xlu0 %2081 }
 0x942   : > { %7971 = vrcp.f32 %v2082_v34  ;;  %v7886_v34 = vld [vmem:[%s9632_s25 + $0x38] sm:$0xff]  }
 0x943   : > { %v2085_v35 = vpop.xlane.xlu1 %2084 }
 0x944   : > { %7973 = vrcp.f32 %v2085_v35  ;;  %v7887_v35 = vld [vmem:[%s9634_s10 + $0x30] sm:$0xff]  }
 0x949   : > { %v2200_v36 = vpop.xlane.xlu0 %2199 }
 0x94a   : > { %7975 = vrcp.f32 %v2200_v36  ;;  %v7888_v36 = vld [vmem:[%s9634_s10 + $0x38] sm:$0xff]  }
 0x94b   : > { %v2203_v37 = vpop.xlane.xlu1 %2202 }
 0x94c   : > { %v7972_v38 = vpop.eup %7971  ;;  %7977 = vrcp.f32 %v2203_v37  ;;  %v6698_v37 = vld [vmem:[%s9569_s13 + $0x2] ss:$0 sm:$0xff] }
 0x94d   : > { %v2088_v40 = vmul.f32 %v7972_v38, %v7964_v12 }
 0x94e   : > { %v7974_v39 = vpop.eup %7973 }
 0x94f   : > { %v2089_v41 = vmul.f32 %v7974_v39, %v7966_v14 }
 0x951   : > { %v2090_v42 = vpack.c.bf16 %v2089_v41, %v2088_v40 }
 0x953   : > { %7357 = vmatmul.mubr.msk.bf16.vlgmr.msra.gmra.mrb[36].mxu1 %vm1600_vm9, %v2090_v42 }
 0x954   : > { %v7976_v44 = vpop.eup %7975  ;;  %7367 = vmatpush3.bf16.msra.mxu1 %v2016_v33  ;;  %7368 = vmatprep.mubr.msk.bf16.mxu1 %vm8192_vm0, %v8191_v1  ;;  %v6668_v33 = vld [vmem:[%s9570_s14 + $0x4] sm:$0xf] }
 0x955   : > { %7384 = vmatprep.subr.bf16.mxu1 %v7879_v43  ;;  %v2206_v46 = vmul.f32 %v7976_v44, %v7968_v28  ;;  %7796 = vmatprep.subr.msk.bf16.mxu0 %vm2263_vm11, %v6668_v33  ;;  %v2265_v19 = vsel %vm2263_vm11, %v6668_v33, 0 }
 0x956   : > { %v7978_v45 = vpop.eup %7977  ;;  %7373 = vmatpush3.bf16.msra.mxu0 %v2265_v19 }
 0x957   : > { %v2207_v47 = vmul.f32 %v7978_v45, %v7970_v31  ;;  %7797 = vmatprep.subr.msk.bf16.mxu0 %vm2263_vm11, %v1788_v20 }
 0x959   : > { %v2208_v48 = vpack.c.bf16 %v2207_v47, %v2206_v46 }
 0x95b   : > { %7369 = vmatmul.mubr.msk.bf16.vlgmr.msra.gmra.mrb[40].mxu1 %vm1600_vm9, %v2208_v48 }
 0x95c   : > { %7385 = vmatpush3.bf16.msra.mxu1 %v7879_v43  ;;  %7388 = vmatprep.mubr.msk.bf16.mxu1 %vm1223_vm1, %v8534_v63 }
 0x95d   : > { %7386 = vmatprep.subr.bf16.mxu1 %v7880_v49 }
 0x960   : > { %7387 = vmatpush3.bf16.msra.mxu1 %v7880_v49 }
 0x961   : > { %7392 = vmatprep.subr.bf16.mxu1 %v7881_v26 }
 0x963   : > { %7389 = vmatmul.mubr.msk.bf16.vlgmr.msra.gmra.mrb[44].mxu1 %vm1223_vm1, %v8540_v4 }
 0x964   : > { %7393 = vmatpush3.bf16.msra.mxu1 %v7881_v26  ;;  %7396 = vmatprep.mubr.msk.bf16.mxu1 %vm1223_vm1, %v8534_v63 }
 0x965   : > { %7394 = vmatprep.subr.bf16.mxu1 %v7882_v29 }
 0x968   : > { %7395 = vmatpush3.bf16.msra.mxu1 %v7882_v29 }
 0x969   : > { %7408 = vmatprep.subr.bf16.mxu1 %v8191_v1 }
 0x96b   : > { %7397 = vmatmul.mubr.msk.bf16.vlgmr.msra.gmra.mrb[48].mxu1 %vm1223_vm1, %v8540_v4 }
 0x96c   : > { %7410 = vmatprep.mubr.msk.bf16.mxu1 %vm8192_vm0, %v8191_v1 }
 0xa26   : > { %v2128_v22 = vpop.f32.mrb[36].mxu1 }
 0xa27   : > { %v7358_v51 = vpop.f32.mrb[37].mxu1 }
 0xa28   : > { %v2131_v15 = vpop.f32.mrb[38].mxu1 }
 0xa29   : > { %v2253_v16 = vpack.c.bf16 %v2131_v15, %v2128_v22  ;;  %v7359_v21 = vpop.f32.mrb[39].mxu1 }
 0xa2b   : > { %7374 = vmatprep.mubr.msk.bf16.mxu0 %vm1548_vm7, %v2253_v16 }
 0xa2e   : > { %v2246_v52 = vpop.f32.mrb[40].mxu1 }
 0xa2f   : > { %v7370_v53 = vpop.f32.mrb[41].mxu1 }
 0xa30   : > { %v2249_v55 = vpop.f32.mrb[42].mxu1 }
 0xa31   : > { %v2254_v56 = vpack.c.bf16 %v2249_v55, %v2246_v52  ;;  %v7371_v57 = vpop.f32.mrb[43].mxu1 }
 0xa33   : > { %7375 = vmatmul.mubr.msk.bf16.vlgmr.msra.gmra.mrb[32].mxu0 %vm1548_vm7, %v2254_v56 }
 0xa34   : > { %7380 = vmatprep.mubr.msk.bf16.mxu0 %vm1548_vm7, %v1786_v13  ;;  %7379 = vmatpush3.bf16.msra.mxu0 %v2323_v58  ;;  %v6688_v13 = vld [vmem:[%s9640_s11 + $0x2] ss:$0 sm:$0xff] }
 0xa35   : > { %7400 = vmatprep.subr.bf16.mxu0 %v7883_v59 }
 0xa36   : > { %v7390_v60 = vpop.f32.mrb[44].mxu1 }
 0xa37   : > { %v2433_v62 = vpop.f32.mrb[45].mxu1  ;;  %v2442_v2 = vadd.f32 %v7390_v60, %v6678_v61 }
 0xa38   : > { %v7391_v0 = vpop.f32.mrb[46].mxu1  ;;  %v2434_v6 = vadd.f32 %v6678_v61, %v2433_v62  ;;  %v6715_v62 = vld [vmem:[%s9639_s8 + $0x3] ss:$0 sm:$0xff] }
 0xa39   : > { %v2445_v3 = vadd.f32 %v7391_v0, %v6678_v61  ;;  %v2436_v5 = vpop.f32.mrb[47].mxu1 }
 0xa3a   : > { %v2437_v7 = vadd.f32 %v6678_v61, %v2436_v5 }
 0xa3b   : > { %v2449_v8 = vpack.c.bf16 %v2445_v3, %v2442_v2 }
 0xa3c   : > { %v2448_v9 = vpack.c.bf16 %v2437_v7, %v2434_v6 }
 0xa3e   : > { %v7398_v25 = vpop.f32.mrb[48].mxu1 }
 0xa3f   : > { %7381 = vmatmul.mubr.msk.bf16.vlgmr.msra.gmra.mrb[32].mxu0 %vm1548_vm7, %v1787_v27  ;;  %v2509_v11 = vpop.f32.mrb[49].mxu1  ;;  %v2518_v17 = vadd.f32 %v7398_v25, %v6688_v13 }
 0xa40   : > { %v7399_v12 = vpop.f32.mrb[50].mxu1  ;;  %7401 = vmatpush3.bf16.msra.mxu0 %v7883_v59  ;;  %7404 = vmatprep.mubr.msk.bf16.mxu0 %vm1223_vm1, %v8534_v63  ;;  %v2510_v28 = vadd.f32 %v6688_v13, %v2509_v11 }
 0xa41   : > { %v2521_v14 = vadd.f32 %v7399_v12, %v6688_v13  ;;  %v2512_v23 = vpop.f32.mrb[51].mxu1  ;;  %7402 = vmatprep.subr.bf16.mxu0 %v7884_v10 }
 0xa42   : > { %v2513_v30 = vadd.f32 %v6688_v13, %v2512_v23  ;;  %v6725_v13 = vld [vmem:[%s9640_s11 + $0x3] ss:$0 sm:$0xff] }
 0xa43   : > { %v2525_v31 = vpack.c.bf16 %v2521_v14, %v2518_v17 }
 0xa44   : > { %v2524_v32 = vpack.c.bf16 %v2513_v30, %v2510_v28  ;;  %7403 = vmatpush3.bf16.msra.mxu0 %v7884_v10 }
 0xa45   : > { %7414 = vmatprep.subr.bf16.mxu0 %v8191_v1  ;;  %v2724_v27 = vsel %vm1548_vm7, %v2525_v31, 0 }
 0xa46   : > { %v2606_v18 = vsel %vm1548_vm7, %v2524_v32, 0 }
 0xa47   : > { %7405 = vmatmul.mubr.msk.bf16.vlgmr.msra.gmra.mrb[36].mxu0 %vm1223_vm1, %v8540_v4  ;;  %7409 = vmatpush3.bf16.xpose.msra.mxu1 %v2606_v18 }
 0xa48   : > { %7420 = vmatprep.subr.bf16.mxu1 %v8191_v1  ;;  %7416 = vmatprep.mubr.msk.bf16.mxu0 %vm8192_vm0, %v8191_v1 }
 0xa4e   : > { %7411 = vmatmul.mubr.msk.bf16.vlgmr.msra.gmra.mrb[52].mxu1 %vm1548_vm7, %v2448_v9 }
 0xa4f   : > { %7421 = vmatpush3.bf16.xpose.msra.mxu1 %v2724_v27  ;;  %7422 = vmatprep.mubr.msk.bf16.mxu1 %vm8192_vm0, %v8191_v1 }
 0xa50   : > { %7438 = vmatprep.subr.bf16.mxu1 %v7885_v24 }
 0xa56   : > { %7423 = vmatmul.mubr.msk.bf16.vlgmr.msra.gmra.mrb[56].mxu1 %vm1548_vm7, %v2449_v8 }
 0xa57   : > { %7439 = vmatpush3.bf16.msra.mxu1 %v7885_v24  ;;  %7442 = vmatprep.mubr.msk.bf16.mxu1 %vm1223_vm1, %v8534_v63 }
 0xa58   : > { %7440 = vmatprep.subr.bf16.mxu1 %v7886_v34 }
 0xa5b   : > { %7441 = vmatpush3.bf16.msra.mxu1 %v7886_v34 }
 0xa5c   : > { %7446 = vmatprep.subr.bf16.mxu1 %v7887_v35 }
 0xa5e   : > { %7443 = vmatmul.mubr.msk.bf16.vlgmr.msra.gmra.mrb[60].mxu1 %vm1223_vm1, %v8540_v4 }
 0xa5f   : > { %7447 = vmatpush3.bf16.msra.mxu1 %v7887_v35  ;;  %7450 = vmatprep.mubr.msk.bf16.mxu1 %vm1223_vm1, %v8534_v63 }
 0xa60   : > { %7448 = vmatprep.subr.bf16.mxu1 %v7888_v36 }
 0xa63   : > { %7449 = vmatpush3.bf16.msra.mxu1 %v7888_v36 }
 0xa64   : > { %7462 = vmatprep.subr.bf16.mxu1 %v8191_v1 }
 0xa66   : > { %7451 = vmatmul.mubr.msk.bf16.vlgmr.msra.gmra.mrb[64].mxu1 %vm1223_vm1, %v8540_v4 }
 0xa67   : > { %7464 = vmatprep.mubr.msk.bf16.mxu1 %vm8192_vm0, %v8191_v1 }
 0xb1a   : > { %v7406_v38 = vpop.f32.mrb[36].mxu0 }
 0xb1b   : > { %v8819_v39 = vadd.f32 %v7406_v38, %v6698_v37  ;;  %v2585_v40 = vpop.f32.mrb[37].mxu0 }
 0xb1c   : > { %v7407_v41 = vpop.f32.mrb[38].mxu0  ;;  %v2586_v44 = vadd.f32 %v6698_v37, %v2585_v40 }
 0xb1d   : > { %v8821_v42 = vadd.f32 %v7407_v41, %v6698_v37  ;;  %v2588_v43 = vpop.f32.mrb[39].mxu0 }
 0xb1e   : > { %v2589_v45 = vadd.f32 %v6698_v37, %v2588_v43 }
 0xb1f   : > { %v2601_v46 = vpack.c.bf16 %v8821_v42, %v8819_v39 }
 0xb20   : > { %v2600_v47 = vpack.c.bf16 %v2589_v45, %v2586_v44 }
 0xb21   : > { %v2642_v48 = vpop.f32.mrb[52].mxu1 }
 0xb22   : > { %v2649_v49 = vmul.f32 0.35355338, %v2642_v48  ;;  %v7412_v26 = vpop.f32.mrb[53].mxu1  ;;  %7415 = vmatpush3.bf16.msra.mxu0 %v2600_v47 }
 0xb23   : > { %v2645_v29 = vpop.f32.mrb[54].mxu1  ;;  %7426 = vmatprep.subr.bf16.mxu0 %v8191_v1 }
 0xb24   : > { %v2650_v33 = vmul.f32 0.35355338, %v2645_v29  ;;  %v7413_v19 = vpop.f32.mrb[55].mxu1  ;;  %v2651_v20 = vsel %vm8604_vm8, %v2649_v49, -1e+30 }
 0xb25   : > { %v2653_v22 = vsel %vm1600_vm9, %v2651_v20, -inf }
 0xb26   : > { %2654 = vmax.xlane.f32.xlu0 %v2653_v22  ;;  %v2652_v51 = vsel %vm8608_vm10, %v2650_v33, -1e+30 }
 0xb27   : > { %v2656_v15 = vsel %vm1600_vm9, %v2652_v51, -inf }
 0xb28   : > { %2657 = vmax.xlane.f32.xlu1 %v2656_v15 }
 0xb29   : > { %v2760_v16 = vpop.f32.mrb[56].mxu1 }
 0xb2a   : > { %v2767_v21 = vmul.f32 0.35355338, %v2760_v16  ;;  %v7424_v52 = vpop.f32.mrb[57].mxu1 }
 0xb2b   : > { %v2763_v53 = vpop.f32.mrb[58].mxu1 }
 0xb2c   : > { %v2768_v55 = vmul.f32 0.35355338, %v2763_v53  ;;  %v7425_v56 = vpop.f32.mrb[59].mxu1  ;;  %v2769_v57 = vsel %vm8604_vm8, %v2767_v21, -1e+30 }
 0xb2d   : > { %v2771_v58 = vsel %vm1600_vm9, %v2769_v57, -inf }
 0xb2e   : > { %2772 = vmax.xlane.f32.xlu0 %v2771_v58  ;;  %v2770_v59 = vsel %vm8608_vm10, %v2768_v55, -1e+30 }
 0xb2f   : > { %v2774_v60 = vsel %vm1600_vm9, %v2770_v59, -inf }
 0xb30   : > { %2775 = vmax.xlane.f32.xlu1 %v2774_v60 }
 0xb31   : > { %v7444_v61 = vpop.f32.mrb[60].mxu1 }
 0xb32   : > { %v2963_v0 = vpop.f32.mrb[61].mxu1  ;;  %v2972_v3 = vadd.f32 %v7444_v61, %v6715_v62 }
 0xb33   : > { %v7445_v2 = vpop.f32.mrb[62].mxu1  ;;  %v2964_v7 = vadd.f32 %v6715_v62, %v2963_v0 }
 0xb34   : > { %v2975_v5 = vadd.f32 %v7445_v2, %v6715_v62  ;;  %v2966_v6 = vpop.f32.mrb[63].mxu1 }
 0xb35   : > { %v2967_v8 = vadd.f32 %v6715_v62, %v2966_v6 }
 0xb36   : > { %v2979_v9 = vpack.c.bf16 %v2975_v5, %v2972_v3 }
 0xb37   : > { %v2978_v10 = vpack.c.bf16 %v2967_v8, %v2964_v7 }
 0xb39   : > { %v7452_v25 = vpop.f32.mrb[64].mxu1 }
 0xb3a   : > { %v3039_v11 = vpop.f32.mrb[65].mxu1  ;;  %v3048_v17 = vadd.f32 %v7452_v25, %v6725_v13 }
 0xb3b   : > { %v7453_v12 = vpop.f32.mrb[66].mxu1  ;;  %v3040_v28 = vadd.f32 %v6725_v13, %v3039_v11 }
 0xb3c   : > { %v3051_v14 = vadd.f32 %v7453_v12, %v6725_v13  ;;  %v3042_v23 = vpop.f32.mrb[67].mxu1 }
 0xb3d   : > { %v3043_v30 = vadd.f32 %v6725_v13, %v3042_v23 }
 0xb3e   : > { %v3055_v31 = vpack.c.bf16 %v3051_v14, %v3048_v17 }
 0xb3f   : > { %v3054_v32 = vpack.c.bf16 %v3043_v30, %v3040_v28 }
 0xb40   : > { %v3254_v24 = vsel %vm1548_vm7, %v3055_v31, 0 }
 0xb41   : > { %v3136_v18 = vsel %vm1548_vm7, %v3054_v32, 0 }
 0xb42   : > { %7463 = vmatpush3.bf16.xpose.msra.mxu1 %v3136_v18 }
 0xb43   : > { %7474 = vmatprep.subr.bf16.mxu1 %v8191_v1 }
 0xb49   : > { %7465 = vmatmul.mubr.msk.bf16.vlgmr.msra.gmra.mrb[68].mxu1 %vm1548_vm7, %v2978_v10 }
 0xb4a   : > { %7475 = vmatpush3.bf16.xpose.msra.mxu1 %v3254_v24  ;;  %7476 = vmatprep.mubr.msk.bf16.mxu1 %vm8192_vm0, %v8191_v1 }
 0xb51   : > { %7477 = vmatmul.mubr.msk.bf16.vlgmr.msra.gmra.mrb[72].mxu1 %vm1548_vm7, %v2979_v9 }
 0xbb3   : > { %v2655_v27 = vpop.xlane.xlu0 %2654 }
 0xbb4   : > { %v2659_v34 = vsub.f32 %v2651_v20, %v2655_v27 }
 0xbb5   : > { %v2658_v35 = vpop.xlane.xlu1 %2657 }
 0xbb6   : > { %v2661_v36 = vmul.f32 1.442695, %v2659_v34  ;;  %v2660_v37 = vsub.f32 %v2652_v51, %v2658_v35 }
 0xbb8   : > { %7979 = vpow2.f32 %v2661_v36  ;;  %v2663_v38 = vmul.f32 1.442695, %v2660_v37 }
 0xbba   : > { %7981 = vpow2.f32 %v2663_v38 }
 0xbbb   : > { %v2773_v40 = vpop.xlane.xlu0 %2772 }
 0xbbc   : > { %v2777_v41 = vsub.f32 %v2769_v57, %v2773_v40 }
 0xbbd   : > { %v2776_v43 = vpop.xlane.xlu1 %2775 }
 0xbbe   : > { %v2779_v44 = vmul.f32 1.442695, %v2777_v41  ;;  %v2778_v45 = vsub.f32 %v2770_v59, %v2776_v43 }
 0xbc0   : > { %7983 = vpow2.f32 %v2779_v44  ;;  %v2781_v47 = vmul.f32 1.442695, %v2778_v45  ;;  %v6707_v45 = vld [vmem:[%s9570_s14 + $0x8] sm:$0xf] }
 0xbc2   : > { %v7980_v48 = vpop.eup %7979  ;;  %7985 = vpow2.f32 %v2781_v47 }
 0xbc3   : > { %v2665_v49 = vsel %vm1600_vm9, %v7980_v48, 0.0 }
 0xbc4   : > { %v7982_v26 = vpop.eup %7981  ;;  %2666 = vadd.xlane.f32.xlu0 %v2665_v49  ;;  %v7889_v49 = vld [vmem:[%s9633_s12 + $0x30] sm:$0xff]  }
 0xbc5   : > { %v2668_v29 = vsel %vm1600_vm9, %v7982_v26, 0.0 }
 0xbc6   : > { %2669 = vadd.xlane.f32.xlu1 %v2668_v29 }
 0xbca   : > { %v7984_v33 = vpop.eup %7983 }
 0xbcb   : > { %v2783_v19 = vsel %vm1600_vm9, %v7984_v33, 0.0 }
 0xbcc   : > { %v7986_v20 = vpop.eup %7985  ;;  %2784 = vadd.xlane.f32.xlu0 %v2783_v19 }
 0xbcd   : > { %v2786_v22 = vsel %vm1600_vm9, %v7986_v20, 0.0 }
 0xbce   : > { %2787 = vadd.xlane.f32.xlu1 %v2786_v22 }
 0xc1c   : > { %v3172_v51 = vpop.f32.mrb[68].mxu1 }
 0xc1d   : > { %v3179_v15 = vmul.f32 0.35355338, %v3172_v51  ;;  %v7466_v16 = vpop.f32.mrb[69].mxu1 }
 0xc1e   : > { %v3175_v21 = vpop.f32.mrb[70].mxu1 }
 0xc1f   : > { %v3180_v52 = vmul.f32 0.35355338, %v3175_v21  ;;  %v7467_v53 = vpop.f32.mrb[71].mxu1  ;;  %v3181_v55 = vsel %vm8604_vm8, %v3179_v15, -1e+30 }
 0xc20   : > { %v3183_v56 = vsel %vm1600_vm9, %v3181_v55, -inf }
 0xc21   : > { %3184 = vmax.xlane.f32.xlu0 %v3183_v56  ;;  %v3182_v57 = vsel %vm8608_vm10, %v3180_v52, -1e+30 }
 0xc22   : > { %v3186_v58 = vsel %vm1600_vm9, %v3182_v57, -inf }
 0xc23   : > { %3187 = vmax.xlane.f32.xlu1 %v3186_v58 }
 0xc24   : > { %v3290_v59 = vpop.f32.mrb[72].mxu1 }
 0xc25   : > { %v3297_v60 = vmul.f32 0.35355338, %v3290_v59  ;;  %v7478_v61 = vpop.f32.mrb[73].mxu1 }
 0xc26   : > { %v3293_v62 = vpop.f32.mrb[74].mxu1 }
 0xc27   : > { %v3298_v0 = vmul.f32 0.35355338, %v3293_v62  ;;  %v7479_v2 = vpop.f32.mrb[75].mxu1  ;;  %v3299_v3 = vsel %vm8604_vm8, %v3297_v60, -1e+30 }
 0xc28   : > { %v3301_v5 = vsel %vm1600_vm9, %v3299_v3, -inf }
 0xc29   : > { %3302 = vmax.xlane.f32.xlu0 %v3301_v5  ;;  %v3300_v6 = vsel %vm8608_vm10, %v3298_v0, -1e+30 }
 0xc2a   : > { %v3304_v7 = vsel %vm1600_vm9, %v3300_v6, -inf }
 0xc2b   : > { %3305 = vmax.xlane.f32.xlu1 %v3304_v7 }
 0xc51   : > { %v2667_v8 = vpop.xlane.xlu0 %2666 }
 0xc52   : > { %7987 = vrcp.f32 %v2667_v8 }
 0xc53   : > { %v2670_v9 = vpop.xlane.xlu1 %2669 }
 0xc54   : > { %7989 = vrcp.f32 %v2670_v9 }
 0xc59   : > { %v2785_v10 = vpop.xlane.xlu0 %2784 }
 0xc5a   : > { %7991 = vrcp.f32 %v2785_v10 }
 0xc5b   : > { %v2788_v25 = vpop.xlane.xlu1 %2787 }
 0xc5c   : > { %v7988_v13 = vpop.eup %7987  ;;  %7993 = vrcp.f32 %v2788_v25 }
 0xc5d   : > { %v2673_v12 = vmul.f32 %v7988_v13, %v7980_v48  ;;  %v2849_v48 = vsel %vm2263_vm11, %v6707_v45, 0 }
 0xc5e   : > { %v7990_v11 = vpop.eup %7989 }
 0xc5f   : > { %v2674_v17 = vmul.f32 %v7990_v11, %v7982_v26 }
 0xc61   : > { %v2675_v14 = vpack.c.bf16 %v2674_v17, %v2673_v12 }
 0xc63   : > { %7417 = vmatmul.mubr.msk.bf16.vlgmr.msra.gmra.mrb[40].mxu0 %vm1600_vm9, %v2675_v14 }
 0xc64   : > { %v7992_v23 = vpop.eup %7991  ;;  %7427 = vmatpush3.bf16.msra.mxu0 %v2601_v46  ;;  %7428 = vmatprep.mubr.msk.bf16.mxu0 %vm8192_vm0, %v8191_v1 }
 0xc65   : > { %v2791_v30 = vmul.f32 %v7992_v23, %v7984_v33  ;;  %7798 = vmatprep.subr.msk.bf16.mxu0 %vm2263_vm11, %v6707_v45  ;;  %v8124_v45 = vld [vmem:[#allocation2] sm:$0xff] }
 0xc66   : > { %v7994_v28 = vpop.eup %7993 }
 0xc67   : > { %v2792_v31 = vmul.f32 %v7994_v28, %v7986_v20 }
 0xc69   : > { %v2793_v32 = vpack.c.bf16 %v2792_v31, %v2791_v30  ;;  %v6744_v31 = vld [vmem:[%s9570_s14 + $0xc] sm:$0xf] }
 0xc6b   : > { %7429 = vmatmul.mubr.msk.bf16.vlgmr.msra.gmra.mrb[44].mxu0 %vm1600_vm9, %v2793_v32  ;;  %v3379_v32 = vsel %vm2263_vm11, %v6744_v31, 0 }
 0xc6c   : > { %7433 = vmatpush3.bf16.msra.mxu0 %v2849_v48 }
 0xc6d   : > { %7454 = vmatprep.subr.bf16.mxu0 %v7889_v49 }
 0xcae   : > { %v3185_v18 = vpop.xlane.xlu0 %3184 }
 0xcaf   : > { %v3189_v24 = vsub.f32 %v3181_v55, %v3185_v18 }
 0xcb0   : > { %v3188_v27 = vpop.xlane.xlu1 %3187 }
 0xcb1   : > { %v3191_v34 = vmul.f32 1.442695, %v3189_v24  ;;  %v3190_v35 = vsub.f32 %v3182_v57, %v3188_v27  ;;  %v7890_v57 = vld [vmem:[%s9633_s12 + $0x38] sm:$0xff]  }
 0xcb3   : > { %7995 = vpow2.f32 %v3191_v34  ;;  %v3193_v36 = vmul.f32 1.442695, %v3190_v35 }
 0xcb5   : > { %7997 = vpow2.f32 %v3193_v36 }
 0xcb6   : > { %v3303_v37 = vpop.xlane.xlu0 %3302 }
 0xcb7   : > { %v3307_v39 = vsub.f32 %v3299_v3, %v3303_v37 }
 0xcb8   : > { %v3306_v42 = vpop.xlane.xlu1 %3305 }
 0xcb9   : > { %v3309_v46 = vmul.f32 1.442695, %v3307_v39  ;;  %v3308_v38 = vsub.f32 %v3300_v6, %v3306_v42 }
 0xcbb   : > { %7999 = vpow2.f32 %v3309_v46  ;;  %v3311_v40 = vmul.f32 1.442695, %v3308_v38 }
 0xcbd   : > { %v7996_v41 = vpop.eup %7995  ;;  %8001 = vpow2.f32 %v3311_v40  ;;  %v6747_v40 = vld [vmem:[%s9571_s15] ss:$0 sm:$0xff] }
 0xcbe   : > { %v3195_v43 = vsel %vm1600_vm9, %v7996_v41, 0.0 }
 0xcbf   : > { %v7998_v44 = vpop.eup %7997  ;;  %3196 = vadd.xlane.f32.xlu0 %v3195_v43  ;;  %v8123_v43 = vld [vmem:[#allocation2 + $0x10] sm:$0xff] }
 0xcc0   : > { %v3198_v47 = vsel %vm1600_vm9, %v7998_v44, 0.0 }
 0xcc1   : > { %3199 = vadd.xlane.f32.xlu1 %v3198_v47 }
 0xcc5   : > { %v8000_v26 = vpop.eup %7999 }
 0xcc6   : > { %v3313_v29 = vsel %vm1600_vm9, %v8000_v26, 0.0 }
 0xcc7   : > { %v8002_v33 = vpop.eup %8001  ;;  %3314 = vadd.xlane.f32.xlu0 %v3313_v29  ;;  %v8125_v29 = vld [vmem:[#allocation2 + $0x18] sm:$0xff] }
 0xcc8   : > { %v3316_v19 = vsel %vm1600_vm9, %v8002_v33, 0.0 }
 0xcc9   : > { %3317 = vadd.xlane.f32.xlu1 %v3316_v19  ;;  %v8126_v19 = vld [vmem:[#allocation2 + $0x8] sm:$0xff] }
 0xd36   : > { %v2713_v20 = vpop.f32.mrb[40].mxu0 }
 0xd37   : > { %v7418_v22 = vpop.f32.mrb[41].mxu0 }
 0xd38   : > { %v2716_v51 = vpop.f32.mrb[42].mxu0 }
 0xd39   : > { %v2838_v15 = vpack.c.bf16 %v2716_v51, %v2713_v20  ;;  %v7419_v16 = vpop.f32.mrb[43].mxu0 }
 0xd3b   : > { %7434 = vmatprep.mubr.msk.bf16.mxu0 %vm1548_vm7, %v2838_v15 }
 0xd3e   : > { %v2831_v21 = vpop.f32.mrb[44].mxu0 }
 0xd3f   : > { %v7430_v52 = vpop.f32.mrb[45].mxu0 }
 0xd40   : > { %v2834_v53 = vpop.f32.mrb[46].mxu0 }
 0xd41   : > { %v2839_v55 = vpack.c.bf16 %v2834_v53, %v2831_v21  ;;  %v7431_v56 = vpop.f32.mrb[47].mxu0 }
 0xd43   : > { %7435 = vmatmul.mubr.msk.bf16.vlgmr.msra.gmra.mrb[32].mxu0 %vm1548_vm7, %v2839_v55 }
 0xd44   : > { %7455 = vmatpush3.bf16.msra.mxu0 %v7889_v49  ;;  %7458 = vmatprep.mubr.msk.bf16.mxu0 %vm1223_vm1, %v8534_v63  ;;  %v6735_v63 = vld [vmem:[%s9569_s13 + $0x3] ss:$0 sm:$0xff] }
 0xd45   : > { %7456 = vmatprep.subr.bf16.mxu0 %v7890_v57 }
 0xd48   : > { %7457 = vmatpush3.bf16.msra.mxu0 %v7890_v57 }
 0xd49   : > { %7468 = vmatprep.subr.bf16.mxu0 %v8191_v1 }
 0xd4b   : > { %7459 = vmatmul.mubr.msk.bf16.vlgmr.msra.gmra.mrb[48].mxu0 %vm1223_vm1, %v8540_v4 }
 0xd4c   : > { %7470 = vmatprep.mubr.msk.bf16.mxu0 %vm8192_vm0, %v8191_v1  ;;  %v3197_v59 = vpop.xlane.xlu0 %3196 }
 0xd4e   : > { %v3200_v58 = vpop.xlane.xlu1 %3199 }
 0xd4f   : > { %8003 = vrcp.f32 %v3200_v58 }
 0xd50   : > { %8005 = vrcp.f32 %v3197_v59 }
 0xd54   : > { %v3315_v61 = vpop.xlane.xlu0 %3314 }
 0xd56   : > { %v3318_v60 = vpop.xlane.xlu1 %3317 }
 0xd57   : > { %8007 = vrcp.f32 %v3318_v60 }
 0xd58   : > { %8009 = vrcp.f32 %v3315_v61 }
 0xd59   : > { %v8004_v2 = vpop.eup %8003 }
 0xd5a   : > { %v8006_v7 = vpop.eup %8005  ;;  %v3204_v10 = vmul.f32 %v8004_v2, %v7998_v44 }
 0xd5b   : > { %v3203_v11 = vmul.f32 %v8006_v7, %v7996_v41 }
 0xd5d   : > { %v3205_v12 = vpack.c.bf16 %v3204_v10, %v3203_v11  ;;  %v7892_v11 = vld [vmem:[%s9574_s18 + $0x8] sm:$0xff]  }
 0xd61   : > { %v8008_v17 = vpop.eup %8007 }
 0xd62   : > { %v8010_v14 = vpop.eup %8009  ;;  %v3322_v23 = vmul.f32 %v8008_v17, %v8002_v33 }
 0xd63   : > { %v3321_v28 = vmul.f32 %v8010_v14, %v8000_v26 }
 0xd65   : > { %v3323_v30 = vpack.c.bf16 %v3322_v23, %v3321_v28 }
 0xe1e   : > { %v7460_v62 = vpop.f32.mrb[48].mxu0 }
 0xe1f   : > { %v3115_v0 = vpop.f32.mrb[49].mxu0  ;;  %v3124_v4 = vadd.f32 %v7460_v62, %v6735_v63 }
 0xe20   : > { %v7461_v3 = vpop.f32.mrb[50].mxu0  ;;  %v3116_v8 = vadd.f32 %v6735_v63, %v3115_v0 }
 0xe21   : > { %v3127_v5 = vadd.f32 %v7461_v3, %v6735_v63  ;;  %v3118_v6 = vpop.f32.mrb[51].mxu0 }
 0xe22   : > { %v3119_v9 = vadd.f32 %v6735_v63, %v3118_v6 }
 0xe23   : > { %v3131_v25 = vpack.c.bf16 %v3127_v5, %v3124_v4 }
 0xe24   : > { %v3130_v13 = vpack.c.bf16 %v3119_v9, %v3116_v8 }
 0xe26   : > { %7469 = vmatpush3.bf16.msra.mxu0 %v3130_v13  ;;  %v7891_v13 = vld [vmem:[%s9574_s18] sm:$0xff]  }
 0xe27   : > { %7480 = vmatprep.subr.bf16.mxu0 %v8191_v1  ;;  %7492 = vmatprep.subr.bf16.mxu1 %v7891_v13 }
 0xe28   : > { %7493 = vmatpush3.bf16.msra.mxu1 %v7891_v13 }
 0xe29   : > { %7471 = vmatmul.mubr.msk.bf16.vlgmr.msra.gmra.mrb[52].mxu0 %vm1600_vm9, %v3205_v12  ;;  %7494 = vmatprep.subr.bf16.mxu1 %v7892_v11 }
 0xe2a   : > { %7481 = vmatpush3.bf16.msra.mxu0 %v3131_v25  ;;  %7482 = vmatprep.mubr.msk.bf16.mxu0 %vm8192_vm0, %v8191_v1 }
 0xe2b   : > { %7799 = vmatprep.subr.msk.bf16.mxu0 %vm2263_vm11, %v6744_v31 }
 0xe2c   : > { %7495 = vmatpush3.bf16.msra.mxu1 %v7892_v11 }
 0xe31   : > { %7483 = vmatmul.mubr.msk.bf16.vlgmr.msra.gmra.mrb[56].mxu0 %vm1600_vm9, %v3323_v30 }
 0xe32   : > { %7487 = vmatpush3.bf16.msra.mxu0 %v3379_v32 }
 0xefc   : > { %v3243_v18 = vpop.f32.mrb[52].mxu0 }
 0xefd   : > { %v7472_v24 = vpop.f32.mrb[53].mxu0 }
 0xefe   : > { %v3246_v27 = vpop.f32.mrb[54].mxu0 }
 0xeff   : > { %v3368_v34 = vpack.c.bf16 %v3246_v27, %v3243_v18  ;;  %v7473_v35 = vpop.f32.mrb[55].mxu0 }
 0xf01   : > { %7488 = vmatprep.mubr.msk.bf16.mxu0 %vm1548_vm7, %v3368_v34 }
 0xf04   : > { %v3361_v36 = vpop.f32.mrb[56].mxu0 }
 0xf05   : > { %v7484_v37 = vpop.f32.mrb[57].mxu0 }
 0xf06   : > { %v3364_v39 = vpop.f32.mrb[58].mxu0 }
 0xf07   : > { %v3369_v42 = vpack.c.bf16 %v3364_v39, %v3361_v36  ;;  %v7485_v46 = vpop.f32.mrb[59].mxu0  ;;  %v6748_v36 = vld [vmem:[%s9572_s16] ss:$0 sm:$0xff] }
 0xf09   : > { %7489 = vmatmul.mubr.msk.bf16.vlgmr.msra.gmra.mrb[32].mxu0 %vm1548_vm7, %v3369_v42 }
 0xfdc   : > { %v7490_v38 = vpop.f32.mrb[32].mxu0 }
 0xfdd   : > { %v3415_v41 = vpop.f32.mrb[33].mxu0  ;;  %v3436_v44 = vadd.f32 %v8123_v43, %v7490_v38 }
 0xfde   : > { %v3434_v47 = vadd.f32 %v8124_v45, %v3415_v41  ;;  %v7491_v48 = vpop.f32.mrb[34].mxu0 }
 0xfdf   : > { %v3418_v49 = vpop.f32.mrb[35].mxu0  ;;  %v3437_v33 = vadd.f32 %v8125_v29, %v7491_v48  ;;  %v8918_v22 = vadd.f32 %v6747_v40, %v3436_v44 }
 0xfe0   : > { %v8916_v26 = vadd.f32 %v6747_v40, %v3434_v47  ;;  %v3435_v20 = vadd.f32 %v8126_v19, %v3418_v49 }
 0xfe1   : > { %v8924_v16 = vadd.f32 %v6747_v40, %v3437_v33  ;;  %v3457_v52 = vsel %vm1223_vm1, %v8918_v22, 0.0 }
 0xfe2   : > { %v8920_v51 = vadd.f32 %v6747_v40, %v3435_v20  ;;  %v3451_v15 = vsel %vm1223_vm1, %v8916_v26, 0.0  ;;  %v6749_v40 = vld [vmem:[%s9573_s17] ss:$0 sm:$0xff] }
 0xfe3   : > { %3452 = vadd.xlane.f32.xlu0 %v3451_v15  ;;  %v3460_v53 = vsel %vm1223_vm1, %v8924_v16, 0.0 }
 0xfe4   : > { %v3454_v21 = vsel %vm1223_vm1, %v8920_v51, 0.0 }
 0xfe5   : > { %3455 = vadd.xlane.f32.xlu1 %v3454_v21  ;;  %v7893_v21 = vld [vmem:[%s9576_s20] sm:$0xff]  }
 0xfe6   : > { %7500 = vmatprep.subr.bf16.mxu1 %v7893_v21 }
 0xfe7   : > { %3458 = vadd.xlane.f32.xlu0 %v3457_v52  ;;  %v7894_v52 = vld [vmem:[%s9576_s20 + $0x8] sm:$0xff]  }
 0xfe9   : > { %3461 = vadd.xlane.f32.xlu1 %v3460_v53  ;;  %v7895_v53 = vld [vmem:[%s9576_s20 + $0x10] sm:$0xff]  }
0x1070   : > { %v3453_v55 = vpop.xlane.xlu0 %3452 }
0x1071   : > { %v3463_v56 = vmul.f32 0.03125, %v3453_v55  ;;  %v7896_v55 = vld [vmem:[%s9576_s20 + $0x18] sm:$0xff]  }
0x1072   : > { %v3456_v57 = vpop.xlane.xlu1 %3455 }
0x1073   : > { %v3467_v58 = vsub.f32 %v8916_v26, %v3463_v56  ;;  %v3464_v59 = vmul.f32 0.03125, %v3456_v57  ;;  %v7897_v56 = vld [vmem:[%s9576_s20 + $0x20] sm:$0xff]   ;;  %v7898_v57 = vld [vmem:[%s9576_s20 + $0x28] sm:$0xff]  }
0x1074   : > { %v3459_v60 = vpop.xlane.xlu0 %3458 }
0x1075   : > { %v3468_v61 = vsub.f32 %v8920_v51, %v3464_v59  ;;  %v3465_v62 = vmul.f32 0.03125, %v3459_v60  ;;  %v3471_v63 = vmul.f32 %v3467_v58, %v3467_v58  ;;  %v7900_v59 = vld [vmem:[%s9576_s20 + $0x38] sm:$0xff]   ;;  %v6750_v60 = vld [vmem:[%s9575_s19] ss:$0 sm:$0xff] }
0x1076   : > { %v3462_v0 = vpop.xlane.xlu1 %3461 }
0x1077   : > { %v3469_v2 = vsub.f32 %v8918_v22, %v3465_v62  ;;  %v3466_v3 = vmul.f32 0.03125, %v3462_v0  ;;  %v3475_v4 = vsel %vm1223_vm1, %v3471_v63, 0.0  ;;  %v3472_v5 = vmul.f32 %v3468_v61, %v3468_v61 }
0x1078   : > { %3476 = vadd.xlane.f32.xlu0 %v3475_v4 }
0x1079   : > { %v3470_v6 = vsub.f32 %v8924_v16, %v3466_v3  ;;  %v3478_v7 = vsel %vm1223_vm1, %v3472_v5, 0.0  ;;  %v3473_v8 = vmul.f32 %v3469_v2, %v3469_v2 }
0x107a   : > { %3479 = vadd.xlane.f32.xlu1 %v3478_v7 }
0x107b   : > { %v3481_v9 = vsel %vm1223_vm1, %v3473_v8, 0.0  ;;  %v3474_v10 = vmul.f32 %v3470_v6, %v3470_v6 }
0x107c   : > { %3482 = vadd.xlane.f32.xlu0 %v3481_v9 }
0x107d   : > { %v3484_v25 = vsel %vm1223_vm1, %v3474_v10, 0.0 }
0x107e   : > { %3485 = vadd.xlane.f32.xlu1 %v3484_v25 }
0x1105   : > { %v3477_v12 = vpop.xlane.xlu0 %3476 }
0x1106   : > { %v3487_v17 = vmul.f32 0.03125, %v3477_v12 }
0x1107   : > { %v3480_v14 = vpop.xlane.xlu1 %3479 }
0x1108   : > { %v3491_v23 = vadd.f32 1e-05, %v3487_v17  ;;  %v3488_v28 = vmul.f32 0.03125, %v3480_v14 }
0x1109   : > { %v3483_v30 = vpop.xlane.xlu0 %3482 }
0x110a   : > { %8011 = vrsqrt.f32 %v3491_v23  ;;  %v3492_v31 = vadd.f32 1e-05, %v3488_v28  ;;  %v3489_v32 = vmul.f32 0.03125, %v3483_v30 }
0x110b   : > { %v3486_v18 = vpop.xlane.xlu1 %3485 }
0x110c   : > { %8013 = vrsqrt.f32 %v3492_v31  ;;  %v3493_v24 = vadd.f32 1e-05, %v3489_v32  ;;  %v3490_v27 = vmul.f32 0.03125, %v3486_v18 }
0x110e   : > { %8015 = vrsqrt.f32 %v3493_v24  ;;  %v3494_v34 = vadd.f32 1e-05, %v3490_v27 }
0x1110   : > { %8017 = vrsqrt.f32 %v3494_v34 }
0x1114   : > { %v8012_v35 = vpop.eup %8011 }
0x1115   : > { %v3499_v37 = vmul.f32 %v8012_v35, %v3467_v58  ;;  %v7899_v58 = vld [vmem:[%s9576_s20 + $0x30] sm:$0xff]  }
0x1116   : > { %v8014_v39 = vpop.eup %8013 }
0x1117   : > { %v3500_v42 = vmul.f32 %v8014_v39, %v3468_v61  ;;  %v3509_v46 = vmul.f32 %v6748_v36, %v3499_v37 }
0x1118   : > { %v8016_v38 = vpop.eup %8015 }
0x1119   : > { %v3501_v41 = vmul.f32 %v8016_v38, %v3469_v2  ;;  %v3510_v43 = vmul.f32 %v6748_v36, %v3500_v42  ;;  %v3519_v48 = vadd.f32 %v6749_v40, %v3509_v46 }
0x111a   : > { %v8018_v44 = vpop.eup %8017 }
0x111b   : > { %v3511_v45 = vmul.f32 %v6748_v36, %v3501_v41  ;;  %v3502_v47 = vmul.f32 %v8018_v44, %v3470_v6  ;;  %v3520_v49 = vadd.f32 %v6749_v40, %v3510_v43 }
0x111d   : > { %v3512_v29 = vmul.f32 %v6748_v36, %v3502_v47  ;;  %v3523_v33 = vpack.c.bf16 %v3520_v49, %v3519_v48  ;;  %v3521_v19 = vadd.f32 %v6749_v40, %v3511_v45 }
0x111f   : > { %7496 = vmatprep.mubr.msk.bf16.mxu1 %vm1223_vm1, %v3523_v33  ;;  %v3522_v20 = vadd.f32 %v6749_v40, %v3512_v29 }
0x1121   : > { %v3524_v15 = vpack.c.bf16 %v3522_v20, %v3521_v19 }
0x1123   : > { %7497 = vmatmul.mubr.msk.bf16.vlgmr.msra.gmra.mrb[76].mxu1 %vm1223_vm1, %v3524_v15  ;;  %v6763_v15 = vld [vmem:[%s9577_s21] ss:$0 sm:$0xff] }
0x1124   : > { %7501 = vmatpush3.bf16.msra.mxu1 %v7893_v21 }
0x1125   : > { %7502 = vmatprep.subr.bf16.mxu1 %v7894_v52 }
0x1128   : > { %7503 = vmatpush3.bf16.msra.mxu1 %v7894_v52 }
0x1129   : > { %7504 = vmatprep.subr.bf16.mxu1 %v7895_v53 }
0x112c   : > { %7505 = vmatpush3.bf16.msra.mxu1 %v7895_v53 }
0x112d   : > { %7506 = vmatprep.subr.bf16.mxu1 %v7896_v55 }
0x1130   : > { %7507 = vmatpush3.bf16.msra.mxu1 %v7896_v55 }
0x1131   : > { %7508 = vmatprep.subr.bf16.mxu1 %v7897_v56 }
0x1134   : > { %7509 = vmatpush3.bf16.msra.mxu1 %v7897_v56 }
0x1135   : > { %7510 = vmatprep.subr.bf16.mxu1 %v7898_v57 }
0x1138   : > { %7511 = vmatpush3.bf16.msra.mxu1 %v7898_v57 }
0x1139   : > { %7512 = vmatprep.subr.bf16.mxu1 %v7899_v58 }
0x113c   : > { %7513 = vmatpush3.bf16.msra.mxu1 %v7899_v58 }
0x113d   : > { %7514 = vmatprep.subr.bf16.mxu1 %v7900_v59 }
0x1140   : > { %7515 = vmatpush3.bf16.msra.mxu1 %v7900_v59 }
0x1141   : > { %7550 = vmatprep.subr.bf16.mxu1 %v8191_v1 }
0x11f6   : > { %v7498_v61 = vpop.f32.mrb[76].mxu1 }
0x11f7   : > { %v3597_v62 = vadd.f32 %v7498_v61, %v6750_v60  ;;  %v3588_v63 = vpop.f32.mrb[77].mxu1 }
0x11f8   : > { %v3589_v0 = vadd.f32 %v6750_v60, %v3588_v63  ;;  %v7499_v2 = vpop.f32.mrb[78].mxu1 }
0x11f9   : > { %v3609_v3 = vmul.f32 0.044715, %v3597_v62  ;;  %v3600_v4 = vadd.f32 %v7499_v2, %v6750_v60  ;;  %v3591_v5 = vpop.f32.mrb[79].mxu1  ;;  %v3605_v38 = vmul.f32 0.5, %v3597_v62 }
0x11fa   : > { %v3607_v6 = vmul.f32 0.044715, %v3589_v0  ;;  %v3592_v7 = vadd.f32 %v6750_v60, %v3591_v5  ;;  %v3603_v43 = vmul.f32 0.5, %v3589_v0 }
0x11fb   : > { %v3613_v8 = vmul.f32 %v3609_v3, %v3597_v62  ;;  %v3610_v9 = vmul.f32 0.044715, %v3600_v4  ;;  %v3606_v40 = vmul.f32 0.5, %v3600_v4 }
0x11fc   : > { %v3611_v10 = vmul.f32 %v3607_v6, %v3589_v0  ;;  %v3608_v25 = vmul.f32 0.044715, %v3592_v7  ;;  %v3604_v44 = vmul.f32 0.5, %v3592_v7 }
0x11fd   : > { %v3617_v13 = vmul.f32 %v3613_v8, %v3597_v62  ;;  %v3614_v11 = vmul.f32 %v3610_v9, %v3600_v4 }
0x11fe   : > { %v3615_v12 = vmul.f32 %v3611_v10, %v3589_v0  ;;  %v3612_v17 = vmul.f32 %v3608_v25, %v3592_v7 }
0x11ff   : > { %v3621_v14 = vadd.f32 %v3617_v13, %v3597_v62  ;;  %v3618_v23 = vmul.f32 %v3614_v11, %v3600_v4 }
0x1200   : > { %v3616_v28 = vmul.f32 %v3612_v17, %v3592_v7  ;;  %v3619_v30 = vadd.f32 %v3615_v12, %v3589_v0 }
0x1201   : > { %v3625_v31 = vmul.f32 0.7978846, %v3621_v14  ;;  %v3622_v32 = vadd.f32 %v3618_v23, %v3600_v4 }
0x1202   : > { %v3620_v18 = vadd.f32 %v3616_v28, %v3592_v7  ;;  %v3623_v24 = vmul.f32 0.7978846, %v3619_v30 }
0x1203   : > { %8019 = vtanh.f32 %v3625_v31  ;;  %v3626_v27 = vmul.f32 0.7978846, %v3622_v32  ;;  %v7901_v31 = vld [vmem:[%s9632_s25 + $0x40] sm:$0xff]   ;;  %v7902_v32 = vld [vmem:[%s9632_s25 + $0x48] sm:$0xff]  }
0x1204   : > { %v3624_v34 = vmul.f32 0.7978846, %v3620_v18  ;;  %8021 = vtanh.f32 %v3623_v24  ;;  %7520 = vmatprep.subr.bf16.mxu0 %v7901_v31  ;;  %v7903_v18 = vld [vmem:[%s9634_s10 + $0x40] sm:$0xff]  }
0x1205   : > { %8023 = vtanh.f32 %v3626_v27  ;;  %7521 = vmatpush3.bf16.msra.mxu0 %v7901_v31 }
0x1206   : > { %8025 = vtanh.f32 %v3624_v34  ;;  %7522 = vmatprep.subr.bf16.mxu0 %v7902_v32 }
0x1209   : > { %7523 = vmatpush3.bf16.msra.mxu0 %v7902_v32 }
0x120a   : > { %7528 = vmatprep.subr.bf16.mxu0 %v7903_v18 }
0x120d   : > { %v8020_v35 = vpop.eup %8019 }
0x120e   : > { %v8022_v36 = vpop.eup %8021  ;;  %v3633_v37 = vadd.f32 1.0, %v8020_v35 }
0x120f   : > { %v8024_v39 = vpop.eup %8023  ;;  %v3631_v42 = vadd.f32 1.0, %v8022_v36 }
0x1210   : > { %v8026_v46 = vpop.eup %8025  ;;  %v3634_v41 = vadd.f32 1.0, %v8024_v39  ;;  %v3637_v47 = vmul.f32 %v3633_v37, %v3605_v38 }
0x1211   : > { %v3632_v45 = vadd.f32 1.0, %v8026_v46  ;;  %v3635_v49 = vmul.f32 %v3631_v42, %v3603_v43 }
0x1212   : > { %v3638_v48 = vmul.f32 %v3634_v41, %v3606_v40 }
0x1213   : > { %v3636_v29 = vmul.f32 %v3632_v45, %v3604_v44  ;;  %v6766_v44 = vld [vmem:[%s9636_s4 + $0x1] ss:$0 sm:$0xff]  ;;  %s9646_s4 = sld [smem:[#allocation26_spill]] }
0x1214   : > { %v3640_v33 = vpack.c.bf16 %v3638_v48, %v3637_v47 }
0x1215   : > { %v3639_v19 = vpack.c.bf16 %v3636_v29, %v3635_v49 }
0x1217   : > { %7516 = vmatprep.mubr.bf16.mxu1 %v3639_v19 }
0x1218   : > { %7517 = vmatmul.mubr.bf16.vlgmr.msra.gmra.mrb[80].mxu1 %v3640_v33  ;;  %v6767_v33 = vld [vmem:[%s9637_s28 + $0x1] ss:$0 sm:$0xff] }
0x1219   : > { %7552 = vmatprep.mubr.msk.bf16.mxu1 %vm8192_vm0, %v8191_v1 }
0x12eb   : > { %v7518_v20 = vpop.f32.mrb[80].mxu1 }
0x12ec   : > { %v3739_v21 = vpop.f32.mrb[81].mxu1  ;;  %v3756_v52 = vadd.f32 %v7518_v20, %v8918_v22 }
0x12ed   : > { %v3754_v53 = vadd.f32 %v3739_v21, %v8916_v26  ;;  %v7519_v55 = vpop.f32.mrb[82].mxu1 }
0x12ee   : > { %v3742_v56 = vpop.f32.mrb[83].mxu1  ;;  %v3757_v58 = vadd.f32 %v7519_v55, %v8924_v16  ;;  %v8993_v60 = vadd.f32 %v6763_v15, %v3756_v52 }
0x12ef   : > { %v8989_v57 = vadd.f32 %v6763_v15, %v3754_v53  ;;  %v3755_v59 = vadd.f32 %v3742_v56, %v8920_v51 }
0x12f0   : > { %v8999_v63 = vadd.f32 %v6763_v15, %v3757_v58  ;;  %v3779_v22 = vsel %vm1223_vm1, %v8993_v60, 0.0 }
0x12f1   : > { %v8995_v61 = vadd.f32 %v6763_v15, %v3755_v59  ;;  %v3773_v62 = vsel %vm1223_vm1, %v8989_v57, 0.0 }
0x12f2   : > { %3774 = vadd.xlane.f32.xlu0 %v3773_v62  ;;  %v3782_v51 = vsel %vm1223_vm1, %v8999_v63, 0.0 }
0x12f3   : > { %v3776_v26 = vsel %vm1223_vm1, %v8995_v61, 0.0 }
0x12f4   : > { %3777 = vadd.xlane.f32.xlu1 %v3776_v26 }
0x12f6   : > { %3780 = vadd.xlane.f32.xlu0 %v3779_v22  ;;  %v7904_v22 = vld [vmem:[%s9634_s10 + $0x48] sm:$0xff]  }
0x12f8   : > { %3783 = vadd.xlane.f32.xlu1 %v3782_v51  ;;  %v7905_v51 = vld [vmem:[%s9633_s12 + $0x40] sm:$0xff]  }
0x137f   : > { %v3775_v16 = vpop.xlane.xlu0 %3774 }
0x1380   : > { %v3785_v0 = vmul.f32 0.03125, %v3775_v16  ;;  %v7906_v16 = vld [vmem:[%s9633_s12 + $0x48] sm:$0xff]  }
0x1381   : > { %v3778_v2 = vpop.xlane.xlu1 %3777 }
0x1382   : > { %v3789_v3 = vsub.f32 %v8989_v57, %v3785_v0  ;;  %v3786_v4 = vmul.f32 0.03125, %v3778_v2  ;;  %v6773_v2 = vld [vmem:[%s9639_s8 + $0x4] ss:$0 sm:$0xff] }
0x1383   : > { %v3781_v5 = vpop.xlane.xlu0 %3780 }
0x1384   : > { %v3790_v6 = vsub.f32 %v8995_v61, %v3786_v4  ;;  %v3787_v7 = vmul.f32 0.03125, %v3781_v5  ;;  %v3793_v8 = vmul.f32 %v3789_v3, %v3789_v3 }
0x1385   : > { %v3784_v9 = vpop.xlane.xlu1 %3783 }
0x1386   : > { %v3791_v10 = vsub.f32 %v8993_v60, %v3787_v7  ;;  %v3788_v25 = vmul.f32 0.03125, %v3784_v9  ;;  %v3797_v13 = vsel %vm1223_vm1, %v3793_v8, 0.0  ;;  %v3794_v11 = vmul.f32 %v3790_v6, %v3790_v6 }
0x1387   : > { %3798 = vadd.xlane.f32.xlu0 %v3797_v13 }
0x1388   : > { %v3792_v12 = vsub.f32 %v8999_v63, %v3788_v25  ;;  %v3800_v17 = vsel %vm1223_vm1, %v3794_v11, 0.0  ;;  %v3795_v14 = vmul.f32 %v3791_v10, %v3791_v10  ;;  %v6783_v11 = vld [vmem:[%s9640_s11 + $0x4] ss:$0 sm:$0xff] }
0x1389   : > { %3801 = vadd.xlane.f32.xlu1 %v3800_v17 }
0x138a   : > { %v3803_v23 = vsel %vm1223_vm1, %v3795_v14, 0.0  ;;  %v3796_v28 = vmul.f32 %v3792_v12, %v3792_v12 }
0x138b   : > { %3804 = vadd.xlane.f32.xlu0 %v3803_v23 }
0x138c   : > { %v3806_v30 = vsel %vm1223_vm1, %v3796_v28, 0.0 }
0x138d   : > { %3807 = vadd.xlane.f32.xlu1 %v3806_v30 }
0x1414   : > { %v3799_v24 = vpop.xlane.xlu0 %3798 }
0x1415   : > { %v3809_v27 = vmul.f32 0.03125, %v3799_v24  ;;  %v6793_v24 = vld [vmem:[%s9569_s13 + $0x4] ss:$0 sm:$0xff] }
0x1416   : > { %v3802_v34 = vpop.xlane.xlu1 %3801 }
0x1417   : > { %v3813_v35 = vadd.f32 1e-05, %v3809_v27  ;;  %v3810_v36 = vmul.f32 0.03125, %v3802_v34 }
0x1418   : > { %v3805_v37 = vpop.xlane.xlu0 %3804 }
0x1419   : > { %8027 = vrsqrt.f32 %v3813_v35  ;;  %v3814_v39 = vadd.f32 1e-05, %v3810_v36  ;;  %v3811_v42 = vmul.f32 0.03125, %v3805_v37 }
0x141a   : > { %v3808_v46 = vpop.xlane.xlu1 %3807 }
0x141b   : > { %8029 = vrsqrt.f32 %v3814_v39  ;;  %v3815_v38 = vadd.f32 1e-05, %v3811_v42  ;;  %v3812_v40 = vmul.f32 0.03125, %v3808_v46 }
0x141d   : > { %8031 = vrsqrt.f32 %v3815_v38  ;;  %v3816_v41 = vadd.f32 1e-05, %v3812_v40 }
0x141f   : > { %8033 = vrsqrt.f32 %v3816_v41 }
0x1423   : > { %v8028_v43 = vpop.eup %8027 }
0x1424   : > { %v3821_v45 = vmul.f32 %v8028_v43, %v3789_v3  ;;  %v7907_v43 = vld [vmem:[%s9632_s25 + $0x50] sm:$0xff]  }
0x1425   : > { %v8030_v47 = vpop.eup %8029 }
0x1426   : > { %v3831_v48 = vmul.f32 %v6766_v44, %v3821_v45  ;;  %v3822_v49 = vmul.f32 %v8030_v47, %v3790_v6  ;;  %v7908_v45 = vld [vmem:[%s9632_s25 + $0x58] sm:$0xff]   ;;  %v7909_v47 = vld [vmem:[%s9633_s12 + $0x50] sm:$0xff]  }
0x1427   : > { %v8032_v29 = vpop.eup %8031 }
0x1428   : > { %v3832_v19 = vmul.f32 %v6766_v44, %v3822_v49  ;;  %v3823_v20 = vmul.f32 %v8032_v29, %v3791_v10  ;;  %v3841_v21 = vadd.f32 %v6767_v33, %v3831_v48  ;;  %v7910_v48 = vld [vmem:[%s9633_s12 + $0x58] sm:$0xff]  }
0x1429   : > { %v8034_v15 = vpop.eup %8033 }
0x142a   : > { %v3842_v52 = vadd.f32 %v6767_v33, %v3832_v19  ;;  %v3833_v53 = vmul.f32 %v6766_v44, %v3823_v20  ;;  %v3824_v55 = vmul.f32 %v8034_v15, %v3792_v12 }
0x142c   : > { %v9030_v56 = vpack.c.bf16 %v3842_v52, %v3841_v21  ;;  %v3834_v58 = vmul.f32 %v6766_v44, %v3824_v55  ;;  %v3843_v59 = vadd.f32 %v6767_v33, %v3833_v53 }
0x142e   : > { %v3844_v62 = vadd.f32 %v6767_v33, %v3834_v58  ;;  %7524 = vmatprep.mubr.msk.bf16.mxu0 %vm1223_vm1, %v9030_v56 }
0x1430   : > { %v9034_v26 = vpack.c.bf16 %v3844_v62, %v3843_v59 }
0x1432   : > { %7525 = vmatmul.mubr.msk.bf16.vlgmr.msra.gmra.mrb[60].mxu0 %vm1223_vm1, %v9034_v26 }
0x1433   : > { %7529 = vmatpush3.bf16.msra.mxu0 %v7903_v18  ;;  %7532 = vmatprep.mubr.msk.bf16.mxu0 %vm1223_vm1, %v9030_v56 }
0x1434   : > { %7530 = vmatprep.subr.bf16.mxu0 %v7904_v22 }
0x1437   : > { %7531 = vmatpush3.bf16.msra.mxu0 %v7904_v22 }
0x1438   : > { %7536 = vmatprep.subr.bf16.mxu0 %v7905_v51 }
0x143a   : > { %7533 = vmatmul.mubr.msk.bf16.vlgmr.msra.gmra.mrb[64].mxu0 %vm1223_vm1, %v9034_v26 }
0x143b   : > { %7537 = vmatpush3.bf16.msra.mxu0 %v7905_v51  ;;  %7540 = vmatprep.mubr.msk.bf16.mxu0 %vm1223_vm1, %v9030_v56 }
0x143c   : > { %7538 = vmatprep.subr.bf16.mxu0 %v7906_v16 }
0x143f   : > { %7539 = vmatpush3.bf16.msra.mxu0 %v7906_v16 }
0x1440   : > { %7544 = vmatprep.subr.bf16.mxu0 %v8191_v1 }
0x1442   : > { %7541 = vmatmul.mubr.msk.bf16.vlgmr.msra.gmra.mrb[68].mxu0 %vm1223_vm1, %v9034_v26 }
0x1443   : > { %7546 = vmatprep.mubr.msk.bf16.mxu0 %vm8192_vm0, %v8191_v1 }
0x1505   : > { %v7526_v0 = vpop.f32.mrb[60].mxu0 }
0x1506   : > { %v3912_v3 = vpop.f32.mrb[61].mxu0  ;;  %v3921_v5 = vadd.f32 %v7526_v0, %v6773_v2 }
0x1507   : > { %v7527_v4 = vpop.f32.mrb[62].mxu0  ;;  %v3913_v8 = vadd.f32 %v6773_v2, %v3912_v3 }
0x1508   : > { %v3924_v6 = vadd.f32 %v7527_v4, %v6773_v2  ;;  %v3915_v7 = vpop.f32.mrb[63].mxu0 }
0x1509   : > { %v3916_v9 = vadd.f32 %v6773_v2, %v3915_v7 }
0x150a   : > { %v3928_v10 = vpack.c.bf16 %v3924_v6, %v3921_v5  ;;  %v6808_v6 = vld [vmem:[%s9639_s8 + $0x5] ss:$0 sm:$0xff] }
0x150b   : > { %v3927_v25 = vpack.c.bf16 %v3916_v9, %v3913_v8 }
0x150d   : > { %v7534_v13 = vpop.f32.mrb[64].mxu0 }
0x150e   : > { %v3988_v12 = vpop.f32.mrb[65].mxu0  ;;  %v3997_v14 = vadd.f32 %v7534_v13, %v6783_v11 }
0x150f   : > { %v7535_v17 = vpop.f32.mrb[66].mxu0  ;;  %v3989_v30 = vadd.f32 %v6783_v11, %v3988_v12 }
0x1510   : > { %v4000_v23 = vadd.f32 %v7535_v17, %v6783_v11  ;;  %v3991_v28 = vpop.f32.mrb[67].mxu0 }
0x1511   : > { %v3992_v31 = vadd.f32 %v6783_v11, %v3991_v28 }
0x1512   : > { %v4004_v32 = vpack.c.bf16 %v4000_v23, %v3997_v14  ;;  %v6828_v14 = vld [vmem:[%s9569_s13 + $0x5] ss:$0 sm:$0xff] }
0x1513   : > { %v4003_v18 = vpack.c.bf16 %v3992_v31, %v3989_v30 }
0x1514   : > { %v4203_v44 = vsel %vm1548_vm7, %v4004_v32, 0 }
0x1515   : > { %v7542_v27 = vpop.f32.mrb[68].mxu0  ;;  %v4085_v34 = vsel %vm1548_vm7, %v4003_v18, 0 }
0x1516   : > { %v9068_v35 = vadd.f32 %v7542_v27, %v6793_v24  ;;  %v4064_v36 = vpop.f32.mrb[69].mxu0  ;;  %7545 = vmatpush3.bf16.xpose.msra.mxu0 %v4085_v34 }
0x1517   : > { %v7543_v37 = vpop.f32.mrb[70].mxu0  ;;  %7556 = vmatprep.subr.bf16.mxu0 %v8191_v1  ;;  %v4065_v46 = vadd.f32 %v6793_v24, %v4064_v36 }
0x1518   : > { %v9071_v39 = vadd.f32 %v7543_v37, %v6793_v24  ;;  %v4067_v42 = vpop.f32.mrb[71].mxu0 }
0x1519   : > { %v4068_v38 = vadd.f32 %v6793_v24, %v4067_v42 }
0x151a   : > { %v4080_v40 = vpack.c.bf16 %v9071_v39, %v9068_v35 }
0x151b   : > { %v4079_v41 = vpack.c.bf16 %v4068_v38, %v4065_v46 }
0x151d   : > { %7547 = vmatmul.mubr.msk.bf16.vlgmr.msra.gmra.mrb[72].mxu0 %vm1548_vm7, %v3927_v25  ;;  %7551 = vmatpush3.bf16.msra.mxu1 %v4079_v41 }
0x151e   : > { %7557 = vmatpush3.bf16.xpose.msra.mxu0 %v4203_v44  ;;  %7558 = vmatprep.mubr.msk.bf16.mxu0 %vm8192_vm0, %v8191_v1 }
0x151f   : > { %7568 = vmatprep.subr.bf16.mxu0 %v7907_v43  ;;  %7562 = vmatprep.subr.bf16.mxu1 %v8191_v1 }
0x1525   : > { %7559 = vmatmul.mubr.msk.bf16.vlgmr.msra.gmra.mrb[76].mxu0 %vm1548_vm7, %v3928_v10 }
0x1526   : > { %7569 = vmatpush3.bf16.msra.mxu0 %v7907_v43  ;;  %7572 = vmatprep.mubr.msk.bf16.mxu0 %vm1223_vm1, %v9030_v56 }
0x1527   : > { %7570 = vmatprep.subr.bf16.mxu0 %v7908_v45 }
0x152a   : > { %7571 = vmatpush3.bf16.msra.mxu0 %v7908_v45 }
0x152b   : > { %7584 = vmatprep.subr.bf16.mxu0 %v7909_v47 }
0x152d   : > { %7573 = vmatmul.mubr.msk.bf16.vlgmr.msra.gmra.mrb[80].mxu0 %vm1223_vm1, %v9034_v26 }
0x152e   : > { %7585 = vmatpush3.bf16.msra.mxu0 %v7909_v47  ;;  %7588 = vmatprep.mubr.msk.bf16.mxu0 %vm1223_vm1, %v9030_v56 }
0x152f   : > { %7586 = vmatprep.subr.bf16.mxu0 %v7910_v48 }
0x1532   : > { %7587 = vmatpush3.bf16.msra.mxu0 %v7910_v48 }
0x1533   : > { %7598 = vmatprep.subr.bf16.mxu0 %v8191_v1 }
0x1535   : > { %7589 = vmatmul.mubr.msk.bf16.vlgmr.msra.gmra.mrb[84].mxu0 %vm1223_vm1, %v9034_v26 }
0x1536   : > { %7600 = vmatprep.mubr.msk.bf16.mxu0 %vm8192_vm0, %v8191_v1 }
0x15f0   : > { %v4121_v49 = vpop.f32.mrb[72].mxu0 }
0x15f1   : > { %v4128_v29 = vmul.f32 0.35355338, %v4121_v49  ;;  %v7548_v33 = vpop.f32.mrb[73].mxu0 }
0x15f2   : > { %v4124_v19 = vpop.f32.mrb[74].mxu0 }
0x15f3   : > { %v4129_v20 = vmul.f32 0.35355338, %v4124_v19  ;;  %v7549_v15 = vpop.f32.mrb[75].mxu0  ;;  %v4130_v21 = vsel %vm8604_vm8, %v4128_v29, -1e+30 }
0x15f4   : > { %v4132_v52 = vsel %vm1600_vm9, %v4130_v21, -inf }
0x15f5   : > { %4133 = vmax.xlane.f32.xlu0 %v4132_v52  ;;  %v4131_v53 = vsel %vm8608_vm10, %v4129_v20, -1e+30 }
0x15f6   : > { %v4135_v55 = vsel %vm1600_vm9, %v4131_v53, -inf }
0x15f7   : > { %4136 = vmax.xlane.f32.xlu1 %v4135_v55 }
0x15f8   : > { %v4239_v58 = vpop.f32.mrb[76].mxu0 }
0x15f9   : > { %v4246_v59 = vmul.f32 0.35355338, %v4239_v58  ;;  %v7560_v62 = vpop.f32.mrb[77].mxu0 }
0x15fa   : > { %v4242_v22 = vpop.f32.mrb[78].mxu0 }
0x15fb   : > { %v4247_v51 = vmul.f32 0.35355338, %v4242_v22  ;;  %v7561_v16 = vpop.f32.mrb[79].mxu0  ;;  %v4248_v0 = vsel %vm8604_vm8, %v4246_v59, -1e+30 }
0x15fc   : > { %v4250_v2 = vsel %vm1600_vm9, %v4248_v0, -inf }
0x15fd   : > { %4251 = vmax.xlane.f32.xlu0 %v4250_v2  ;;  %v4249_v3 = vsel %vm8608_vm10, %v4247_v51, -1e+30 }
0x15fe   : > { %v4253_v4 = vsel %vm1600_vm9, %v4249_v3, -inf }
0x15ff   : > { %4254 = vmax.xlane.f32.xlu1 %v4253_v4  ;;  %v7911_v4 = vld [vmem:[%s9634_s10 + $0x50] sm:$0xff]  }
0x1600   : > { %v7574_v5 = vpop.f32.mrb[80].mxu0 }
0x1601   : > { %v4380_v7 = vpop.f32.mrb[81].mxu0  ;;  %v9119_v9 = vadd.f32 %v7574_v5, %v6808_v6 }
0x1602   : > { %v7575_v8 = vpop.f32.mrb[82].mxu0  ;;  %v9123_v13 = vadd.f32 %v6808_v6, %v4380_v7 }
0x1603   : > { %v9121_v10 = vadd.f32 %v7575_v8, %v6808_v6  ;;  %v4383_v25 = vpop.f32.mrb[83].mxu0 }
0x1604   : > { %v9125_v11 = vadd.f32 %v6808_v6, %v4383_v25 }
0x1605   : > { %v4396_v12 = vpack.c.bf16 %v9121_v10, %v9119_v9 }
0x1606   : > { %v4395_v17 = vpack.c.bf16 %v9125_v11, %v9123_v13 }
0x1608   : > { %v7590_v23 = vpop.f32.mrb[84].mxu0 }
0x1609   : > { %v9134_v28 = vadd.f32 %v7590_v23, %v6828_v14  ;;  %v4532_v30 = vpop.f32.mrb[85].mxu0 }
0x160a   : > { %v7591_v31 = vpop.f32.mrb[86].mxu0  ;;  %v4533_v24 = vadd.f32 %v6828_v14, %v4532_v30 }
0x160b   : > { %v9136_v32 = vadd.f32 %v7591_v31, %v6828_v14  ;;  %v4535_v18 = vpop.f32.mrb[87].mxu0 }
0x160c   : > { %v4536_v27 = vadd.f32 %v6828_v14, %v4535_v18  ;;  %v7912_v14 = vld [vmem:[%s9634_s10 + $0x58] sm:$0xff]  }
0x160d   : > { %v4548_v34 = vpack.c.bf16 %v9136_v32, %v9134_v28  ;;  %v7915_v28 = vld [vmem:[%s9634_s10 + $0x60] sm:$0xff]   ;;  %v7916_v32 = vld [vmem:[%s9634_s10 + $0x68] sm:$0xff]  }
0x160e   : > { %v4547_v36 = vpack.c.bf16 %v4536_v27, %v4533_v24 }
0x1610   : > { %7599 = vmatpush3.bf16.msra.mxu0 %v4547_v36 }
0x1611   : > { %7610 = vmatprep.subr.bf16.mxu0 %v8191_v1 }
0x1682   : > { %v4134_v37 = vpop.xlane.xlu0 %4133 }
0x1683   : > { %v4138_v42 = vsub.f32 %v4130_v21, %v4134_v37 }
0x1684   : > { %v4137_v46 = vpop.xlane.xlu1 %4136 }
0x1685   : > { %v4140_v38 = vmul.f32 1.442695, %v4138_v42  ;;  %v4139_v41 = vsub.f32 %v4131_v53, %v4137_v46  ;;  %v6818_v42 = vld [vmem:[%s9640_s11 + $0x5] ss:$0 sm:$0xff] }
0x1687   : > { %8035 = vpow2.f32 %v4140_v38  ;;  %v4142_v43 = vmul.f32 1.442695, %v4139_v41 }
0x1689   : > { %8037 = vpow2.f32 %v4142_v43 }
0x168a   : > { %v4252_v44 = vpop.xlane.xlu0 %4251 }
0x168b   : > { %v4256_v45 = vsub.f32 %v4248_v0, %v4252_v44 }
0x168c   : > { %v4255_v47 = vpop.xlane.xlu1 %4254 }
0x168d   : > { %v4258_v48 = vmul.f32 1.442695, %v4256_v45  ;;  %v4257_v49 = vsub.f32 %v4249_v3, %v4255_v47 }
0x168f   : > { %8039 = vpow2.f32 %v4258_v48  ;;  %v4260_v29 = vmul.f32 1.442695, %v4257_v49 }
0x1691   : > { %v8036_v33 = vpop.eup %8035  ;;  %8041 = vpow2.f32 %v4260_v29 }
0x1692   : > { %v4144_v19 = vsel %vm1600_vm9, %v8036_v33, 0.0 }
0x1693   : > { %v8038_v20 = vpop.eup %8037  ;;  %4145 = vadd.xlane.f32.xlu0 %v4144_v19 }
0x1694   : > { %v4147_v15 = vsel %vm1600_vm9, %v8038_v20, 0.0 }
0x1695   : > { %4148 = vadd.xlane.f32.xlu1 %v4147_v15 }
0x1699   : > { %v8040_v21 = vpop.eup %8039 }
0x169a   : > { %v4262_v52 = vsel %vm1600_vm9, %v8040_v21, 0.0 }
0x169b   : > { %v8042_v53 = vpop.eup %8041  ;;  %4263 = vadd.xlane.f32.xlu0 %v4262_v52 }
0x169c   : > { %v4265_v55 = vsel %vm1600_vm9, %v8042_v53, 0.0 }
0x169d   : > { %4266 = vadd.xlane.f32.xlu1 %v4265_v55 }
0x1720   : > { %v4146_v58 = vpop.xlane.xlu0 %4145 }
0x1721   : > { %8043 = vrcp.f32 %v4146_v58 }
0x1722   : > { %v4149_v59 = vpop.xlane.xlu1 %4148 }
0x1723   : > { %8045 = vrcp.f32 %v4149_v59 }
0x1728   : > { %v4264_v62 = vpop.xlane.xlu0 %4263 }
0x1729   : > { %8047 = vrcp.f32 %v4264_v62 }
0x172a   : > { %v4267_v22 = vpop.xlane.xlu1 %4266 }
0x172b   : > { %v8044_v51 = vpop.eup %8043  ;;  %8049 = vrcp.f32 %v4267_v22 }
0x172c   : > { %v4152_v0 = vmul.f32 %v8044_v51, %v8036_v33 }
0x172d   : > { %v8046_v16 = vpop.eup %8045 }
0x172e   : > { %v4153_v2 = vmul.f32 %v8046_v16, %v8038_v20 }
0x1730   : > { %v4154_v3 = vpack.c.bf16 %v4153_v2, %v4152_v0 }
0x1732   : > { %7553 = vmatmul.mubr.msk.bf16.vlgmr.msra.gmra.mrb[84].mxu1 %vm1600_vm9, %v4154_v3 }
0x1733   : > { %v8048_v5 = vpop.eup %8047  ;;  %7563 = vmatpush3.bf16.msra.mxu1 %v4080_v40  ;;  %7564 = vmatprep.mubr.msk.bf16.mxu1 %vm8192_vm0, %v8191_v1 }
0x1734   : > { %7576 = vmatprep.subr.bf16.mxu1 %v7911_v4  ;;  %v4270_v7 = vmul.f32 %v8048_v5, %v8040_v21 }
0x1735   : > { %v8050_v6 = vpop.eup %8049 }
0x1736   : > { %v4271_v8 = vmul.f32 %v8050_v6, %v8042_v53 }
0x1738   : > { %v4272_v25 = vpack.c.bf16 %v4271_v8, %v4270_v7 }
0x173a   : > { %7565 = vmatmul.mubr.msk.bf16.vlgmr.msra.gmra.mrb[88].mxu1 %vm1600_vm9, %v4272_v25 }
0x173b   : > { %7577 = vmatpush3.bf16.msra.mxu1 %v7911_v4  ;;  %7580 = vmatprep.mubr.msk.bf16.mxu1 %vm1223_vm1, %v9030_v56 }
0x173c   : > { %7578 = vmatprep.subr.bf16.mxu1 %v7912_v14 }
0x173f   : > { %7579 = vmatpush3.bf16.msra.mxu1 %v7912_v14 }
0x1740   : > { %7592 = vmatprep.subr.bf16.mxu1 %v8191_v1 }
0x1742   : > { %7581 = vmatmul.mubr.msk.bf16.vlgmr.msra.gmra.mrb[92].mxu1 %vm1223_vm1, %v9034_v26 }
0x1743   : > { %7594 = vmatprep.mubr.msk.bf16.mxu1 %vm8192_vm0, %v8191_v1 }
0x1805   : > { %v9165_v35 = vpop.f32.mrb[84].mxu1 }
0x1806   : > { %v7554_v39 = vpop.f32.mrb[85].mxu1 }
0x1807   : > { %v9167_v40 = vpop.f32.mrb[86].mxu1 }
0x1808   : > { %v4317_v23 = vpack.c.bf16 %v9167_v40, %v9165_v35  ;;  %v7555_v30 = vpop.f32.mrb[87].mxu1  ;;  %v7918_v35 = vld [vmem:[%s9633_s12 + $0x68] sm:$0xff]  }
0x180d   : > { %v9171_v31 = vpop.f32.mrb[88].mxu1 }
0x180e   : > { %v7566_v18 = vpop.f32.mrb[89].mxu1 }
0x180f   : > { %v9173_v24 = vpop.f32.mrb[90].mxu1 }
0x1810   : > { %v4318_v27 = vpack.c.bf16 %v9173_v24, %v9171_v31  ;;  %v7567_v36 = vpop.f32.mrb[91].mxu1  ;;  %v7919_v24 = vld [vmem:[%s9632_s25 + $0x70] sm:$0xff]  }
0x1815   : > { %v7582_v37 = vpop.f32.mrb[92].mxu1 }
0x1816   : > { %v4456_v46 = vpop.f32.mrb[93].mxu1  ;;  %v4465_v41 = vadd.f32 %v7582_v37, %v6818_v42 }
0x1817   : > { %v7583_v38 = vpop.f32.mrb[94].mxu1  ;;  %v4457_v45 = vadd.f32 %v6818_v42, %v4456_v46 }
0x1818   : > { %v4468_v43 = vadd.f32 %v7583_v38, %v6818_v42  ;;  %v4459_v44 = vpop.f32.mrb[95].mxu1 }
0x1819   : > { %v4460_v47 = vadd.f32 %v6818_v42, %v4459_v44 }
0x181a   : > { %v4472_v48 = vpack.c.bf16 %v4468_v43, %v4465_v41 }
0x181b   : > { %v4471_v49 = vpack.c.bf16 %v4460_v47, %v4457_v45 }
0x181c   : > { %v4671_v33 = vsel %vm1548_vm7, %v4472_v48, 0 }
0x181d   : > { %v4553_v29 = vsel %vm1548_vm7, %v4471_v49, 0 }
0x181e   : > { %7593 = vmatpush3.bf16.xpose.msra.mxu1 %v4553_v29 }
0x181f   : > { %7604 = vmatprep.subr.bf16.mxu1 %v8191_v1 }
0x1825   : > { %7595 = vmatmul.mubr.msk.bf16.vlgmr.msra.gmra.mrb[96].mxu1 %vm1548_vm7, %v4395_v17 }
0x1826   : > { %7605 = vmatpush3.bf16.xpose.msra.mxu1 %v4671_v33  ;;  %7606 = vmatprep.mubr.msk.bf16.mxu1 %vm8192_vm0, %v8191_v1 }
0x182d   : > { %7607 = vmatmul.mubr.msk.bf16.vlgmr.msra.gmra.mrb[100].mxu1 %vm1548_vm7, %v4396_v12 }
0x18f8   : > { %v4589_v19 = vpop.f32.mrb[96].mxu1 }
0x18f9   : > { %v4596_v20 = vmul.f32 0.35355338, %v4589_v19  ;;  %v7596_v15 = vpop.f32.mrb[97].mxu1 }
0x18fa   : > { %v4592_v21 = vpop.f32.mrb[98].mxu1 }
0x18fb   : > { %v4597_v52 = vmul.f32 0.35355338, %v4592_v21  ;;  %v7597_v53 = vpop.f32.mrb[99].mxu1  ;;  %v4598_v13 = vsel %vm8604_vm8, %v4596_v20, -1e+30  ;;  %v7913_v21 = vld [vmem:[%s9632_s25 + $0x60] sm:$0xff]  }
0x18fc   : > { %v4600_v11 = vsel %vm1600_vm9, %v4598_v13, -inf }
0x18fd   : > { %4601 = vmax.xlane.f32.xlu0 %v4600_v11  ;;  %v4599_v17 = vsel %vm8608_vm10, %v4597_v52, -1e+30 }
0x18fe   : > { %v4603_v55 = vsel %vm1600_vm9, %v4599_v17, -inf }
0x18ff   : > { %4604 = vmax.xlane.f32.xlu1 %v4603_v55  ;;  %v7914_v55 = vld [vmem:[%s9632_s25 + $0x68] sm:$0xff]  }
0x1900   : > { %v4707_v9 = vpop.f32.mrb[100].mxu1 }
0x1901   : > { %v4714_v10 = vmul.f32 0.35355338, %v4707_v9  ;;  %v7608_v12 = vpop.f32.mrb[101].mxu1 }
0x1902   : > { %v4710_v58 = vpop.f32.mrb[102].mxu1 }
0x1903   : > { %v4715_v59 = vmul.f32 0.35355338, %v4710_v58  ;;  %v7609_v62 = vpop.f32.mrb[103].mxu1  ;;  %v4716_v22 = vsel %vm8604_vm8, %v4714_v10, -1e+30 }
0x1904   : > { %v4718_v51 = vsel %vm1600_vm9, %v4716_v22, -inf  ;;  %v6802_v10 = vld [vmem:[%s9570_s14 + $0x10] sm:$0xf] }
0x1905   : > { %4719 = vmax.xlane.f32.xlu0 %v4718_v51  ;;  %v4717_v16 = vsel %vm8608_vm10, %v4715_v59, -1e+30 }
0x1906   : > { %v4721_v0 = vsel %vm1600_vm9, %v4717_v16, -inf }
0x1907   : > { %4722 = vmax.xlane.f32.xlu1 %v4721_v0 }
0x198a   : > { %v4602_v2 = vpop.xlane.xlu0 %4601 }
0x198b   : > { %v4606_v3 = vsub.f32 %v4598_v13, %v4602_v2 }
0x198c   : > { %v4605_v4 = vpop.xlane.xlu1 %4604 }
0x198d   : > { %v4608_v5 = vmul.f32 1.442695, %v4606_v3  ;;  %v4607_v6 = vsub.f32 %v4599_v17, %v4605_v4  ;;  %v4854_v4 = vsel %vm2263_vm11, %v6802_v10, 0 }
0x198f   : > { %8051 = vpow2.f32 %v4608_v5  ;;  %v4610_v7 = vmul.f32 1.442695, %v4607_v6  ;;  %v7917_v5 = vld [vmem:[%s9633_s12 + $0x60] sm:$0xff]  }
0x1991   : > { %8053 = vpow2.f32 %v4610_v7  ;;  %v6847_v7 = vld [vmem:[%s9639_s8 + $0x6] ss:$0 sm:$0xff] }
0x1992   : > { %v4720_v8 = vpop.xlane.xlu0 %4719 }
0x1993   : > { %v4724_v25 = vsub.f32 %v4716_v22, %v4720_v8 }
0x1994   : > { %v4723_v14 = vpop.xlane.xlu1 %4722 }
0x1995   : > { %v4726_v39 = vmul.f32 1.442695, %v4724_v25  ;;  %v4725_v30 = vsub.f32 %v4717_v16, %v4723_v14 }
0x1997   : > { %8055 = vpow2.f32 %v4726_v39  ;;  %v4728_v18 = vmul.f32 1.442695, %v4725_v30 }
0x1999   : > { %v8052_v36 = vpop.eup %8051  ;;  %8057 = vpow2.f32 %v4728_v18 }
0x199a   : > { %v4612_v37 = vsel %vm1600_vm9, %v8052_v36, 0.0 }
0x199b   : > { %v8054_v42 = vpop.eup %8053  ;;  %4613 = vadd.xlane.f32.xlu0 %v4612_v37 }
0x199c   : > { %v4615_v46 = vsel %vm1600_vm9, %v8054_v42, 0.0 }
0x199d   : > { %4616 = vadd.xlane.f32.xlu1 %v4615_v46 }
0x19a1   : > { %v8056_v38 = vpop.eup %8055 }
0x19a2   : > { %v4730_v41 = vsel %vm1600_vm9, %v8056_v38, 0.0 }
0x19a3   : > { %v8058_v43 = vpop.eup %8057  ;;  %4731 = vadd.xlane.f32.xlu0 %v4730_v41 }
0x19a4   : > { %v4733_v44 = vsel %vm1600_vm9, %v8058_v43, 0.0 }
0x19a5   : > { %4734 = vadd.xlane.f32.xlu1 %v4733_v44 }
0x1a28   : > { %v4614_v45 = vpop.xlane.xlu0 %4613 }
0x1a29   : > { %8059 = vrcp.f32 %v4614_v45 }
0x1a2a   : > { %v4617_v47 = vpop.xlane.xlu1 %4616 }
0x1a2b   : > { %8061 = vrcp.f32 %v4617_v47 }
0x1a30   : > { %v4732_v48 = vpop.xlane.xlu0 %4731 }
0x1a31   : > { %8063 = vrcp.f32 %v4732_v48 }
0x1a32   : > { %v4735_v49 = vpop.xlane.xlu1 %4734 }
0x1a33   : > { %v8060_v29 = vpop.eup %8059  ;;  %8065 = vrcp.f32 %v4735_v49 }
0x1a34   : > { %v4620_v19 = vmul.f32 %v8060_v29, %v8052_v36  ;;  %v7920_v29 = vld [vmem:[%s9632_s25 + $0x78] sm:$0xff]  }
0x1a35   : > { %v8062_v33 = vpop.eup %8061 }
0x1a36   : > { %v4621_v20 = vmul.f32 %v8062_v33, %v8054_v42  ;;  %v7921_v33 = vld [vmem:[%s9634_s10 + $0x70] sm:$0xff]  }
0x1a38   : > { %v4622_v15 = vpack.c.bf16 %v4621_v20, %v4620_v19  ;;  %v7922_v19 = vld [vmem:[%s9634_s10 + $0x78] sm:$0xff]   ;;  %v6867_v20 = vld [vmem:[%s9569_s13 + $0x6] ss:$0 sm:$0xff]  ;;  %s8193_s10 = smov [#allocation3]  }
0x1a3a   : > { %7601 = vmatmul.mubr.msk.bf16.vlgmr.msra.gmra.mrb[88].mxu0 %vm1600_vm9, %v4622_v15 }
0x1a3b   : > { %v8064_v52 = vpop.eup %8063  ;;  %7611 = vmatpush3.bf16.msra.mxu0 %v4548_v34  ;;  %7612 = vmatprep.mubr.msk.bf16.mxu0 %vm8192_vm0, %v8191_v1  ;;  %v6837_v34 = vld [vmem:[%s9570_s14 + $0x14] sm:$0xf] }
0x1a3c   : > { %7628 = vmatprep.subr.bf16.mxu0 %v7913_v21  ;;  %v4738_v13 = vmul.f32 %v8064_v52, %v8056_v38  ;;  %7800 = vmatprep.subr.msk.bf16.mxu1 %vm2263_vm11, %v6837_v34  ;;  %v4796_v9 = vsel %vm2263_vm11, %v6837_v34, 0 }
0x1a3d   : > { %v8066_v53 = vpop.eup %8065  ;;  %7617 = vmatpush3.bf16.msra.mxu1 %v4796_v9 }
0x1a3e   : > { %v4739_v11 = vmul.f32 %v8066_v53, %v8058_v43  ;;  %7801 = vmatprep.subr.msk.bf16.mxu1 %vm2263_vm11, %v6802_v10 }
0x1a40   : > { %v4740_v17 = vpack.c.bf16 %v4739_v11, %v4738_v13 }
0x1a42   : > { %7613 = vmatmul.mubr.msk.bf16.vlgmr.msra.gmra.mrb[92].mxu0 %vm1600_vm9, %v4740_v17 }
0x1a43   : > { %7629 = vmatpush3.bf16.msra.mxu0 %v7913_v21  ;;  %7632 = vmatprep.mubr.msk.bf16.mxu0 %vm1223_vm1, %v9030_v56 }
0x1a44   : > { %7630 = vmatprep.subr.bf16.mxu0 %v7914_v55 }
0x1a47   : > { %7631 = vmatpush3.bf16.msra.mxu0 %v7914_v55 }
0x1a48   : > { %7636 = vmatprep.subr.bf16.mxu0 %v7915_v28 }
0x1a4a   : > { %7633 = vmatmul.mubr.msk.bf16.vlgmr.msra.gmra.mrb[96].mxu0 %vm1223_vm1, %v9034_v26 }
0x1a4b   : > { %7637 = vmatpush3.bf16.msra.mxu0 %v7915_v28  ;;  %7640 = vmatprep.mubr.msk.bf16.mxu0 %vm1223_vm1, %v9030_v56 }
0x1a4c   : > { %7638 = vmatprep.subr.bf16.mxu0 %v7916_v32 }
0x1a4f   : > { %7639 = vmatpush3.bf16.msra.mxu0 %v7916_v32 }
0x1a50   : > { %7652 = vmatprep.subr.bf16.mxu0 %v8191_v1 }
0x1a52   : > { %7641 = vmatmul.mubr.msk.bf16.vlgmr.msra.gmra.mrb[100].mxu0 %vm1223_vm1, %v9034_v26 }
0x1a53   : > { %7654 = vmatprep.mubr.msk.bf16.mxu0 %vm8192_vm0, %v8191_v1 }
0x1b0d   : > { %v4660_v12 = vpop.f32.mrb[88].mxu0 }
0x1b0e   : > { %v7602_v58 = vpop.f32.mrb[89].mxu0 }
0x1b0f   : > { %v4663_v59 = vpop.f32.mrb[90].mxu0 }
0x1b10   : > { %v4785_v62 = vpack.c.bf16 %v4663_v59, %v4660_v12  ;;  %v7603_v22 = vpop.f32.mrb[91].mxu0 }
0x1b12   : > { %7618 = vmatprep.mubr.msk.bf16.mxu1 %vm1548_vm7, %v4785_v62 }
0x1b15   : > { %v4778_v51 = vpop.f32.mrb[92].mxu0 }
0x1b16   : > { %v7614_v16 = vpop.f32.mrb[93].mxu0 }
0x1b17   : > { %v4781_v0 = vpop.f32.mrb[94].mxu0 }
0x1b18   : > { %v4786_v2 = vpack.c.bf16 %v4781_v0, %v4778_v51  ;;  %v7615_v3 = vpop.f32.mrb[95].mxu0 }
0x1b1a   : > { %7619 = vmatmul.mubr.msk.bf16.vlgmr.msra.gmra.mrb[104].mxu1 %vm1548_vm7, %v4786_v2 }
0x1b1b   : > { %7624 = vmatprep.mubr.msk.bf16.mxu1 %vm1548_vm7, %v4317_v23  ;;  %7623 = vmatpush3.bf16.msra.mxu1 %v4854_v4  ;;  %v6857_v23 = vld [vmem:[%s9640_s11 + $0x6] ss:$0 sm:$0xff] }
0x1b1c   : > { %7644 = vmatprep.subr.bf16.mxu1 %v7917_v5 }
0x1b1d   : > { %v7634_v6 = vpop.f32.mrb[96].mxu0 }
0x1b1e   : > { %v4964_v8 = vpop.f32.mrb[97].mxu0  ;;  %v4973_v14 = vadd.f32 %v7634_v6, %v6847_v7 }
0x1b1f   : > { %v7635_v25 = vpop.f32.mrb[98].mxu0  ;;  %v4965_v18 = vadd.f32 %v6847_v7, %v4964_v8 }
0x1b20   : > { %v4976_v39 = vadd.f32 %v7635_v25, %v6847_v7  ;;  %v4967_v30 = vpop.f32.mrb[99].mxu0 }
0x1b21   : > { %v4968_v36 = vadd.f32 %v6847_v7, %v4967_v30  ;;  %v6884_v30 = vld [vmem:[%s9639_s8 + $0x7] ss:$0 sm:$0xff]  ;;  %s9513_s8 = scalar_lea.hbm %s9646_s4, %s6974_s30 }
0x1b22   : > { %v4980_v37 = vpack.c.bf16 %v4976_v39, %v4973_v14 }
0x1b23   : > { %v4979_v42 = vpack.c.bf16 %v4968_v36, %v4965_v18 }
0x1b25   : > { %v7642_v40 = vpop.f32.mrb[100].mxu0 }
0x1b26   : > { %7625 = vmatmul.mubr.msk.bf16.vlgmr.msra.gmra.mrb[104].mxu1 %vm1548_vm7, %v4318_v27  ;;  %v5040_v46 = vpop.f32.mrb[101].mxu0  ;;  %v5049_v41 = vadd.f32 %v7642_v40, %v6857_v23 }
0x1b27   : > { %v7643_v38 = vpop.f32.mrb[102].mxu0  ;;  %7645 = vmatpush3.bf16.msra.mxu1 %v7917_v5  ;;  %7648 = vmatprep.mubr.msk.bf16.mxu1 %vm1223_vm1, %v9030_v56  ;;  %v5041_v45 = vadd.f32 %v6857_v23, %v5040_v46 }
0x1b28   : > { %v5052_v43 = vadd.f32 %v7643_v38, %v6857_v23  ;;  %v5043_v44 = vpop.f32.mrb[103].mxu0  ;;  %7646 = vmatprep.subr.bf16.mxu1 %v7918_v35 }
0x1b29   : > { %v5044_v47 = vadd.f32 %v6857_v23, %v5043_v44 }
0x1b2a   : > { %v5056_v48 = vpack.c.bf16 %v5052_v43, %v5049_v41  ;;  %v6894_v43 = vld [vmem:[%s9640_s11 + $0x7] ss:$0 sm:$0xff]  ;;  %s8131_s11 = sshll.u32 %s8193_s10, 4  ;;  %s8132_s11 = int_to_ptr.vmem [resolvable:$false] %s8131_s11 }
0x1b2b   : > { %v5055_v49 = vpack.c.bf16 %v5044_v47, %v5041_v45  ;;  %7647 = vmatpush3.bf16.msra.mxu1 %v7918_v35  ;;  %p8134_p0 = scmp.lt.s32.totalorder %s9508_s6, %s8132_s11 }
0x1b2c   : > { %7658 = vmatprep.subr.bf16.mxu1 %v8191_v1  ;;  %v5255_v27 = vsel %vm1548_vm7, %v5056_v48, 0 }
0x1b2d   : > { %v5137_v31 = vsel %vm1548_vm7, %v5055_v49, 0 }
0x1b2e   : > { %7649 = vmatmul.mubr.msk.bf16.vlgmr.msra.gmra.mrb[108].mxu1 %vm1223_vm1, %v9034_v26  ;;  %7653 = vmatpush3.bf16.xpose.msra.mxu0 %v5137_v31 }
0x1b2f   : > { %7664 = vmatprep.subr.bf16.mxu0 %v8191_v1  ;;  %7660 = vmatprep.mubr.msk.bf16.mxu1 %vm8192_vm0, %v8191_v1 }
0x1b35   : > { %7655 = vmatmul.mubr.msk.bf16.vlgmr.msra.gmra.mrb[104].mxu0 %vm1548_vm7, %v4979_v42 }
0x1b36   : > { %7665 = vmatpush3.bf16.xpose.msra.mxu0 %v5255_v27  ;;  %7666 = vmatprep.mubr.msk.bf16.mxu0 %vm8192_vm0, %v8191_v1 }
0x1b37   : > { %7682 = vmatprep.subr.bf16.mxu0 %v7919_v24 }
0x1b3d   : > { %7667 = vmatmul.mubr.msk.bf16.vlgmr.msra.gmra.mrb[108].mxu0 %vm1548_vm7, %v4980_v37 }
0x1b3e   : > { %7683 = vmatpush3.bf16.msra.mxu0 %v7919_v24  ;;  %7686 = vmatprep.mubr.msk.bf16.mxu0 %vm1223_vm1, %v9030_v56 }
0x1b3f   : > { %7684 = vmatprep.subr.bf16.mxu0 %v7920_v29 }
0x1b42   : > { %7685 = vmatpush3.bf16.msra.mxu0 %v7920_v29 }
0x1b43   : > { %7690 = vmatprep.subr.bf16.mxu0 %v7921_v33 }
0x1b45   : > { %7687 = vmatmul.mubr.msk.bf16.vlgmr.msra.gmra.mrb[112].mxu0 %vm1223_vm1, %v9034_v26 }
0x1b46   : > { %7691 = vmatpush3.bf16.msra.mxu0 %v7921_v33  ;;  %7694 = vmatprep.mubr.msk.bf16.mxu0 %vm1223_vm1, %v9030_v56 }
0x1b47   : > { %7692 = vmatprep.subr.bf16.mxu0 %v7922_v19 }
0x1b4a   : > { %7693 = vmatpush3.bf16.msra.mxu0 %v7922_v19 }
0x1b4b   : > { %7706 = vmatprep.subr.bf16.mxu0 %v8191_v1 }
0x1b4d   : > { %7695 = vmatmul.mubr.msk.bf16.vlgmr.msra.gmra.mrb[116].mxu0 %vm1223_vm1, %v9034_v26 }
0x1b4e   : > { %7708 = vmatprep.mubr.msk.bf16.mxu0 %vm8192_vm0, %v8191_v1 }
0x1c01   : > { %v7650_v15 = vpop.f32.mrb[108].mxu1 }
0x1c02   : > { %v9311_v21 = vadd.f32 %v7650_v15, %v6867_v20  ;;  %v5116_v52 = vpop.f32.mrb[109].mxu1 }
0x1c03   : > { %v7651_v53 = vpop.f32.mrb[110].mxu1  ;;  %v5117_v17 = vadd.f32 %v6867_v20, %v5116_v52 }
0x1c04   : > { %v9313_v13 = vadd.f32 %v7651_v53, %v6867_v20  ;;  %v5119_v11 = vpop.f32.mrb[111].mxu1 }
0x1c05   : > { %v5120_v55 = vadd.f32 %v6867_v20, %v5119_v11 }
0x1c06   : > { %v5132_v28 = vpack.c.bf16 %v9313_v13, %v9311_v21 }
0x1c07   : > { %v5131_v32 = vpack.c.bf16 %v5120_v55, %v5117_v17 }
0x1c08   : > { %v5173_v34 = vpop.f32.mrb[104].mxu0 }
0x1c09   : > { %v5180_v9 = vmul.f32 0.35355338, %v5173_v34  ;;  %v7656_v10 = vpop.f32.mrb[105].mxu0  ;;  %7659 = vmatpush3.bf16.msra.mxu1 %v5131_v32 }
0x1c0a   : > { %v5176_v12 = vpop.f32.mrb[106].mxu0  ;;  %7670 = vmatprep.subr.bf16.mxu1 %v8191_v1 }
0x1c0b   : > { %v5181_v58 = vmul.f32 0.35355338, %v5176_v12  ;;  %v7657_v59 = vpop.f32.mrb[107].mxu0  ;;  %v5182_v62 = vsel %vm8604_vm8, %v5180_v9, -1e+30 }
0x1c0c   : > { %v5184_v22 = vsel %vm1600_vm9, %v5182_v62, -inf }
0x1c0d   : > { %5185 = vmax.xlane.f32.xlu0 %v5184_v22  ;;  %v5183_v51 = vsel %vm8608_vm10, %v5181_v58, -1e+30 }
0x1c0e   : > { %v5187_v16 = vsel %vm1600_vm9, %v5183_v51, -inf }
0x1c0f   : > { %5188 = vmax.xlane.f32.xlu1 %v5187_v16 }
0x1c10   : > { %v5291_v0 = vpop.f32.mrb[108].mxu0 }
0x1c11   : > { %v5298_v2 = vmul.f32 0.35355338, %v5291_v0  ;;  %v7668_v3 = vpop.f32.mrb[109].mxu0 }
0x1c12   : > { %v5294_v4 = vpop.f32.mrb[110].mxu0 }
0x1c13   : > { %v5299_v5 = vmul.f32 0.35355338, %v5294_v4  ;;  %v7669_v6 = vpop.f32.mrb[111].mxu0  ;;  %v5300_v7 = vsel %vm8604_vm8, %v5298_v2, -1e+30 }
0x1c14   : > { %v5302_v8 = vsel %vm1600_vm9, %v5300_v7, -inf }
0x1c15   : > { %5303 = vmax.xlane.f32.xlu0 %v5302_v8  ;;  %v5301_v25 = vsel %vm8608_vm10, %v5299_v5, -1e+30 }
0x1c16   : > { %v5305_v14 = vsel %vm1600_vm9, %v5301_v25, -inf }
0x1c17   : > { %5306 = vmax.xlane.f32.xlu1 %v5305_v14 }
0x1c18   : > { %v7688_v39 = vpop.f32.mrb[112].mxu0 }
0x1c19   : > { %v5494_v18 = vpop.f32.mrb[113].mxu0  ;;  %v5503_v37 = vadd.f32 %v7688_v39, %v6884_v30 }
0x1c1a   : > { %v7689_v36 = vpop.f32.mrb[114].mxu0  ;;  %v5495_v40 = vadd.f32 %v6884_v30, %v5494_v18 }
0x1c1b   : > { %v5506_v42 = vadd.f32 %v7689_v36, %v6884_v30  ;;  %v5497_v35 = vpop.f32.mrb[115].mxu0 }
0x1c1c   : > { %v5498_v23 = vadd.f32 %v6884_v30, %v5497_v35 }
0x1c1d   : > { %v5510_v46 = vpack.c.bf16 %v5506_v42, %v5503_v37 }
0x1c1e   : > { %v5509_v38 = vpack.c.bf16 %v5498_v23, %v5495_v40 }
0x1c20   : > { %v7696_v41 = vpop.f32.mrb[116].mxu0 }
0x1c21   : > { %v5570_v44 = vpop.f32.mrb[117].mxu0  ;;  %v5579_v47 = vadd.f32 %v7696_v41, %v6894_v43 }
0x1c22   : > { %v7697_v45 = vpop.f32.mrb[118].mxu0  ;;  %v5571_v31 = vadd.f32 %v6894_v43, %v5570_v44 }
0x1c23   : > { %v5582_v48 = vadd.f32 %v7697_v45, %v6894_v43  ;;  %v5573_v49 = vpop.f32.mrb[119].mxu0 }
0x1c24   : > { %v5574_v24 = vadd.f32 %v6894_v43, %v5573_v49 }
0x1c25   : > { %v5586_v27 = vpack.c.bf16 %v5582_v48, %v5579_v47 }
0x1c26   : > { %v5585_v29 = vpack.c.bf16 %v5574_v24, %v5571_v31 }
0x1c27   : > { %v5785_v19 = vsel %vm1548_vm7, %v5586_v27, 0 }
0x1c28   : > { %v5667_v33 = vsel %vm1548_vm7, %v5585_v29, 0 }
0x1c29   : > { %7707 = vmatpush3.bf16.xpose.msra.mxu0 %v5667_v33 }
0x1c2a   : > { %7718 = vmatprep.subr.bf16.mxu0 %v8191_v1 }
0x1c30   : > { %7709 = vmatmul.mubr.msk.bf16.vlgmr.msra.gmra.mrb[120].mxu0 %vm1548_vm7, %v5509_v38 }
0x1c31   : > { %7719 = vmatpush3.bf16.xpose.msra.mxu0 %v5785_v19  ;;  %7720 = vmatprep.mubr.msk.bf16.mxu0 %vm8192_vm0, %v8191_v1 }
0x1c38   : > { %7721 = vmatmul.mubr.msk.bf16.vlgmr.msra.gmra.mrb[124].mxu0 %vm1548_vm7, %v5510_v46 }
0x1c9a   : > { %v5186_v20 = vpop.xlane.xlu0 %5185 }
0x1c9b   : > { %v5190_v15 = vsub.f32 %v5182_v62, %v5186_v20 }
0x1c9c   : > { %v5189_v52 = vpop.xlane.xlu1 %5188 }
0x1c9d   : > { %v5192_v53 = vmul.f32 1.442695, %v5190_v15  ;;  %v5191_v11 = vsub.f32 %v5183_v51, %v5189_v52 }
0x1c9f   : > { %8067 = vpow2.f32 %v5192_v53  ;;  %v5194_v17 = vmul.f32 1.442695, %v5191_v11 }
0x1ca1   : > { %8069 = vpow2.f32 %v5194_v17 }
0x1ca2   : > { %v5304_v55 = vpop.xlane.xlu0 %5303 }
0x1ca3   : > { %v5308_v32 = vsub.f32 %v5300_v7, %v5304_v55 }
0x1ca4   : > { %v5307_v34 = vpop.xlane.xlu1 %5306 }
0x1ca5   : > { %v5310_v9 = vmul.f32 1.442695, %v5308_v32  ;;  %v5309_v10 = vsub.f32 %v5301_v25, %v5307_v34 }
0x1ca7   : > { %8071 = vpow2.f32 %v5310_v9  ;;  %v5312_v12 = vmul.f32 1.442695, %v5309_v10 }
0x1ca9   : > { %v8068_v58 = vpop.eup %8067  ;;  %8073 = vpow2.f32 %v5312_v12 }
0x1caa   : > { %v5196_v59 = vsel %vm1600_vm9, %v8068_v58, 0.0 }
0x1cab   : > { %v8070_v22 = vpop.eup %8069  ;;  %5197 = vadd.xlane.f32.xlu0 %v5196_v59 }
0x1cac   : > { %v5199_v62 = vsel %vm1600_vm9, %v8070_v22, 0.0 }
0x1cad   : > { %5200 = vadd.xlane.f32.xlu1 %v5199_v62  ;;  %v7923_v62 = vld [vmem:[%s9633_s12 + $0x70] sm:$0xff]  }
0x1cb1   : > { %v8072_v51 = vpop.eup %8071 }
0x1cb2   : > { %v5314_v16 = vsel %vm1600_vm9, %v8072_v51, 0.0 }
0x1cb3   : > { %v8074_v0 = vpop.eup %8073  ;;  %5315 = vadd.xlane.f32.xlu0 %v5314_v16 }
0x1cb4   : > { %v5317_v2 = vsel %vm1600_vm9, %v8074_v0, 0.0 }
0x1cb5   : > { %5318 = vadd.xlane.f32.xlu1 %v5317_v2 }
0x1d03   : > { %v5703_v3 = vpop.f32.mrb[120].mxu0 }
0x1d04   : > { %v5710_v4 = vmul.f32 0.35355338, %v5703_v3  ;;  %v7710_v5 = vpop.f32.mrb[121].mxu0 }
0x1d05   : > { %v5706_v6 = vpop.f32.mrb[122].mxu0 }
0x1d06   : > { %v5711_v7 = vmul.f32 0.35355338, %v5706_v6  ;;  %v7711_v8 = vpop.f32.mrb[123].mxu0  ;;  %v5712_v25 = vsel %vm8604_vm8, %v5710_v4, -1e+30 }
0x1d07   : > { %v5714_v14 = vsel %vm1600_vm9, %v5712_v25, -inf }
0x1d08   : > { %5715 = vmax.xlane.f32.xlu0 %v5714_v14  ;;  %v5713_v39 = vsel %vm8608_vm10, %v5711_v7, -1e+30 }
0x1d09   : > { %v5717_v30 = vsel %vm1600_vm9, %v5713_v39, -inf }
0x1d0a   : > { %5718 = vmax.xlane.f32.xlu1 %v5717_v30 }
0x1d0b   : > { %v5821_v18 = vpop.f32.mrb[124].mxu0 }
0x1d0c   : > { %v5828_v36 = vmul.f32 0.35355338, %v5821_v18  ;;  %v7722_v37 = vpop.f32.mrb[125].mxu0  ;;  %v7924_v18 = vld [vmem:[%s9633_s12 + $0x78] sm:$0xff]   ;;  %s8133_s12 = scalar_lea.vmem %s8132_s11, 1024 }
0x1d0d   : > { %v5824_v42 = vpop.f32.mrb[126].mxu0  ;;  %p8135_p1 = scmp.lt.s32.totalorder %s8133_s12, %s8127_s7 }
0x1d0e   : > { %v5829_v35 = vmul.f32 0.35355338, %v5824_v42  ;;  %v7723_v40 = vpop.f32.mrb[127].mxu0  ;;  %v5830_v23 = vsel %vm8604_vm8, %v5828_v36, -1e+30 }
0x1d0f   : > { %v5832_v46 = vsel %vm1600_vm9, %v5830_v23, -inf  ;;  %p8136_p2 = por %p8135_p1, %p8134_p0 }
0x1d10   : > { %5833 = vmax.xlane.f32.xlu0 %v5832_v46  ;;  %v5831_v38 = vsel %vm8608_vm10, %v5829_v35, -1e+30 }
0x1d11   : > { %v5835_v41 = vsel %vm1600_vm9, %v5831_v38, -inf  ;;  %p8137_p3 = pnand %p8136_p2, %p8130_p13 }
0x1d12   : > { %5836 = vmax.xlane.f32.xlu1 %v5835_v41 }
0x1d38   : > { %v5198_v43 = vpop.xlane.xlu0 %5197 }
0x1d39   : > { %8075 = vrcp.f32 %v5198_v43 }
0x1d3a   : > { %v5201_v44 = vpop.xlane.xlu1 %5200 }
0x1d3b   : > { %8077 = vrcp.f32 %v5201_v44 }
0x1d40   : > { %v5316_v45 = vpop.xlane.xlu0 %5315 }
0x1d41   : > { %8079 = vrcp.f32 %v5316_v45 }
0x1d42   : > { %v5319_v47 = vpop.xlane.xlu1 %5318 }
0x1d43   : > { %v8076_v48 = vpop.eup %8075  ;;  %8081 = vrcp.f32 %v5319_v47 }
0x1d44   : > { %v5204_v49 = vmul.f32 %v8076_v48, %v8068_v58  ;;  %v6876_v58 = vld [vmem:[%s9570_s14 + $0x18] sm:$0xf] }
0x1d45   : > { %v8078_v50 = vpop.eup %8077 }
0x1d46   : > { %v5205_v31 = vmul.f32 %v8078_v50, %v8070_v22  ;;  %v5380_v22 = vsel %vm2263_vm11, %v6876_v58, 0 }
0x1d48   : > { %v5206_v24 = vpack.c.bf16 %v5205_v31, %v5204_v49 }
0x1d4a   : > { %7661 = vmatmul.mubr.msk.bf16.vlgmr.msra.gmra.mrb[112].mxu1 %vm1600_vm9, %v5206_v24 }
0x1d4b   : > { %v8080_v54 = vpop.eup %8079  ;;  %7671 = vmatpush3.bf16.msra.mxu1 %v5132_v28  ;;  %7672 = vmatprep.mubr.msk.bf16.mxu1 %vm8192_vm0, %v8191_v1 }
0x1d4c   : > { %v5322_v29 = vmul.f32 %v8080_v54, %v8072_v51  ;;  %7802 = vmatprep.subr.msk.bf16.mxu1 %vm2263_vm11, %v6876_v58 }
0x1d4d   : > { %v8082_v27 = vpop.eup %8081 }
0x1d4e   : > { %v5323_v33 = vmul.f32 %v8082_v27, %v8074_v0 }
0x1d50   : > { %v5324_v19 = vpack.c.bf16 %v5323_v33, %v5322_v29 }
0x1d52   : > { %7673 = vmatmul.mubr.msk.bf16.vlgmr.msra.gmra.mrb[116].mxu1 %vm1600_vm9, %v5324_v19 }
0x1d53   : > { %7677 = vmatpush3.bf16.msra.mxu1 %v5380_v22 }
0x1d54   : > { %7698 = vmatprep.subr.bf16.mxu1 %v7923_v62 }
0x1d95   : > { %v5716_v20 = vpop.xlane.xlu0 %5715 }
0x1d96   : > { %v5720_v15 = vsub.f32 %v5712_v25, %v5716_v20  ;;  %v6913_v20 = vld [vmem:[%s9570_s14 + $0x1c] sm:$0xf] }
0x1d97   : > { %v5719_v52 = vpop.xlane.xlu1 %5718 }
0x1d98   : > { %v5722_v53 = vmul.f32 1.442695, %v5720_v15  ;;  %v5721_v11 = vsub.f32 %v5713_v39, %v5719_v52  ;;  %v5910_v15 = vsel %vm2263_vm11, %v6913_v20, 0 }
0x1d9a   : > { %8083 = vpow2.f32 %v5722_v53  ;;  %v5724_v17 = vmul.f32 1.442695, %v5721_v11 }
0x1d9c   : > { %8085 = vpow2.f32 %v5724_v17 }
0x1d9d   : > { %v5834_v55 = vpop.xlane.xlu0 %5833 }
0x1d9e   : > { %v5838_v21 = vsub.f32 %v5830_v23, %v5834_v55 }
0x1d9f   : > { %v5837_v13 = vpop.xlane.xlu1 %5836 }
0x1da0   : > { %v5840_v28 = vmul.f32 1.442695, %v5838_v21  ;;  %v5839_v32 = vsub.f32 %v5831_v38, %v5837_v13 }
0x1da2   : > { %8087 = vpow2.f32 %v5840_v28  ;;  %v5842_v34 = vmul.f32 1.442695, %v5839_v32 }
0x1da4   : > { %v8084_v9 = vpop.eup %8083  ;;  %8089 = vpow2.f32 %v5842_v34 }
0x1da5   : > { %v5726_v10 = vsel %vm1600_vm9, %v8084_v9, 0.0 }
0x1da6   : > { %v8086_v12 = vpop.eup %8085  ;;  %5727 = vadd.xlane.f32.xlu0 %v5726_v10 }
0x1da7   : > { %v5729_v59 = vsel %vm1600_vm9, %v8086_v12, 0.0 }
0x1da8   : > { %5730 = vadd.xlane.f32.xlu1 %v5729_v59 }
0x1dac   : > { %v8088_v51 = vpop.eup %8087 }
0x1dad   : > { %v5844_v16 = vsel %vm1600_vm9, %v8088_v51, 0.0 }
0x1dae   : > { %v8090_v0 = vpop.eup %8089  ;;  %5845 = vadd.xlane.f32.xlu0 %v5844_v16 }
0x1daf   : > { %v5847_v2 = vsel %vm1600_vm9, %v8090_v0, 0.0 }
0x1db0   : > { %5848 = vadd.xlane.f32.xlu1 %v5847_v2 }
0x1e1d   : > { %v5244_v3 = vpop.f32.mrb[112].mxu1 }
0x1e1e   : > { %v7662_v4 = vpop.f32.mrb[113].mxu1 }
0x1e1f   : > { %v5247_v5 = vpop.f32.mrb[114].mxu1 }
0x1e20   : > { %v5369_v6 = vpack.c.bf16 %v5247_v5, %v5244_v3  ;;  %v7663_v7 = vpop.f32.mrb[115].mxu1 }
0x1e22   : > { %7678 = vmatprep.mubr.msk.bf16.mxu1 %vm1548_vm7, %v5369_v6 }
0x1e25   : > { %v5362_v8 = vpop.f32.mrb[116].mxu1 }
0x1e26   : > { %v7674_v25 = vpop.f32.mrb[117].mxu1 }
0x1e27   : > { %v5365_v14 = vpop.f32.mrb[118].mxu1 }
0x1e28   : > { %v5370_v39 = vpack.c.bf16 %v5365_v14, %v5362_v8  ;;  %v7675_v30 = vpop.f32.mrb[119].mxu1 }
0x1e2a   : > { %7679 = vmatmul.mubr.msk.bf16.vlgmr.msra.gmra.mrb[104].mxu1 %vm1548_vm7, %v5370_v39 }
0x1e2b   : > { %7699 = vmatpush3.bf16.msra.mxu1 %v7923_v62  ;;  %7702 = vmatprep.mubr.msk.bf16.mxu1 %vm1223_vm1, %v9030_v56  ;;  %v6904_v56 = vld [vmem:[%s9569_s13 + $0x7] ss:$0 sm:$0xff] }
0x1e2c   : > { %7700 = vmatprep.subr.bf16.mxu1 %v7924_v18 }
0x1e2f   : > { %7701 = vmatpush3.bf16.msra.mxu1 %v7924_v18 }
0x1e30   : > { %7712 = vmatprep.subr.bf16.mxu1 %v8191_v1 }
0x1e32   : > { %7703 = vmatmul.mubr.msk.bf16.vlgmr.msra.gmra.mrb[120].mxu1 %vm1223_vm1, %v9034_v26 }
0x1e33   : > { %7714 = vmatprep.mubr.msk.bf16.mxu1 %vm8192_vm0, %v8191_v1  ;;  %v5728_v37 = vpop.xlane.xlu0 %5727 }
0x1e35   : > { %v5731_v36 = vpop.xlane.xlu1 %5730 }
0x1e36   : > { %8091 = vrcp.f32 %v5731_v36 }
0x1e37   : > { %8093 = vrcp.f32 %v5728_v37 }
0x1e3b   : > { %v5846_v35 = vpop.xlane.xlu0 %5845 }
0x1e3d   : > { %v5849_v42 = vpop.xlane.xlu1 %5848 }
0x1e3e   : > { %8095 = vrcp.f32 %v5849_v42 }
0x1e3f   : > { %8097 = vrcp.f32 %v5846_v35 }
0x1e40   : > { %v8092_v46 = vpop.eup %8091 }
0x1e41   : > { %v8094_v44 = vpop.eup %8093  ;;  %v5735_v48 = vmul.f32 %v8092_v46, %v8086_v12 }
0x1e42   : > { %v5734_v31 = vmul.f32 %v8094_v44, %v8084_v9  ;;  %v6917_v9 = vld [vmem:[%s9571_s15 + $0x1] ss:$0 sm:$0xff] }
0x1e44   : > { %v5736_v24 = vpack.c.bf16 %v5735_v48, %v5734_v31 }
0x1e48   : > { %v8096_v54 = vpop.eup %8095 }
0x1e49   : > { %v8098_v27 = vpop.eup %8097  ;;  %v5853_v29 = vmul.f32 %v8096_v54, %v8090_v0 }
0x1e4a   : > { %v5852_v33 = vmul.f32 %v8098_v27, %v8088_v51 }
0x1e4c   : > { %v5854_v19 = vpack.c.bf16 %v5853_v29, %v5852_v33 }
0x1f05   : > { %v7704_v40 = vpop.f32.mrb[120].mxu1 }
0x1f06   : > { %v5646_v23 = vpop.f32.mrb[121].mxu1  ;;  %v5655_v26 = vadd.f32 %v7704_v40, %v6904_v56 }
0x1f07   : > { %v7705_v38 = vpop.f32.mrb[122].mxu1  ;;  %v5647_v45 = vadd.f32 %v6904_v56, %v5646_v23 }
0x1f08   : > { %v5658_v41 = vadd.f32 %v7705_v38, %v6904_v56  ;;  %v5649_v43 = vpop.f32.mrb[123].mxu1 }
0x1f09   : > { %v5650_v47 = vadd.f32 %v6904_v56, %v5649_v43  ;;  %v7926_v43 = vld [vmem:[%s9574_s18 + $0x18] sm:$0xff]  }
0x1f0a   : > { %v5662_v50 = vpack.c.bf16 %v5658_v41, %v5655_v26  ;;  %v7925_v41 = vld [vmem:[%s9574_s18 + $0x10] sm:$0xff]  }
0x1f0b   : > { %v5661_v49 = vpack.c.bf16 %v5650_v47, %v5647_v45  ;;  %7736 = vmatprep.subr.bf16.mxu0 %v7925_v41 }
0x1f0c   : > { %7737 = vmatpush3.bf16.msra.mxu0 %v7925_v41 }
0x1f0d   : > { %7713 = vmatpush3.bf16.msra.mxu1 %v5661_v49  ;;  %7738 = vmatprep.subr.bf16.mxu0 %v7926_v43 }
0x1f0e   : > { %7724 = vmatprep.subr.bf16.mxu1 %v8191_v1 }
0x1f10   : > { %7715 = vmatmul.mubr.msk.bf16.vlgmr.msra.gmra.mrb[124].mxu1 %vm1600_vm9, %v5736_v24  ;;  %7739 = vmatpush3.bf16.msra.mxu0 %v7926_v43 }
0x1f11   : > { %7725 = vmatpush3.bf16.msra.mxu1 %v5662_v50  ;;  %7726 = vmatprep.mubr.msk.bf16.mxu1 %vm8192_vm0, %v8191_v1 }
0x1f12   : > { %7803 = vmatprep.subr.msk.bf16.mxu1 %vm2263_vm11, %v6913_v20  ;;  %v6920_v20 = vld [vmem:[%s9572_s16 + $0x1] ss:$0 sm:$0xff] }
0x1f18   : > { %7727 = vmatmul.mubr.msk.bf16.vlgmr.msra.gmra.mrb[128].mxu1 %vm1600_vm9, %v5854_v19 }
0x1f19   : > { %7731 = vmatpush3.bf16.msra.mxu1 %v5910_v15 }
0x1fe3   : > { %v5774_v52 = vpop.f32.mrb[124].mxu1 }
0x1fe4   : > { %v7716_v53 = vpop.f32.mrb[125].mxu1 }
0x1fe5   : > { %v5777_v11 = vpop.f32.mrb[126].mxu1 }
0x1fe6   : > { %v5899_v17 = vpack.c.bf16 %v5777_v11, %v5774_v52  ;;  %v7717_v55 = vpop.f32.mrb[127].mxu1 }
0x1fe7   : > { %v6921_v55 = vld [vmem:[%s9573_s17 + $0x1] ss:$0 sm:$0xff] }
0x1fe8   : > { %7732 = vmatprep.mubr.msk.bf16.mxu1 %vm1548_vm7, %v5899_v17 }
0x1feb   : > { %v5892_v1 = vpop.f32.mrb[128].mxu1 }
0x1fec   : > { %v7728_v21 = vpop.f32.mrb[129].mxu1 }
0x1fed   : > { %v5895_v13 = vpop.f32.mrb[130].mxu1 }
0x1fee   : > { %v5900_v28 = vpack.c.bf16 %v5895_v13, %v5892_v1  ;;  %v7729_v32 = vpop.f32.mrb[131].mxu1 }
0x1ff0   : > { %7733 = vmatmul.mubr.msk.bf16.vlgmr.msra.gmra.mrb[104].mxu1 %vm1548_vm7, %v5900_v28 }
0x20c3   : > { %v7734_v34 = vpop.f32.mrb[104].mxu1 }
0x20c4   : > { %v5946_v10 = vpop.f32.mrb[105].mxu1  ;;  %v5967_v12 = vadd.f32 %v7734_v34, %v8993_v60 }
0x20c5   : > { %v5965_v58 = vadd.f32 %v5946_v10, %v8989_v57  ;;  %v7735_v59 = vpop.f32.mrb[106].mxu1 }
0x20c6   : > { %v5949_v22 = vpop.f32.mrb[107].mxu1  ;;  %v5968_v51 = vadd.f32 %v7735_v59, %v8999_v63  ;;  %v9414_v0 = vadd.f32 %v6917_v9, %v5967_v12 }
0x20c7   : > { %v9410_v62 = vadd.f32 %v6917_v9, %v5965_v58  ;;  %v5966_v16 = vadd.f32 %v5949_v22, %v8995_v61 }
0x20c8   : > { %v9420_v4 = vadd.f32 %v6917_v9, %v5968_v51  ;;  %v5991_v60 = vsel %vm1223_vm1, %v9414_v0, 0.0  ;;  %v7927_v51 = vld [vmem:[%s9576_s20 + $0x40] sm:$0xff]  }
0x20c9   : > { %v9416_v2 = vadd.f32 %v6917_v9, %v5966_v16  ;;  %v5985_v3 = vsel %vm1223_vm1, %v9410_v62, 0.0  ;;  %7744 = vmatprep.subr.bf16.mxu0 %v7927_v51  ;;  %v7928_v16 = vld [vmem:[%s9576_s20 + $0x48] sm:$0xff]  }
0x20ca   : > { %5986 = vadd.xlane.f32.xlu0 %v5985_v3  ;;  %v5994_v61 = vsel %vm1223_vm1, %v9420_v4, 0.0  ;;  %v7929_v3 = vld [vmem:[%s9576_s20 + $0x50] sm:$0xff]  }
0x20cb   : > { %v5988_v57 = vsel %vm1223_vm1, %v9416_v2, 0.0 }
0x20cc   : > { %5989 = vadd.xlane.f32.xlu1 %v5988_v57  ;;  %v7930_v57 = vld [vmem:[%s9576_s20 + $0x58] sm:$0xff]  }
0x20ce   : > { %5992 = vadd.xlane.f32.xlu0 %v5991_v60  ;;  %v7931_v60 = vld [vmem:[%s9576_s20 + $0x60] sm:$0xff]  }
0x20d0   : > { %5995 = vadd.xlane.f32.xlu1 %v5994_v61  ;;  %v7932_v61 = vld [vmem:[%s9576_s20 + $0x68] sm:$0xff]  }
0x2157   : > { %v5987_v63 = vpop.xlane.xlu0 %5986 }
0x2158   : > { %v5997_v5 = vmul.f32 0.03125, %v5987_v63  ;;  %v7933_v63 = vld [vmem:[%s9576_s20 + $0x70] sm:$0xff]  }
0x2159   : > { %v5990_v6 = vpop.xlane.xlu1 %5989 }
0x215a   : > { %v6001_v7 = vsub.f32 %v9410_v62, %v5997_v5  ;;  %v5998_v8 = vmul.f32 0.03125, %v5990_v6  ;;  %v7934_v5 = vld [vmem:[%s9576_s20 + $0x78] sm:$0xff]   ;;  %v6927_v6 = vld [vmem:[%s9575_s19 + $0x1] ss:$0 sm:$0xff] }
0x215b   : > { %v5993_v25 = vpop.xlane.xlu0 %5992 }
0x215c   : > { %v6002_v14 = vsub.f32 %v9416_v2, %v5998_v8  ;;  %v5999_v39 = vmul.f32 0.03125, %v5993_v25  ;;  %v6005_v30 = vmul.f32 %v6001_v7, %v6001_v7 }
0x215d   : > { %v5996_v18 = vpop.xlane.xlu1 %5995 }
0x215e   : > { %v6003_v36 = vsub.f32 %v9414_v0, %v5999_v39  ;;  %v6000_v37 = vmul.f32 0.03125, %v5996_v18  ;;  %v6009_v42 = vsel %vm1223_vm1, %v6005_v30, 0.0  ;;  %v6006_v35 = vmul.f32 %v6002_v14, %v6002_v14 }
0x215f   : > { %6010 = vadd.xlane.f32.xlu0 %v6009_v42 }
0x2160   : > { %v6004_v40 = vsub.f32 %v9420_v4, %v6000_v37  ;;  %v6012_v56 = vsel %vm1223_vm1, %v6006_v35, 0.0  ;;  %v6007_v23 = vmul.f32 %v6003_v36, %v6003_v36 }
0x2161   : > { %6013 = vadd.xlane.f32.xlu1 %v6012_v56 }
0x2162   : > { %v6015_v46 = vsel %vm1223_vm1, %v6007_v23, 0.0  ;;  %v6008_v38 = vmul.f32 %v6004_v40, %v6004_v40 }
0x2163   : > { %6016 = vadd.xlane.f32.xlu0 %v6015_v46 }
0x2164   : > { %v6018_v26 = vsel %vm1223_vm1, %v6008_v38, 0.0 }
0x2165   : > { %6019 = vadd.xlane.f32.xlu1 %v6018_v26 }
0x21ec   : > { %v6011_v44 = vpop.xlane.xlu0 %6010 }
0x21ed   : > { %v6021_v45 = vmul.f32 0.03125, %v6011_v44 }
0x21ee   : > { %v6014_v47 = vpop.xlane.xlu1 %6013 }
0x21ef   : > { %v6025_v48 = vadd.f32 1e-05, %v6021_v45  ;;  %v6022_v50 = vmul.f32 0.03125, %v6014_v47 }
0x21f0   : > { %v6017_v49 = vpop.xlane.xlu0 %6016 }
0x21f1   : > { %8099 = vrsqrt.f32 %v6025_v48  ;;  %v6026_v31 = vadd.f32 1e-05, %v6022_v50  ;;  %v6023_v24 = vmul.f32 0.03125, %v6017_v49 }
0x21f2   : > { %v6020_v54 = vpop.xlane.xlu1 %6019 }
0x21f3   : > { %8101 = vrsqrt.f32 %v6026_v31  ;;  %v6027_v27 = vadd.f32 1e-05, %v6023_v24  ;;  %v6024_v29 = vmul.f32 0.03125, %v6020_v54 }
0x21f5   : > { %8103 = vrsqrt.f32 %v6027_v27  ;;  %v6028_v33 = vadd.f32 1e-05, %v6024_v29 }
0x21f7   : > { %8105 = vrsqrt.f32 %v6028_v33 }
0x21fb   : > { %v8100_v19 = vpop.eup %8099 }
0x21fc   : > { %v6033_v15 = vmul.f32 %v8100_v19, %v6001_v7 }
0x21fd   : > { %v8102_v52 = vpop.eup %8101 }
0x21fe   : > { %v6034_v53 = vmul.f32 %v8102_v52, %v6002_v14  ;;  %v6043_v11 = vmul.f32 %v6920_v20, %v6033_v15 }
0x21ff   : > { %v8104_v17 = vpop.eup %8103 }
0x2200   : > { %v6035_v1 = vmul.f32 %v8104_v17, %v6003_v36  ;;  %v6044_v21 = vmul.f32 %v6920_v20, %v6034_v53  ;;  %v6053_v34 = vadd.f32 %v6921_v55, %v6043_v11 }
0x2201   : > { %v8106_v13 = vpop.eup %8105 }
0x2202   : > { %v6045_v28 = vmul.f32 %v6920_v20, %v6035_v1  ;;  %v6036_v32 = vmul.f32 %v8106_v13, %v6004_v40  ;;  %v6054_v9 = vadd.f32 %v6921_v55, %v6044_v21 }
0x2204   : > { %v6046_v10 = vmul.f32 %v6920_v20, %v6036_v32  ;;  %v6057_v12 = vpack.c.bf16 %v6054_v9, %v6053_v34  ;;  %v6055_v58 = vadd.f32 %v6921_v55, %v6045_v28 }
0x2206   : > { %7740 = vmatprep.mubr.msk.bf16.mxu0 %vm1223_vm1, %v6057_v12  ;;  %v6056_v59 = vadd.f32 %v6921_v55, %v6046_v10  ;;  %v6957_v12 = vld [vmem:[%s9577_s21 + $0x1] ss:$0 sm:$0xff] }
0x2208   : > { %v6058_v22 = vpack.c.bf16 %v6056_v59, %v6055_v58 }
0x220a   : > { %7741 = vmatmul.mubr.msk.bf16.vlgmr.msra.gmra.mrb[128].mxu0 %vm1223_vm1, %v6058_v22 }
0x220b   : > { %7745 = vmatpush3.bf16.msra.mxu0 %v7927_v51 }
0x220c   : > { %7746 = vmatprep.subr.bf16.mxu0 %v7928_v16 }
0x220f   : > { %7747 = vmatpush3.bf16.msra.mxu0 %v7928_v16 }
0x2210   : > { %7748 = vmatprep.subr.bf16.mxu0 %v7929_v3 }
0x2213   : > { %7749 = vmatpush3.bf16.msra.mxu0 %v7929_v3 }
0x2214   : > { %7750 = vmatprep.subr.bf16.mxu0 %v7930_v57 }
0x2217   : > { %7751 = vmatpush3.bf16.msra.mxu0 %v7930_v57 }
0x2218   : > { %7752 = vmatprep.subr.bf16.mxu0 %v7931_v60 }
0x221b   : > { %7753 = vmatpush3.bf16.msra.mxu0 %v7931_v60 }
0x221c   : > { %7754 = vmatprep.subr.bf16.mxu0 %v7932_v61 }
0x221f   : > { %7755 = vmatpush3.bf16.msra.mxu0 %v7932_v61 }
0x2220   : > { %7756 = vmatprep.subr.bf16.mxu0 %v7933_v63 }
0x2223   : > { %7757 = vmatpush3.bf16.msra.mxu0 %v7933_v63 }
0x2224   : > { %7758 = vmatprep.subr.bf16.mxu0 %v7934_v5 }
0x2227   : > { %7759 = vmatpush3.bf16.msra.mxu0 %v7934_v5 }
0x22dd   : > { %v7742_v7 = vpop.f32.mrb[128].mxu0 }
0x22de   : > { %v6133_v8 = vadd.f32 %v7742_v7, %v6927_v6  ;;  %v6124_v25 = vpop.f32.mrb[129].mxu0 }
0x22df   : > { %v6125_v14 = vadd.f32 %v6927_v6, %v6124_v25  ;;  %v7743_v39 = vpop.f32.mrb[130].mxu0 }
0x22e0   : > { %v6145_v30 = vmul.f32 0.044715, %v6133_v8  ;;  %v6136_v18 = vadd.f32 %v7743_v39, %v6927_v6  ;;  %v6127_v36 = vpop.f32.mrb[131].mxu0  ;;  %v6141_v52 = vmul.f32 0.5, %v6133_v8 }
0x22e1   : > { %v6143_v37 = vmul.f32 0.044715, %v6125_v14  ;;  %v6128_v42 = vadd.f32 %v6927_v6, %v6127_v36  ;;  %v6139_v17 = vmul.f32 0.5, %v6125_v14 }
0x22e2   : > { %v6149_v35 = vmul.f32 %v6145_v30, %v6133_v8  ;;  %v6146_v40 = vmul.f32 0.044715, %v6136_v18  ;;  %v6142_v53 = vmul.f32 0.5, %v6136_v18 }
0x22e3   : > { %v6147_v56 = vmul.f32 %v6143_v37, %v6125_v14  ;;  %v6144_v23 = vmul.f32 0.044715, %v6128_v42  ;;  %v6140_v55 = vmul.f32 0.5, %v6128_v42 }
0x22e4   : > { %v6153_v46 = vmul.f32 %v6149_v35, %v6133_v8  ;;  %v6150_v38 = vmul.f32 %v6146_v40, %v6136_v18 }
0x22e5   : > { %v6151_v26 = vmul.f32 %v6147_v56, %v6125_v14  ;;  %v6148_v41 = vmul.f32 %v6144_v23, %v6128_v42 }
0x22e6   : > { %v6157_v43 = vadd.f32 %v6153_v46, %v6133_v8  ;;  %v6154_v44 = vmul.f32 %v6150_v38, %v6136_v18 }
0x22e7   : > { %v6152_v45 = vmul.f32 %v6148_v41, %v6128_v42  ;;  %v6155_v47 = vadd.f32 %v6151_v26, %v6125_v14 }
0x22e8   : > { %v6161_v48 = vmul.f32 0.7978846, %v6157_v43  ;;  %v6158_v50 = vadd.f32 %v6154_v44, %v6136_v18  ;;  %v7935_v44 = vld [vmem:[%s9580_s24] sm:$0xff]  }
0x22e9   : > { %v6156_v49 = vadd.f32 %v6152_v45, %v6128_v42  ;;  %v6159_v31 = vmul.f32 0.7978846, %v6155_v47  ;;  %7764 = vmatprep.subr.bf16.mxu1 %v7935_v44  ;;  %v7936_v45 = vld [vmem:[%s9580_s24 + $0x8] sm:$0xff]  }
0x22ea   : > { %8107 = vtanh.f32 %v6161_v48  ;;  %v6162_v24 = vmul.f32 0.7978846, %v6158_v50  ;;  %7765 = vmatpush3.bf16.msra.mxu1 %v7935_v44 }
0x22eb   : > { %v6160_v54 = vmul.f32 0.7978846, %v6156_v49  ;;  %8109 = vtanh.f32 %v6159_v31  ;;  %7766 = vmatprep.subr.bf16.mxu1 %v7936_v45 }
0x22ec   : > { %8111 = vtanh.f32 %v6162_v24 }
0x22ed   : > { %8113 = vtanh.f32 %v6160_v54 }
0x22ee   : > { %7767 = vmatpush3.bf16.msra.mxu1 %v7936_v45 }
0x22f4   : > { %v8108_v27 = vpop.eup %8107 }
0x22f5   : > { %v8110_v29 = vpop.eup %8109  ;;  %v6169_v33 = vadd.f32 1.0, %v8108_v27 }
0x22f6   : > { %v8112_v19 = vpop.eup %8111  ;;  %v6167_v20 = vadd.f32 1.0, %v8110_v29 }
0x22f7   : > { %v8114_v15 = vpop.eup %8113  ;;  %v6170_v11 = vadd.f32 1.0, %v8112_v19  ;;  %v6173_v21 = vmul.f32 %v6169_v33, %v6141_v52  ;;  %v6958_v52 = vld [vmem:[%s9578_s22] ss:$0 sm:$0xff] }
0x22f8   : > { %v6168_v1 = vadd.f32 1.0, %v8114_v15  ;;  %v6171_v28 = vmul.f32 %v6167_v20, %v6139_v17 }
0x22f9   : > { %v6174_v13 = vmul.f32 %v6170_v11, %v6142_v53 }
0x22fa   : > { %v6172_v32 = vmul.f32 %v6168_v1, %v6140_v55 }
0x22fb   : > { %v6176_v34 = vpack.c.bf16 %v6174_v13, %v6173_v21  ;;  %v6959_v21 = vld [vmem:[%s9579_s23] ss:$0 sm:$0xff] }
0x22fc   : > { %v6175_v9 = vpack.c.bf16 %v6172_v32, %v6171_v28 }
0x22fe   : > { %7760 = vmatprep.mubr.bf16.mxu0 %v6175_v9 }
0x22ff   : > { %7761 = vmatmul.mubr.bf16.vlgmr.msra.gmra.mrb[132].mxu0 %v6176_v34 }
0x23d2   : > { %v7762_v10 = vpop.f32.mrb[132].mxu0 }
0x23d3   : > { %v6276_v58 = vpop.f32.mrb[133].mxu0  ;;  %v6293_v59 = vadd.f32 %v7762_v10, %v9414_v0 }
0x23d4   : > { %v6291_v22 = vadd.f32 %v6276_v58, %v9410_v62  ;;  %v7763_v51 = vpop.f32.mrb[134].mxu0 }
0x23d5   : > { %v6279_v16 = vpop.f32.mrb[135].mxu0  ;;  %v6294_v3 = vadd.f32 %v7763_v51, %v9420_v4  ;;  %v6305_v61 = vadd.f32 %v6957_v12, %v6293_v59 }
0x23d6   : > { %v6292_v57 = vadd.f32 %v6279_v16, %v9416_v2  ;;  %v6303_v60 = vadd.f32 %v6957_v12, %v6291_v22 }
0x23d7   : > { %v6306_v6 = vadd.f32 %v6957_v12, %v6294_v3  ;;  %v6315_v0 = vsel %vm1223_vm1, %v6305_v61, 0.0 }
0x23d8   : > { %v6309_v63 = vsel %vm1223_vm1, %v6303_v60, 0.0  ;;  %v6304_v5 = vadd.f32 %v6957_v12, %v6292_v57 }
0x23d9   : > { %6310 = vadd.xlane.f32.xlu0 %v6309_v63  ;;  %v6318_v62 = vsel %vm1223_vm1, %v6306_v6, 0.0 }
0x23da   : > { %v6312_v7 = vsel %vm1223_vm1, %v6304_v5, 0.0 }
0x23db   : > { %6313 = vadd.xlane.f32.xlu1 %v6312_v7 }
0x23dd   : > { %6316 = vadd.xlane.f32.xlu0 %v6315_v0 }
0x23df   : > { %6319 = vadd.xlane.f32.xlu1 %v6318_v62 }
0x2466   : > { %v6311_v8 = vpop.xlane.xlu0 %6310 }
0x2467   : > { %v6321_v4 = vmul.f32 0.03125, %v6311_v8 }
0x2468   : > { %v6314_v25 = vpop.xlane.xlu1 %6313 }
0x2469   : > { %v6325_v2 = vsub.f32 %v6303_v60, %v6321_v4  ;;  %v6322_v14 = vmul.f32 0.03125, %v6314_v25 }
0x246a   : > { %v6317_v39 = vpop.xlane.xlu0 %6316 }
0x246b   : > { %v6326_v30 = vsub.f32 %v6304_v5, %v6322_v14  ;;  %v6323_v18 = vmul.f32 0.03125, %v6317_v39  ;;  %v6329_v36 = vmul.f32 %v6325_v2, %v6325_v2 }
0x246c   : > { %v6320_v37 = vpop.xlane.xlu1 %6319 }
0x246d   : > { %v6327_v42 = vsub.f32 %v6305_v61, %v6323_v18  ;;  %v6324_v35 = vmul.f32 0.03125, %v6320_v37  ;;  %v6333_v40 = vsel %vm1223_vm1, %v6329_v36, 0.0  ;;  %v6330_v56 = vmul.f32 %v6326_v30, %v6326_v30 }
0x246e   : > { %6334 = vadd.xlane.f32.xlu0 %v6333_v40 }
0x246f   : > { %v6328_v23 = vsub.f32 %v6306_v6, %v6324_v35  ;;  %v6336_v46 = vsel %vm1223_vm1, %v6330_v56, 0.0  ;;  %v6331_v38 = vmul.f32 %v6327_v42, %v6327_v42 }
0x2470   : > { %6337 = vadd.xlane.f32.xlu1 %v6336_v46 }
0x2471   : > { %v6339_v26 = vsel %vm1223_vm1, %v6331_v38, 0.0  ;;  %v6332_v41 = vmul.f32 %v6328_v23, %v6328_v23 }
0x2472   : > { %6340 = vadd.xlane.f32.xlu0 %v6339_v26 }
0x2473   : > { %v6342_v43 = vsel %vm1223_vm1, %v6332_v41, 0.0 }
0x2474   : > { %6343 = vadd.xlane.f32.xlu1 %v6342_v43 }
0x24fb   : > { %v6335_v47 = vpop.xlane.xlu0 %6334 }
0x24fc   : > { %v6345_v48 = vmul.f32 0.03125, %v6335_v47 }
0x24fd   : > { %v6338_v50 = vpop.xlane.xlu1 %6337 }
0x24fe   : > { %v6349_v49 = vadd.f32 1e-05, %v6345_v48  ;;  %v6346_v31 = vmul.f32 0.03125, %v6338_v50 }
0x24ff   : > { %v6341_v24 = vpop.xlane.xlu0 %6340 }
0x2500   : > { %8115 = vrsqrt.f32 %v6349_v49  ;;  %v6350_v54 = vadd.f32 1e-05, %v6346_v31  ;;  %v6347_v27 = vmul.f32 0.03125, %v6341_v24 }
0x2501   : > { %v6344_v29 = vpop.xlane.xlu1 %6343 }
0x2502   : > { %8117 = vrsqrt.f32 %v6350_v54  ;;  %v6351_v33 = vadd.f32 1e-05, %v6347_v27  ;;  %v6348_v19 = vmul.f32 0.03125, %v6344_v29 }
0x2504   : > { %8119 = vrsqrt.f32 %v6351_v33  ;;  %v6352_v20 = vadd.f32 1e-05, %v6348_v19 }
0x2506   : > { %8121 = vrsqrt.f32 %v6352_v20 }
0x250a   : > { %v8116_v15 = vpop.eup %8115 }
0x250b   : > { %v6357_v53 = vmul.f32 %v8116_v15, %v6325_v2 }
0x250c   : > { %v8118_v11 = vpop.eup %8117 }
0x250d   : > { %v6358_v17 = vmul.f32 %v8118_v11, %v6326_v30  ;;  %v6367_v55 = vmul.f32 %v6958_v52, %v6357_v53 }
0x250e   : > { %v8120_v1 = vpop.eup %8119 }
0x250f   : > { %v6359_v13 = vmul.f32 %v8120_v1, %v6327_v42  ;;  %v6368_v28 = vmul.f32 %v6958_v52, %v6358_v17  ;;  %v6377_v10 = vadd.f32 %v6959_v21, %v6367_v55 }
0x2510   : > { %v8122_v32 = vpop.eup %8121 }
0x2511   : > { %v6369_v34 = vmul.f32 %v6958_v52, %v6359_v13  ;;  %v6360_v9 = vmul.f32 %v8122_v32, %v6328_v23  ;;  %v6378_v12 = vadd.f32 %v6959_v21, %v6368_v28 }
0x2513   : > { %v6370_v58 = vmul.f32 %v6958_v52, %v6360_v9  ;;  %v6381_v59 = vpack.c.bf16 %v6378_v12, %v6377_v10  ;;  %v6379_v22 = vadd.f32 %v6959_v21, %v6369_v34 }
0x2515   : > { %7768 = vmatprep.mubr.msk.bf16.mxu1 %vm1223_vm1, %v6381_v59  ;;  %v6380_v51 = vadd.f32 %v6959_v21, %v6370_v58 }
0x2517   : > { %v6382_v16 = vpack.c.bf16 %v6380_v51, %v6379_v22 }
0x2519   : > { %7769 = vmatmul.mubr.msk.bf16.vlgmr.msra.gmra.mrb[132].mxu1 %vm1223_vm1, %v6382_v16 }
0x25ec   : > { %v7770_v3 = vpop.f32.mrb[132].mxu1 }
0x25ed   : > { %6964 = vst [vmem:[%s774_s9 + $0x10] sm:$0xff] %v7770_v3  ;;  %v6439_v57 = vpop.f32.mrb[133].mxu1 }
0x25ee   : > { %6454 = vst [vmem:[%s774_s9] sm:$0xff] %v6439_v57  ;;  %v7771_v60 = vpop.f32.mrb[134].mxu1 }
0x25ef   : > { %6965 = vst [vmem:[%s774_s9 + $0x18] sm:$0xff] %v7771_v60  ;;  %v6442_v61 = vpop.f32.mrb[135].mxu1 }
0x25f0   : > { %6455 = vst [vmem:[%s774_s9 + $0x8] sm:$0xff] %v6442_v61 }
0x25f1   : > { %8140 = shalt.err (!%p8137_p3)
}
0x25f2   : > { %s8141_s0 = scalar_lea.hbm %s9513_s8, 512  ;;  %s8145_s10 = scalar_lea.hbm %s9646_s4, 1024 }
0x25f3   : > { %p8142_p4 = scmp.ne.s32.totalorder %s9513_s8, %s8141_s0  ;;  %p8146_p9 = scmp.lt.u32.totalorder %s9513_s8, %s9646_s4 }
0x25f4   : > { %p8147_p10 = scmp.lt.u32.totalorder %s8145_s10, %s8141_s0  ;;  %p8149_p12 = scmp.lt.u32.totalorder %s8141_s0, %s9513_s8 }
0x25f5   : > { %p8143_p7 = pnand %p8142_p4, %p8364_p5 }
0x25f6   : > { %p8148_p11 = por %p8147_p10, %p8146_p9 }
0x25f7   : > { %p8144_p8 = pneg %p8143_p7 }
0x25f8   : > { %p8150_p13 = por %p8149_p12, %p8148_p11 }
0x25fa   : > { %p8151_p0 = pnand %p8150_p13, %p8144_p8 }
0x25fc   : > { %8154 = shalt.err (!%p8151_p0)
}
0x25fd   : > { %s8194_s12 = smov 128   ;;  %s8195_s3 = smov 8  }
0x25fe   : > { %7804 = dma.vmem_to_hbm [thread:$0]  (%p8364_p5), %s9508_s6, 512, %s9513_s8, %s9515_s1, %s8194_s12, %s8194_s12, %s8195_s3  }
0x25ff PF: > { %s9647_s7 = sld [smem:[#allocation8_spill]]  ;;  %s9648_s9 = sld [smem:[#allocation6_spill]] }
0x2605   : > { %p7810_p1 = scmp.ge.s32.totalorder %s9647_s7, 2  ;;  %s6489_s5 = sand.u32 1, %s9648_s9  }
0x2606   : > { %s6490_s0 = scalar_lea.sflag [#allocation4], %s6489_s5 }
0x2607   : > { %p7807_p2 = pnand %p7810_p1, %p8368_p6 }
0x2609   : > { %8172 = dma.done.wait (!%p7807_p2), %s6490_s0, 512  }
0x260a   : > { %8174 = vsyncadd (!%p7807_p2), %s6490_s0, 4294966784  ;;  %s9650_s30 = sld [smem:[#allocation9_spill]]  ;;  %s9651_s10 = sld [smem:[#allocation7_spill]] }
0x260b   : > { %s9652_s6 = sld [smem:[#allocation10_spill]]  ;;  %s9653_s29 = smov %s8181_s2 }
0x2610   : > { %p35_p3 = scmp.ge.s32.totalorder %s9650_s30, 4   ;;  %s9654_s2 = smov %s9651_s10 }
0x2612   :  { %37 = sbr.rel (!%p35_p3) target bundleno = 18 (0x12), region = 224 }
0x2619   :  { %6495 = vsyncpa [#allocation4], 1 }
0x261a   :  { %6497 = vsyncpa [#allocation4 + $0x1], 1 }

</bundles_post_ra>
